<compile_context>
chip_gen: v5e
topology: v5e:2x2
jax: 0.10.0
libtpu: 0.0.40
codegen_flags: <defaults>
</compile_context>

<pallas_src>
import jax
import jax.numpy as jnp
from jax.experimental import pallas as pl
from jax.experimental.pallas import tpu as pltpu


def conv_bn_relu_kernel(xm_ref, xh_ref, w_ref, shift_ref, o_ref):
    # xm_ref:    (1, TH, Wp, Cinp)    bf16  main rows of the zero-padded input tile
    # xh_ref:    (1, 2,  Wp, Cinp)    bf16  halo: the 2 padded rows just below the tile
    # w_ref:     (KH, KW, Cinp, Coutp) bf16 conv weights (HWIO) with BN scale folded in
    # shift_ref: (1, Coutp)           f32   folded BN shift (incl. conv bias)
    # o_ref:     (1, TH, Wp, Coutp)   f32   output tile (padded width/channels, cropped later)
    _, TH, Wp, Coutp = o_ref.shape
    KH, KW, Cinp, _ = w_ref.shape
    kwc = KW // 2

    for kh in range(KH):
        # Output rows [0, TH-kh) of this tile take their kh-tap from the main block rows
        # [kh, TH); the bottom kh output rows need the halo rows [0, kh).
        xm = xm_ref[0, kh:TH, :, :].reshape((TH - kh) * Wp, Cinp)
        xh = xh_ref[0, 0:kh, :, :].reshape(kh * Wp, Cinp) if kh > 0 else None
        for kw in range(KW):
            s = kwc - kw  # column shift for this tap, realized post-matmul on the XLU
            ym = jnp.dot(xm, w_ref[kh, kw], preferred_element_type=jnp.float32)
            if s != 0:
                # Sublane rotate; wrap-around only contaminates the cropped border columns.
                ym = pltpu.roll(ym, s % ym.shape[0], axis=0)
            if kh == 0 and kw == 0:
                o_ref[0, 0:TH] = ym.reshape(TH, Wp, Coutp)            # init, no zero pass
            else:
                o_ref[0, 0:TH - kh] += ym.reshape(TH - kh, Wp, Coutp)
            if kh > 0:
                yh = jnp.dot(xh, w_ref[kh, kw], preferred_element_type=jnp.float32)
                if s != 0:
                    yh = pltpu.roll(yh, s % yh.shape[0], axis=0)
                o_ref[0, TH - kh:TH] += yh.reshape(kh, Wp, Coutp)

    # Fused BatchNorm(eval) shift + ReLU epilogue; lane-dense (Coutp % 128 == 0) store.
    o_ref[...] = jnp.maximum(o_ref[...] + shift_ref[...], 0.0).astype(o_ref.dtype)


def _round_up(x, m):
    return (x + m - 1) // m * m


def conv_block(x_nchw, w_oihw, conv_bias, gamma, beta, running_mean, running_var,
               eps=1e-5, block_h=None):
    B, Cin, H, W = x_nchw.shape
    Cout, Cin_w, KH, KW = w_oihw.shape
    assert Cin_w == Cin
    assert KH == 3 and KW == 3, "specialised to the module default: 3x3, stride 1, same pad"
    ph, pw = KH // 2, KW // 2

    LANE = 128            # lane width -> channel padding target
    SUB = 16              # bf16 sublane packing (also a multiple of f32's 8)
    Cinp = _round_up(Cin, LANE)
    Coutp = _round_up(Cout, LANE)
    Wp = _round_up(W + 2 * pw, SUB)

    # Row-tile height: multiple of 8, >= 2 tiles when H allows (feeds both v7x TCs even at
    # B == 1), sized so double-buffered tiles stay well inside v7x's 64 MiB VMEM.
    if block_h is None:
        per_row = Wp * (2 * Cinp * 2 + 2 * Coutp * 4)     # dbl-buffered bf16 in + f32 out
        budget = 24 * 1024 * 1024
        block_h = min(64,
                      max(8, (budget // per_row) // 8 * 8),
                      max(8, _round_up(-(-H // 2), 8)))
    TH = max(8, _round_up(block_h, 8))
    nH = -(-H // TH)
    Hp2 = (nH + 1) * TH            # main rows for nH tiles + room for the last tile's halo

    # Zero-padded, channel-padded, bf16 NHWC input.  Image sits at rows [1, 1+H),
    # cols [1, 1+W), channels [0, Cin); everything else is zero.
    xp = jnp.zeros((B, Hp2, Wp, Cinp), jnp.bfloat16)
    xp = xp.at[:, ph:ph + H, pw:pw + W, :Cin].set(
        jnp.transpose(x_nchw, (0, 2, 3, 1)).astype(jnp.bfloat16))

    # Fold BatchNorm (eval) + conv bias:  y = relu(conv(x, w * scale) + shift)
    scale = gamma / jnp.sqrt(running_var + eps)                     # (Cout,)
    w_hwio = jnp.transpose(w_oihw, (2, 3, 1, 0)) * scale            # (KH, KW, Cin, Cout)
    wp = jnp.zeros((KH, KW, Cinp, Coutp), jnp.bfloat16)
    wp = wp.at[:, :, :Cin, :Cout].set(w_hwio.astype(jnp.bfloat16))
    shift = jnp.zeros((1, Coutp), jnp.float32)
    shift = shift.at[0, :Cout].set(
        (beta + (conv_bias - running_mean) * scale).astype(jnp.float32))

    # VMEM budget: double-buffered blocks + resident weights (+ slack).
    est = 2 * (TH * Wp * Cinp * 2 + 2 * Wp * Cinp * 2
               + KH * KW * Cinp * Coutp * 2 + TH * Wp * Coutp * 4 + Coutp * 4) + (2 << 20)
    vmem_limit = int(min(max(est, 32 * 1024 * 1024), 64 * 1024 * 1024))

    out_pad = pl.pallas_call(
        conv_bn_relu_kernel,
        out_shape=jax.ShapeDtypeStruct((B, nH * TH, Wp, Coutp), jnp.float32),
        grid_spec=pltpu.PrefetchScalarGridSpec(
            num_scalar_prefetch=0,
            grid=(B, nH),
            in_specs=[
                # TH-row main block of padded rows [i*TH, (i+1)*TH).
                pl.BlockSpec((1, TH, Wp, Cinp), lambda b, i: (b, i, 0, 0)),
                # 2-row halo just below the tile: same array, 2-row blocks at element
                # offset (i+1)*TH  (block index (i+1)*TH/2; TH is a multiple of 8).
                pl.BlockSpec((1, 2, Wp, Cinp),
                             lambda b, i: (b, (i + 1) * (TH // 2), 0, 0)),
                pl.BlockSpec((KH, KW, Cinp, Coutp), lambda b, i: (0, 0, 0, 0)),
                pl.BlockSpec((1, Coutp), lambda b, i: (0, 0)),
            ],
            out_specs=pl.BlockSpec((1, TH, Wp, Coutp), lambda b, i: (b, i, 0, 0)),
        ),
        compiler_params=pltpu.CompilerParams(
            dimension_semantics=("parallel", "parallel"),
            vmem_limit_bytes=vmem_limit),
    )(xp, xp, wp, shift)

    # Crop row / column / channel padding, back to NCHW to match the PyTorch module.
    out = out_pad[:, :H, pw:pw + W, :Cout].astype(x_nchw.dtype)
    return jnp.transpose(out, (0, 3, 1, 2))


def reference(x, w, b, gamma, beta, mean, var, eps=1e-5):
    y = jax.lax.conv_general_dilated(
        x, w, window_strides=(1, 1), padding=((1, 1), (1, 1)),
        dimension_numbers=("NCHW", "OIHW", "NCHW"))
    y = y + b.reshape(1, -1, 1, 1)
    y = (y - mean.reshape(1, -1, 1, 1)) / jnp.sqrt(var.reshape(1, -1, 1, 1) + eps)
    y = y * gamma.reshape(1, -1, 1, 1) + beta.reshape(1, -1, 1, 1)
    return jnp.maximum(y, 0.0)


if __name__ == "__main__":
    B, Cin, H, W = 2, 4, 16, 16
    Cout, K = 8, 3

    key = jax.random.PRNGKey(0)
    kx, kw_, kb, kg, kbt, km, kv = jax.random.split(key, 7)

    x = jax.random.normal(kx, (B, Cin, H, W), dtype=jnp.float32)
    # Conv2d params (OIHW weight + bias), deterministic synthetic init.
    w = jax.random.normal(kw_, (Cout, Cin, K, K), dtype=jnp.float32) * 0.1
    conv_bias = jax.random.normal(kb, (Cout,), dtype=jnp.float32) * 0.1
    # BatchNorm2d params (affine + running stats), eval-mode semantics.
    gamma = 1.0 + 0.1 * jax.random.normal(kg, (Cout,), dtype=jnp.float32)
    beta = 0.1 * jax.random.normal(kbt, (Cout,), dtype=jnp.float32)
    running_mean = 0.1 * jax.random.normal(km, (Cout,), dtype=jnp.float32)
    running_var = jnp.abs(1.0 + 0.1 * jax.random.normal(kv, (Cout,), dtype=jnp.float32))

    out = conv_block(x, w, conv_bias, gamma, beta, running_mean, running_var)
    out = jax.block_until_ready(out)

    ref = reference(x, w, conv_bias, gamma, beta, running_mean, running_var)
    assert out.shape == (B, Cout, H, W)
    max_err = jnp.max(jnp.abs(out - ref))
    # bf16 MXU inputs (f32 accumulate) -> tolerance loosened vs. pure-f32.
    assert jnp.allclose(out, ref, atol=3e-2, rtol=3e-2), f"max abs diff {max_err}"

    print("KERNEL_OK")
</pallas_src>

<mosaic_0001>
module attributes {stable_mosaic.version = 11 : i64} {
  func.func @conv_bn_relu_kernel(%arg0: i32, %arg1: i32, %arg2: memref<1x8x32x128xbf16, #tpu.memory_space<vmem>>, %arg3: memref<1x2x32x128xbf16, #tpu.memory_space<vmem>>, %arg4: memref<3x3x128x128xbf16, #tpu.memory_space<vmem>>, %arg5: memref<1x128xf32, #tpu.memory_space<vmem>>, %arg6: memref<1x8x32x128xf32, #tpu.memory_space<vmem>>) attributes {dimension_semantics = [#tpu.dimension_semantics<parallel>, #tpu.dimension_semantics<parallel>], iteration_bounds = array<i64: 2, 2>, scalar_prefetch = 0 : i64, scratch_operands = 0 : i64, tpu.core_type = #tpu.core_type<tc>, window_params = [{transform_indices = @transform_0, window_bounds = array<i64: 1, 8, 32, 128>}, {transform_indices = @transform_1, window_bounds = array<i64: 1, 2, 32, 128>}, {pipeline_mode = #tpu.pipeline_mode<synchronous>, transform_indices = @transform_2, window_bounds = array<i64: 3, 3, 128, 128>}, {pipeline_mode = #tpu.pipeline_mode<synchronous>, transform_indices = @transform_3, window_bounds = array<i64: 1, 128>}, {transform_indices = @transform_4, window_bounds = array<i64: 1, 8, 32, 128>}]} {
    %c0 = arith.constant 0 : index
    %c0_0 = arith.constant 0 : index
    %c0_1 = arith.constant 0 : index
    %c0_2 = arith.constant 0 : index
    %0 = vector.load %arg2[%c0, %c0_0, %c0_1, %c0_2] : memref<1x8x32x128xbf16, #tpu.memory_space<vmem>>, vector<1x8x32x128xbf16>
    %1 = vector.shape_cast %0 : vector<1x8x32x128xbf16> to vector<8x32x128xbf16>
    %2 = vector.shape_cast %1 : vector<8x32x128xbf16> to vector<256x128xbf16>
    %c0_3 = arith.constant 0 : index
    %c0_4 = arith.constant 0 : index
    %c0_5 = arith.constant 0 : index
    %c0_6 = arith.constant 0 : index
    %3 = vector.load %arg4[%c0_3, %c0_4, %c0_5, %c0_6] : memref<3x3x128x128xbf16, #tpu.memory_space<vmem>>, vector<1x1x128x128xbf16>
    %4 = vector.shape_cast %3 : vector<1x1x128x128xbf16> to vector<128x128xbf16>
    %cst = arith.constant dense<0.000000e+00> : vector<256x128xf32>
    %5 = tpu.matmul %2, %4, %cst {dimension_numbers = #tpu.dot_dimension_numbers<[1], [0], [0], [1], [0, 0, 1, 1], [], []>} : vector<256x128xbf16>, vector<128x128xbf16>, vector<256x128xf32> -> vector<256x128xf32>
    %c1_i32 = arith.constant 1 : i32
    %6 = tpu.dynamic_rotate %5 by %c1_i32 dim 0 : vector<256x128xf32>, i32 -> vector<256x128xf32>
    %7 = vector.shape_cast %6 : vector<256x128xf32> to vector<8x32x128xf32>
    %c0_7 = arith.constant 0 : index
    %c0_8 = arith.constant 0 : index
    %c0_9 = arith.constant 0 : index
    %c0_10 = arith.constant 0 : index
    %8 = vector.load %arg6[%c0_7, %c0_8, %c0_9, %c0_10] : memref<1x8x32x128xf32, #tpu.memory_space<vmem>>, vector<1x8x32x128xf32>
    %9 = vector.shape_cast %8 : vector<1x8x32x128xf32> to vector<8x32x128xf32>
    %10 = vector.shape_cast %7 : vector<8x32x128xf32> to vector<1x8x32x128xf32>
    tpu.vector_store %arg6[%c0_7, %c0_8, %c0_9, %c0_10], %10 {strides = array<i32>} : memref<1x8x32x128xf32, #tpu.memory_space<vmem>>, vector<1x8x32x128xf32>,
    %c0_11 = arith.constant 0 : index
    %c1 = arith.constant 1 : index
    %c0_12 = arith.constant 0 : index
    %c0_13 = arith.constant 0 : index
    %11 = vector.load %arg4[%c0_11, %c1, %c0_12, %c0_13] : memref<3x3x128x128xbf16, #tpu.memory_space<vmem>>, vector<1x1x128x128xbf16>
    %12 = vector.shape_cast %11 : vector<1x1x128x128xbf16> to vector<128x128xbf16>
    %cst_14 = arith.constant dense<0.000000e+00> : vector<256x128xf32>
    %13 = tpu.matmul %2, %12, %cst_14 {dimension_numbers = #tpu.dot_dimension_numbers<[1], [0], [0], [1], [0, 0, 1, 1], [], []>} : vector<256x128xbf16>, vector<128x128xbf16>, vector<256x128xf32> -> vector<256x128xf32>
    %c0_15 = arith.constant 0 : index
    %c0_16 = arith.constant 0 : index
    %c0_17 = arith.constant 0 : index
    %c0_18 = arith.constant 0 : index
    %14 = vector.load %arg6[%c0_15, %c0_16, %c0_17, %c0_18] : memref<1x8x32x128xf32, #tpu.memory_space<vmem>>, vector<1x8x32x128xf32>
    %15 = vector.shape_cast %14 : vector<1x8x32x128xf32> to vector<8x32x128xf32>
    %16 = vector.shape_cast %13 : vector<256x128xf32> to vector<8x32x128xf32>
    %17 = arith.addf %15, %16 : vector<8x32x128xf32>
    %c0_19 = arith.constant 0 : index
    %c0_20 = arith.constant 0 : index
    %c0_21 = arith.constant 0 : index
    %c0_22 = arith.constant 0 : index
    %18 = vector.load %arg6[%c0_19, %c0_20, %c0_21, %c0_22] : memref<1x8x32x128xf32, #tpu.memory_space<vmem>>, vector<1x8x32x128xf32>
    %19 = vector.shape_cast %18 : vector<1x8x32x128xf32> to vector<8x32x128xf32>
    %20 = vector.shape_cast %17 : vector<8x32x128xf32> to vector<1x8x32x128xf32>
    tpu.vector_store %arg6[%c0_19, %c0_20, %c0_21, %c0_22], %20 {strides = array<i32>} : memref<1x8x32x128xf32, #tpu.memory_space<vmem>>, vector<1x8x32x128xf32>,
    %c0_23 = arith.constant 0 : index
    %c2 = arith.constant 2 : index
    %c0_24 = arith.constant 0 : index
    %c0_25 = arith.constant 0 : index
    %21 = vector.load %arg4[%c0_23, %c2, %c0_24, %c0_25] : memref<3x3x128x128xbf16, #tpu.memory_space<vmem>>, vector<1x1x128x128xbf16>
    %22 = vector.shape_cast %21 : vector<1x1x128x128xbf16> to vector<128x128xbf16>
    %cst_26 = arith.constant dense<0.000000e+00> : vector<256x128xf32>
    %23 = tpu.matmul %2, %22, %cst_26 {dimension_numbers = #tpu.dot_dimension_numbers<[1], [0], [0], [1], [0, 0, 1, 1], [], []>} : vector<256x128xbf16>, vector<128x128xbf16>, vector<256x128xf32> -> vector<256x128xf32>
    %c255_i32 = arith.constant 255 : i32
    %24 = tpu.dynamic_rotate %23 by %c255_i32 dim 0 : vector<256x128xf32>, i32 -> vector<256x128xf32>
    %c0_27 = arith.constant 0 : index
    %c0_28 = arith.constant 0 : index
    %c0_29 = arith.constant 0 : index
    %c0_30 = arith.constant 0 : index
    %25 = vector.load %arg6[%c0_27, %c0_28, %c0_29, %c0_30] : memref<1x8x32x128xf32, #tpu.memory_space<vmem>>, vector<1x8x32x128xf32>
    %26 = vector.shape_cast %25 : vector<1x8x32x128xf32> to vector<8x32x128xf32>
    %27 = vector.shape_cast %24 : vector<256x128xf32> to vector<8x32x128xf32>
    %28 = arith.addf %26, %27 : vector<8x32x128xf32>
    %c0_31 = arith.constant 0 : index
    %c0_32 = arith.constant 0 : index
    %c0_33 = arith.constant 0 : index
    %c0_34 = arith.constant 0 : index
    %29 = vector.load %arg6[%c0_31, %c0_32, %c0_33, %c0_34] : memref<1x8x32x128xf32, #tpu.memory_space<vmem>>, vector<1x8x32x128xf32>
    %30 = vector.shape_cast %29 : vector<1x8x32x128xf32> to vector<8x32x128xf32>
    %31 = vector.shape_cast %28 : vector<8x32x128xf32> to vector<1x8x32x128xf32>
    tpu.vector_store %arg6[%c0_31, %c0_32, %c0_33, %c0_34], %31 {strides = array<i32>} : memref<1x8x32x128xf32, #tpu.memory_space<vmem>>, vector<1x8x32x128xf32>,
    %c0_35 = arith.constant 0 : index
    %c1_36 = arith.constant 1 : index
    %c0_37 = arith.constant 0 : index
    %c0_38 = arith.constant 0 : index
    %32 = vector.load %arg2[%c0_35, %c1_36, %c0_37, %c0_38] : memref<1x8x32x128xbf16, #tpu.memory_space<vmem>>, vector<1x7x32x128xbf16>
    %33 = vector.shape_cast %32 : vector<1x7x32x128xbf16> to vector<7x32x128xbf16>
    %34 = vector.shape_cast %33 : vector<7x32x128xbf16> to vector<224x128xbf16>
    %c0_39 = arith.constant 0 : index
    %c0_40 = arith.constant 0 : index
    %c0_41 = arith.constant 0 : index
    %c0_42 = arith.constant 0 : index
    %35 = vector.load %arg3[%c0_39, %c0_40, %c0_41, %c0_42] : memref<1x2x32x128xbf16, #tpu.memory_space<vmem>>, vector<1x1x32x128xbf16>
    %36 = vector.shape_cast %35 : vector<1x1x32x128xbf16> to vector<1x32x128xbf16>
    %37 = vector.shape_cast %36 : vector<1x32x128xbf16> to vector<32x128xbf16>
    %c1_43 = arith.constant 1 : index
    %c0_44 = arith.constant 0 : index
    %c0_45 = arith.constant 0 : index
    %c0_46 = arith.constant 0 : index
    %38 = vector.load %arg4[%c1_43, %c0_44, %c0_45, %c0_46] : memref<3x3x128x128xbf16, #tpu.memory_space<vmem>>, vector<1x1x128x128xbf16>
    %39 = vector.shape_cast %38 : vector<1x1x128x128xbf16> to vector<128x128xbf16>
    %cst_47 = arith.constant dense<0.000000e+00> : vector<224x128xf32>
    %40 = tpu.matmul %34, %39, %cst_47 {dimension_numbers = #tpu.dot_dimension_numbers<[1], [0], [0], [1], [0, 0, 1, 1], [], []>} : vector<224x128xbf16>, vector<128x128xbf16>, vector<224x128xf32> -> vector<224x128xf32>
    %c1_i32_48 = arith.constant 1 : i32
    %41 = tpu.dynamic_rotate %40 by %c1_i32_48 dim 0 : vector<224x128xf32>, i32 -> vector<224x128xf32>
    %c0_49 = arith.constant 0 : index
    %c0_50 = arith.constant 0 : index
    %c0_51 = arith.constant 0 : index
    %c0_52 = arith.constant 0 : index
    %42 = vector.load %arg6[%c0_49, %c0_50, %c0_51, %c0_52] : memref<1x8x32x128xf32, #tpu.memory_space<vmem>>, vector<1x7x32x128xf32>
    %43 = vector.shape_cast %42 : vector<1x7x32x128xf32> to vector<7x32x128xf32>
    %44 = vector.shape_cast %41 : vector<224x128xf32> to vector<7x32x128xf32>
    %45 = arith.addf %43, %44 : vector<7x32x128xf32>
    %c0_53 = arith.constant 0 : index
    %c0_54 = arith.constant 0 : index
    %c0_55 = arith.constant 0 : index
    %c0_56 = arith.constant 0 : index
    %46 = vector.load %arg6[%c0_53, %c0_54, %c0_55, %c0_56] : memref<1x8x32x128xf32, #tpu.memory_space<vmem>>, vector<1x7x32x128xf32>
    %47 = vector.shape_cast %46 : vector<1x7x32x128xf32> to vector<7x32x128xf32>
    %48 = vector.shape_cast %45 : vector<7x32x128xf32> to vector<1x7x32x128xf32>
    tpu.vector_store %arg6[%c0_53, %c0_54, %c0_55, %c0_56], %48 {strides = array<i32>} : memref<1x8x32x128xf32, #tpu.memory_space<vmem>>, vector<1x7x32x128xf32>,
    %c1_57 = arith.constant 1 : index
    %c0_58 = arith.constant 0 : index
    %c0_59 = arith.constant 0 : index
    %c0_60 = arith.constant 0 : index
    %49 = vector.load %arg4[%c1_57, %c0_58, %c0_59, %c0_60] : memref<3x3x128x128xbf16, #tpu.memory_space<vmem>>, vector<1x1x128x128xbf16>
    %50 = vector.shape_cast %49 : vector<1x1x128x128xbf16> to vector<128x128xbf16>
    %cst_61 = arith.constant dense<0.000000e+00> : vector<32x128xf32>
    %51 = tpu.matmul %37, %50, %cst_61 {dimension_numbers = #tpu.dot_dimension_numbers<[1], [0], [0], [1], [0, 0, 1, 1], [], []>} : vector<32x128xbf16>, vector<128x128xbf16>, vector<32x128xf32> -> vector<32x128xf32>
    %c1_i32_62 = arith.constant 1 : i32
    %52 = tpu.dynamic_rotate %51 by %c1_i32_62 dim 0 : vector<32x128xf32>, i32 -> vector<32x128xf32>
    %c0_63 = arith.constant 0 : index
    %c7 = arith.constant 7 : index
    %c0_64 = arith.constant 0 : index
    %c0_65 = arith.constant 0 : index
    %53 = vector.load %arg6[%c0_63, %c7, %c0_64, %c0_65] : memref<1x8x32x128xf32, #tpu.memory_space<vmem>>, vector<1x1x32x128xf32>
    %54 = vector.shape_cast %53 : vector<1x1x32x128xf32> to vector<1x32x128xf32>
    %55 = vector.shape_cast %52 : vector<32x128xf32> to vector<1x32x128xf32>
    %56 = arith.addf %54, %55 : vector<1x32x128xf32>
    %c0_66 = arith.constant 0 : index
    %c7_67 = arith.constant 7 : index
    %c0_68 = arith.constant 0 : index
    %c0_69 = arith.constant 0 : index
    %57 = vector.load %arg6[%c0_66, %c7_67, %c0_68, %c0_69] : memref<1x8x32x128xf32, #tpu.memory_space<vmem>>, vector<1x1x32x128xf32>
    %58 = vector.shape_cast %57 : vector<1x1x32x128xf32> to vector<1x32x128xf32>
    %59 = vector.shape_cast %56 : vector<1x32x128xf32> to vector<1x1x32x128xf32>
    tpu.vector_store %arg6[%c0_66, %c7_67, %c0_68, %c0_69], %59 {strides = array<i32>} : memref<1x8x32x128xf32, #tpu.memory_space<vmem>>, vector<1x1x32x128xf32>,
    %c1_70 = arith.constant 1 : index
    %c1_71 = arith.constant 1 : index
    %c0_72 = arith.constant 0 : index
    %c0_73 = arith.constant 0 : index
    %60 = vector.load %arg4[%c1_70, %c1_71, %c0_72, %c0_73] : memref<3x3x128x128xbf16, #tpu.memory_space<vmem>>, vector<1x1x128x128xbf16>
    %61 = vector.shape_cast %60 : vector<1x1x128x128xbf16> to vector<128x128xbf16>
    %cst_74 = arith.constant dense<0.000000e+00> : vector<224x128xf32>
    %62 = tpu.matmul %34, %61, %cst_74 {dimension_numbers = #tpu.dot_dimension_numbers<[1], [0], [0], [1], [0, 0, 1, 1], [], []>} : vector<224x128xbf16>, vector<128x128xbf16>, vector<224x128xf32> -> vector<224x128xf32>
    %c0_75 = arith.constant 0 : index
    %c0_76 = arith.constant 0 : index
    %c0_77 = arith.constant 0 : index
    %c0_78 = arith.constant 0 : index
    %63 = vector.load %arg6[%c0_75, %c0_76, %c0_77, %c0_78] : memref<1x8x32x128xf32, #tpu.memory_space<vmem>>, vector<1x7x32x128xf32>
    %64 = vector.shape_cast %63 : vector<1x7x32x128xf32> to vector<7x32x128xf32>
    %65 = vector.shape_cast %62 : vector<224x128xf32> to vector<7x32x128xf32>
    %66 = arith.addf %64, %65 : vector<7x32x128xf32>
    %c0_79 = arith.constant 0 : index
    %c0_80 = arith.constant 0 : index
    %c0_81 = arith.constant 0 : index
    %c0_82 = arith.constant 0 : index
    %67 = vector.load %arg6[%c0_79, %c0_80, %c0_81, %c0_82] : memref<1x8x32x128xf32, #tpu.memory_space<vmem>>, vector<1x7x32x128xf32>
    %68 = vector.shape_cast %67 : vector<1x7x32x128xf32> to vector<7x32x128xf32>
    %69 = vector.shape_cast %66 : vector<7x32x128xf32> to vector<1x7x32x128xf32>
    tpu.vector_store %arg6[%c0_79, %c0_80, %c0_81, %c0_82], %69 {strides = array<i32>} : memref<1x8x32x128xf32, #tpu.memory_space<vmem>>, vector<1x7x32x128xf32>,
    %c1_83 = arith.constant 1 : index
    %c1_84 = arith.constant 1 : index
    %c0_85 = arith.constant 0 : index
    %c0_86 = arith.constant 0 : index
    %70 = vector.load %arg4[%c1_83, %c1_84, %c0_85, %c0_86] : memref<3x3x128x128xbf16, #tpu.memory_space<vmem>>, vector<1x1x128x128xbf16>
    %71 = vector.shape_cast %70 : vector<1x1x128x128xbf16> to vector<128x128xbf16>
    %cst_87 = arith.constant dense<0.000000e+00> : vector<32x128xf32>
    %72 = tpu.matmul %37, %71, %cst_87 {dimension_numbers = #tpu.dot_dimension_numbers<[1], [0], [0], [1], [0, 0, 1, 1], [], []>} : vector<32x128xbf16>, vector<128x128xbf16>, vector<32x128xf32> -> vector<32x128xf32>
    %c0_88 = arith.constant 0 : index
    %c7_89 = arith.constant 7 : index
    %c0_90 = arith.constant 0 : index
    %c0_91 = arith.constant 0 : index
    %73 = vector.load %arg6[%c0_88, %c7_89, %c0_90, %c0_91] : memref<1x8x32x128xf32, #tpu.memory_space<vmem>>, vector<1x1x32x128xf32>
    %74 = vector.shape_cast %73 : vector<1x1x32x128xf32> to vector<1x32x128xf32>
    %75 = vector.shape_cast %72 : vector<32x128xf32> to vector<1x32x128xf32>
    %76 = arith.addf %74, %75 : vector<1x32x128xf32>
    %c0_92 = arith.constant 0 : index
    %c7_93 = arith.constant 7 : index
    %c0_94 = arith.constant 0 : index
    %c0_95 = arith.constant 0 : index
    %77 = vector.load %arg6[%c0_92, %c7_93, %c0_94, %c0_95] : memref<1x8x32x128xf32, #tpu.memory_space<vmem>>, vector<1x1x32x128xf32>
    %78 = vector.shape_cast %77 : vector<1x1x32x128xf32> to vector<1x32x128xf32>
    %79 = vector.shape_cast %76 : vector<1x32x128xf32> to vector<1x1x32x128xf32>
    tpu.vector_store %arg6[%c0_92, %c7_93, %c0_94, %c0_95], %79 {strides = array<i32>} : memref<1x8x32x128xf32, #tpu.memory_space<vmem>>, vector<1x1x32x128xf32>,
    %c1_96 = arith.constant 1 : index
    %c2_97 = arith.constant 2 : index
    %c0_98 = arith.constant 0 : index
    %c0_99 = arith.constant 0 : index
    %80 = vector.load %arg4[%c1_96, %c2_97, %c0_98, %c0_99] : memref<3x3x128x128xbf16, #tpu.memory_space<vmem>>, vector<1x1x128x128xbf16>
    %81 = vector.shape_cast %80 : vector<1x1x128x128xbf16> to vector<128x128xbf16>
    %cst_100 = arith.constant dense<0.000000e+00> : vector<224x128xf32>
    %82 = tpu.matmul %34, %81, %cst_100 {dimension_numbers = #tpu.dot_dimension_numbers<[1], [0], [0], [1], [0, 0, 1, 1], [], []>} : vector<224x128xbf16>, vector<128x128xbf16>, vector<224x128xf32> -> vector<224x128xf32>
    %c223_i32 = arith.constant 223 : i32
    %83 = tpu.dynamic_rotate %82 by %c223_i32 dim 0 : vector<224x128xf32>, i32 -> vector<224x128xf32>
    %c0_101 = arith.constant 0 : index
    %c0_102 = arith.constant 0 : index
    %c0_103 = arith.constant 0 : index
    %c0_104 = arith.constant 0 : index
    %84 = vector.load %arg6[%c0_101, %c0_102, %c0_103, %c0_104] : memref<1x8x32x128xf32, #tpu.memory_space<vmem>>, vector<1x7x32x128xf32>
    %85 = vector.shape_cast %84 : vector<1x7x32x128xf32> to vector<7x32x128xf32>
    %86 = vector.shape_cast %83 : vector<224x128xf32> to vector<7x32x128xf32>
    %87 = arith.addf %85, %86 : vector<7x32x128xf32>
    %c0_105 = arith.constant 0 : index
    %c0_106 = arith.constant 0 : index
    %c0_107 = arith.constant 0 : index
    %c0_108 = arith.constant 0 : index
    %88 = vector.load %arg6[%c0_105, %c0_106, %c0_107, %c0_108] : memref<1x8x32x128xf32, #tpu.memory_space<vmem>>, vector<1x7x32x128xf32>
    %89 = vector.shape_cast %88 : vector<1x7x32x128xf32> to vector<7x32x128xf32>
    %90 = vector.shape_cast %87 : vector<7x32x128xf32> to vector<1x7x32x128xf32>
    tpu.vector_store %arg6[%c0_105, %c0_106, %c0_107, %c0_108], %90 {strides = array<i32>} : memref<1x8x32x128xf32, #tpu.memory_space<vmem>>, vector<1x7x32x128xf32>,
    %c1_109 = arith.constant 1 : index
    %c2_110 = arith.constant 2 : index
    %c0_111 = arith.constant 0 : index
    %c0_112 = arith.constant 0 : index
    %91 = vector.load %arg4[%c1_109, %c2_110, %c0_111, %c0_112] : memref<3x3x128x128xbf16, #tpu.memory_space<vmem>>, vector<1x1x128x128xbf16>
    %92 = vector.shape_cast %91 : vector<1x1x128x128xbf16> to vector<128x128xbf16>
    %cst_113 = arith.constant dense<0.000000e+00> : vector<32x128xf32>
    %93 = tpu.matmul %37, %92, %cst_113 {dimension_numbers = #tpu.dot_dimension_numbers<[1], [0], [0], [1], [0, 0, 1, 1], [], []>} : vector<32x128xbf16>, vector<128x128xbf16>, vector<32x128xf32> -> vector<32x128xf32>
    %c31_i32 = arith.constant 31 : i32
    %94 = tpu.dynamic_rotate %93 by %c31_i32 dim 0 : vector<32x128xf32>, i32 -> vector<32x128xf32>
    %c0_114 = arith.constant 0 : index
    %c7_115 = arith.constant 7 : index
    %c0_116 = arith.constant 0 : index
    %c0_117 = arith.constant 0 : index
    %95 = vector.load %arg6[%c0_114, %c7_115, %c0_116, %c0_117] : memref<1x8x32x128xf32, #tpu.memory_space<vmem>>, vector<1x1x32x128xf32>
    %96 = vector.shape_cast %95 : vector<1x1x32x128xf32> to vector<1x32x128xf32>
    %97 = vector.shape_cast %94 : vector<32x128xf32> to vector<1x32x128xf32>
    %98 = arith.addf %96, %97 : vector<1x32x128xf32>
    %c0_118 = arith.constant 0 : index
    %c7_119 = arith.constant 7 : index
    %c0_120 = arith.constant 0 : index
    %c0_121 = arith.constant 0 : index
    %99 = vector.load %arg6[%c0_118, %c7_119, %c0_120, %c0_121] : memref<1x8x32x128xf32, #tpu.memory_space<vmem>>, vector<1x1x32x128xf32>
    %100 = vector.shape_cast %99 : vector<1x1x32x128xf32> to vector<1x32x128xf32>
    %101 = vector.shape_cast %98 : vector<1x32x128xf32> to vector<1x1x32x128xf32>
    tpu.vector_store %arg6[%c0_118, %c7_119, %c0_120, %c0_121], %101 {strides = array<i32>} : memref<1x8x32x128xf32, #tpu.memory_space<vmem>>, vector<1x1x32x128xf32>,
    %c0_122 = arith.constant 0 : index
    %c2_123 = arith.constant 2 : index
    %c0_124 = arith.constant 0 : index
    %c0_125 = arith.constant 0 : index
    %102 = vector.load %arg2[%c0_122, %c2_123, %c0_124, %c0_125] : memref<1x8x32x128xbf16, #tpu.memory_space<vmem>>, vector<1x6x32x128xbf16>
    %103 = vector.shape_cast %102 : vector<1x6x32x128xbf16> to vector<6x32x128xbf16>
    %104 = vector.shape_cast %103 : vector<6x32x128xbf16> to vector<192x128xbf16>
    %c0_126 = arith.constant 0 : index
    %c0_127 = arith.constant 0 : index
    %c0_128 = arith.constant 0 : index
    %c0_129 = arith.constant 0 : index
    %105 = vector.load %arg3[%c0_126, %c0_127, %c0_128, %c0_129] : memref<1x2x32x128xbf16, #tpu.memory_space<vmem>>, vector<1x2x32x128xbf16>
    %106 = vector.shape_cast %105 : vector<1x2x32x128xbf16> to vector<2x32x128xbf16>
    %107 = vector.shape_cast %106 : vector<2x32x128xbf16> to vector<64x128xbf16>
    %c2_130 = arith.constant 2 : index
    %c0_131 = arith.constant 0 : index
    %c0_132 = arith.constant 0 : index
    %c0_133 = arith.constant 0 : index
    %108 = vector.load %arg4[%c2_130, %c0_131, %c0_132, %c0_133] : memref<3x3x128x128xbf16, #tpu.memory_space<vmem>>, vector<1x1x128x128xbf16>
    %109 = vector.shape_cast %108 : vector<1x1x128x128xbf16> to vector<128x128xbf16>
    %cst_134 = arith.constant dense<0.000000e+00> : vector<192x128xf32>
    %110 = tpu.matmul %104, %109, %cst_134 {dimension_numbers = #tpu.dot_dimension_numbers<[1], [0], [0], [1], [0, 0, 1, 1], [], []>} : vector<192x128xbf16>, vector<128x128xbf16>, vector<192x128xf32> -> vector<192x128xf32>
    %c1_i32_135 = arith.constant 1 : i32
    %111 = tpu.dynamic_rotate %110 by %c1_i32_135 dim 0 : vector<192x128xf32>, i32 -> vector<192x128xf32>
    %c0_136 = arith.constant 0 : index
    %c0_137 = arith.constant 0 : index
    %c0_138 = arith.constant 0 : index
    %c0_139 = arith.constant 0 : index
    %112 = vector.load %arg6[%c0_136, %c0_137, %c0_138, %c0_139] : memref<1x8x32x128xf32, #tpu.memory_space<vmem>>, vector<1x6x32x128xf32>
    %113 = vector.shape_cast %112 : vector<1x6x32x128xf32> to vector<6x32x128xf32>
    %114 = vector.shape_cast %111 : vector<192x128xf32> to vector<6x32x128xf32>
    %115 = arith.addf %113, %114 : vector<6x32x128xf32>
    %c0_140 = arith.constant 0 : index
    %c0_141 = arith.constant 0 : index
    %c0_142 = arith.constant 0 : index
    %c0_143 = arith.constant 0 : index
    %116 = vector.load %arg6[%c0_140, %c0_141, %c0_142, %c0_143] : memref<1x8x32x128xf32, #tpu.memory_space<vmem>>, vector<1x6x32x128xf32>
    %117 = vector.shape_cast %116 : vector<1x6x32x128xf32> to vector<6x32x128xf32>
    %118 = vector.shape_cast %115 : vector<6x32x128xf32> to vector<1x6x32x128xf32>
    tpu.vector_store %arg6[%c0_140, %c0_141, %c0_142, %c0_143], %118 {strides = array<i32>} : memref<1x8x32x128xf32, #tpu.memory_space<vmem>>, vector<1x6x32x128xf32>,
    %c2_144 = arith.constant 2 : index
    %c0_145 = arith.constant 0 : index
    %c0_146 = arith.constant 0 : index
    %c0_147 = arith.constant 0 : index
    %119 = vector.load %arg4[%c2_144, %c0_145, %c0_146, %c0_147] : memref<3x3x128x128xbf16, #tpu.memory_space<vmem>>, vector<1x1x128x128xbf16>
    %120 = vector.shape_cast %119 : vector<1x1x128x128xbf16> to vector<128x128xbf16>
    %cst_148 = arith.constant dense<0.000000e+00> : vector<64x128xf32>
    %121 = tpu.matmul %107, %120, %cst_148 {dimension_numbers = #tpu.dot_dimension_numbers<[1], [0], [0], [1], [0, 0, 1, 1], [], []>} : vector<64x128xbf16>, vector<128x128xbf16>, vector<64x128xf32> -> vector<64x128xf32>
    %c1_i32_149 = arith.constant 1 : i32
    %122 = tpu.dynamic_rotate %121 by %c1_i32_149 dim 0 : vector<64x128xf32>, i32 -> vector<64x128xf32>
    %c0_150 = arith.constant 0 : index
    %c6 = arith.constant 6 : index
    %c0_151 = arith.constant 0 : index
    %c0_152 = arith.constant 0 : index
    %123 = vector.load %arg6[%c0_150, %c6, %c0_151, %c0_152] : memref<1x8x32x128xf32, #tpu.memory_space<vmem>>, vector<1x2x32x128xf32>
    %124 = vector.shape_cast %123 : vector<1x2x32x128xf32> to vector<2x32x128xf32>
    %125 = vector.shape_cast %122 : vector<64x128xf32> to vector<2x32x128xf32>
    %126 = arith.addf %124, %125 : vector<2x32x128xf32>
    %c0_153 = arith.constant 0 : index
    %c6_154 = arith.constant 6 : index
    %c0_155 = arith.constant 0 : index
    %c0_156 = arith.constant 0 : index
    %127 = vector.load %arg6[%c0_153, %c6_154, %c0_155, %c0_156] : memref<1x8x32x128xf32, #tpu.memory_space<vmem>>, vector<1x2x32x128xf32>
    %128 = vector.shape_cast %127 : vector<1x2x32x128xf32> to vector<2x32x128xf32>
    %129 = vector.shape_cast %126 : vector<2x32x128xf32> to vector<1x2x32x128xf32>
    tpu.vector_store %arg6[%c0_153, %c6_154, %c0_155, %c0_156], %129 {strides = array<i32>} : memref<1x8x32x128xf32, #tpu.memory_space<vmem>>, vector<1x2x32x128xf32>,
    %c2_157 = arith.constant 2 : index
    %c1_158 = arith.constant 1 : index
    %c0_159 = arith.constant 0 : index
    %c0_160 = arith.constant 0 : index
    %130 = vector.load %arg4[%c2_157, %c1_158, %c0_159, %c0_160] : memref<3x3x128x128xbf16, #tpu.memory_space<vmem>>, vector<1x1x128x128xbf16>
    %131 = vector.shape_cast %130 : vector<1x1x128x128xbf16> to vector<128x128xbf16>
    %cst_161 = arith.constant dense<0.000000e+00> : vector<192x128xf32>
    %132 = tpu.matmul %104, %131, %cst_161 {dimension_numbers = #tpu.dot_dimension_numbers<[1], [0], [0], [1], [0, 0, 1, 1], [], []>} : vector<192x128xbf16>, vector<128x128xbf16>, vector<192x128xf32> -> vector<192x128xf32>
    %c0_162 = arith.constant 0 : index
    %c0_163 = arith.constant 0 : index
    %c0_164 = arith.constant 0 : index
    %c0_165 = arith.constant 0 : index
    %133 = vector.load %arg6[%c0_162, %c0_163, %c0_164, %c0_165] : memref<1x8x32x128xf32, #tpu.memory_space<vmem>>, vector<1x6x32x128xf32>
    %134 = vector.shape_cast %133 : vector<1x6x32x128xf32> to vector<6x32x128xf32>
    %135 = vector.shape_cast %132 : vector<192x128xf32> to vector<6x32x128xf32>
    %136 = arith.addf %134, %135 : vector<6x32x128xf32>
    %c0_166 = arith.constant 0 : index
    %c0_167 = arith.constant 0 : index
    %c0_168 = arith.constant 0 : index
    %c0_169 = arith.constant 0 : index
    %137 = vector.load %arg6[%c0_166, %c0_167, %c0_168, %c0_169] : memref<1x8x32x128xf32, #tpu.memory_space<vmem>>, vector<1x6x32x128xf32>
    %138 = vector.shape_cast %137 : vector<1x6x32x128xf32> to vector<6x32x128xf32>
    %139 = vector.shape_cast %136 : vector<6x32x128xf32> to vector<1x6x32x128xf32>
    tpu.vector_store %arg6[%c0_166, %c0_167, %c0_168, %c0_169], %139 {strides = array<i32>} : memref<1x8x32x128xf32, #tpu.memory_space<vmem>>, vector<1x6x32x128xf32>,
    %c2_170 = arith.constant 2 : index
    %c1_171 = arith.constant 1 : index
    %c0_172 = arith.constant 0 : index
    %c0_173 = arith.constant 0 : index
    %140 = vector.load %arg4[%c2_170, %c1_171, %c0_172, %c0_173] : memref<3x3x128x128xbf16, #tpu.memory_space<vmem>>, vector<1x1x128x128xbf16>
    %141 = vector.shape_cast %140 : vector<1x1x128x128xbf16> to vector<128x128xbf16>
    %cst_174 = arith.constant dense<0.000000e+00> : vector<64x128xf32>
    %142 = tpu.matmul %107, %141, %cst_174 {dimension_numbers = #tpu.dot_dimension_numbers<[1], [0], [0], [1], [0, 0, 1, 1], [], []>} : vector<64x128xbf16>, vector<128x128xbf16>, vector<64x128xf32> -> vector<64x128xf32>
    %c0_175 = arith.constant 0 : index
    %c6_176 = arith.constant 6 : index
    %c0_177 = arith.constant 0 : index
    %c0_178 = arith.constant 0 : index
    %143 = vector.load %arg6[%c0_175, %c6_176, %c0_177, %c0_178] : memref<1x8x32x128xf32, #tpu.memory_space<vmem>>, vector<1x2x32x128xf32>
    %144 = vector.shape_cast %143 : vector<1x2x32x128xf32> to vector<2x32x128xf32>
    %145 = vector.shape_cast %142 : vector<64x128xf32> to vector<2x32x128xf32>
    %146 = arith.addf %144, %145 : vector<2x32x128xf32>
    %c0_179 = arith.constant 0 : index
    %c6_180 = arith.constant 6 : index
    %c0_181 = arith.constant 0 : index
    %c0_182 = arith.constant 0 : index
    %147 = vector.load %arg6[%c0_179, %c6_180, %c0_181, %c0_182] : memref<1x8x32x128xf32, #tpu.memory_space<vmem>>, vector<1x2x32x128xf32>
    %148 = vector.shape_cast %147 : vector<1x2x32x128xf32> to vector<2x32x128xf32>
    %149 = vector.shape_cast %146 : vector<2x32x128xf32> to vector<1x2x32x128xf32>
    tpu.vector_store %arg6[%c0_179, %c6_180, %c0_181, %c0_182], %149 {strides = array<i32>} : memref<1x8x32x128xf32, #tpu.memory_space<vmem>>, vector<1x2x32x128xf32>,
    %c2_183 = arith.constant 2 : index
    %c2_184 = arith.constant 2 : index
    %c0_185 = arith.constant 0 : index
    %c0_186 = arith.constant 0 : index
    %150 = vector.load %arg4[%c2_183, %c2_184, %c0_185, %c0_186] : memref<3x3x128x128xbf16, #tpu.memory_space<vmem>>, vector<1x1x128x128xbf16>
    %151 = vector.shape_cast %150 : vector<1x1x128x128xbf16> to vector<128x128xbf16>
    %cst_187 = arith.constant dense<0.000000e+00> : vector<192x128xf32>
    %152 = tpu.matmul %104, %151, %cst_187 {dimension_numbers = #tpu.dot_dimension_numbers<[1], [0], [0], [1], [0, 0, 1, 1], [], []>} : vector<192x128xbf16>, vector<128x128xbf16>, vector<192x128xf32> -> vector<192x128xf32>
    %c191_i32 = arith.constant 191 : i32
    %153 = tpu.dynamic_rotate %152 by %c191_i32 dim 0 : vector<192x128xf32>, i32 -> vector<192x128xf32>
    %c0_188 = arith.constant 0 : index
    %c0_189 = arith.constant 0 : index
    %c0_190 = arith.constant 0 : index
    %c0_191 = arith.constant 0 : index
    %154 = vector.load %arg6[%c0_188, %c0_189, %c0_190, %c0_191] : memref<1x8x32x128xf32, #tpu.memory_space<vmem>>, vector<1x6x32x128xf32>
    %155 = vector.shape_cast %154 : vector<1x6x32x128xf32> to vector<6x32x128xf32>
    %156 = vector.shape_cast %153 : vector<192x128xf32> to vector<6x32x128xf32>
    %157 = arith.addf %155, %156 : vector<6x32x128xf32>
    %c0_192 = arith.constant 0 : index
    %c0_193 = arith.constant 0 : index
    %c0_194 = arith.constant 0 : index
    %c0_195 = arith.constant 0 : index
    %158 = vector.load %arg6[%c0_192, %c0_193, %c0_194, %c0_195] : memref<1x8x32x128xf32, #tpu.memory_space<vmem>>, vector<1x6x32x128xf32>
    %159 = vector.shape_cast %158 : vector<1x6x32x128xf32> to vector<6x32x128xf32>
    %160 = vector.shape_cast %157 : vector<6x32x128xf32> to vector<1x6x32x128xf32>
    tpu.vector_store %arg6[%c0_192, %c0_193, %c0_194, %c0_195], %160 {strides = array<i32>} : memref<1x8x32x128xf32, #tpu.memory_space<vmem>>, vector<1x6x32x128xf32>,
    %c2_196 = arith.constant 2 : index
    %c2_197 = arith.constant 2 : index
    %c0_198 = arith.constant 0 : index
    %c0_199 = arith.constant 0 : index
    %161 = vector.load %arg4[%c2_196, %c2_197, %c0_198, %c0_199] : memref<3x3x128x128xbf16, #tpu.memory_space<vmem>>, vector<1x1x128x128xbf16>
    %162 = vector.shape_cast %161 : vector<1x1x128x128xbf16> to vector<128x128xbf16>
    %cst_200 = arith.constant dense<0.000000e+00> : vector<64x128xf32>
    %163 = tpu.matmul %107, %162, %cst_200 {dimension_numbers = #tpu.dot_dimension_numbers<[1], [0], [0], [1], [0, 0, 1, 1], [], []>} : vector<64x128xbf16>, vector<128x128xbf16>, vector<64x128xf32> -> vector<64x128xf32>
    %c63_i32 = arith.constant 63 : i32
    %164 = tpu.dynamic_rotate %163 by %c63_i32 dim 0 : vector<64x128xf32>, i32 -> vector<64x128xf32>
    %c0_201 = arith.constant 0 : index
    %c6_202 = arith.constant 6 : index
    %c0_203 = arith.constant 0 : index
    %c0_204 = arith.constant 0 : index
    %165 = vector.load %arg6[%c0_201, %c6_202, %c0_203, %c0_204] : memref<1x8x32x128xf32, #tpu.memory_space<vmem>>, vector<1x2x32x128xf32>
    %166 = vector.shape_cast %165 : vector<1x2x32x128xf32> to vector<2x32x128xf32>
    %167 = vector.shape_cast %164 : vector<64x128xf32> to vector<2x32x128xf32>
    %168 = arith.addf %166, %167 : vector<2x32x128xf32>
    %c0_205 = arith.constant 0 : index
    %c6_206 = arith.constant 6 : index
    %c0_207 = arith.constant 0 : index
    %c0_208 = arith.constant 0 : index
    %169 = vector.load %arg6[%c0_205, %c6_206, %c0_207, %c0_208] : memref<1x8x32x128xf32, #tpu.memory_space<vmem>>, vector<1x2x32x128xf32>
    %170 = vector.shape_cast %169 : vector<1x2x32x128xf32> to vector<2x32x128xf32>
    %171 = vector.shape_cast %168 : vector<2x32x128xf32> to vector<1x2x32x128xf32>
    tpu.vector_store %arg6[%c0_205, %c6_206, %c0_207, %c0_208], %171 {strides = array<i32>} : memref<1x8x32x128xf32, #tpu.memory_space<vmem>>, vector<1x2x32x128xf32>,
    %c0_209 = arith.constant 0 : index
    %c0_210 = arith.constant 0 : index
    %c0_211 = arith.constant 0 : index
    %c0_212 = arith.constant 0 : index
    %172 = vector.load %arg6[%c0_209, %c0_210, %c0_211, %c0_212] : memref<1x8x32x128xf32, #tpu.memory_space<vmem>>, vector<1x8x32x128xf32>
    %c0_213 = arith.constant 0 : index
    %c0_214 = arith.constant 0 : index
    %173 = vector.load %arg5[%c0_213, %c0_214] : memref<1x128xf32, #tpu.memory_space<vmem>>, vector<1x128xf32>
    %174 = vector.shape_cast %173 : vector<1x128xf32> to vector<1x1x1x128xf32>
    %175 = vector.broadcast %174 : vector<1x1x1x128xf32> to vector<1x8x32x128xf32>
    %176 = arith.addf %172, %175 : vector<1x8x32x128xf32>
    %cst_215 = arith.constant 0.000000e+00 : f32
    %177 = vector.broadcast %cst_215 : f32 to vector<1x8x32x128xf32>
    %178 = arith.maximumf %176, %177 : vector<1x8x32x128xf32>
    %c0_216 = arith.constant 0 : index
    %c0_217 = arith.constant 0 : index
    %c0_218 = arith.constant 0 : index
    %c0_219 = arith.constant 0 : index
    %179 = vector.load %arg6[%c0_216, %c0_217, %c0_218, %c0_219] : memref<1x8x32x128xf32, #tpu.memory_space<vmem>>, vector<1x8x32x128xf32>
    tpu.vector_store %arg6[%c0_216, %c0_217, %c0_218, %c0_219], %178 {strides = array<i32>} : memref<1x8x32x128xf32, #tpu.memory_space<vmem>>, vector<1x8x32x128xf32>,
    return
  }
  func.func @transform_0(%arg0: i32, %arg1: i32) -> (i32, i32, i32, i32) {
    %c0_i32 = arith.constant 0 : i32
    %c0_i32_0 = arith.constant 0 : i32
    %c0_i32_1 = arith.constant 0 : i32
    return %arg0, %arg1, %c0_i32, %c0_i32_0 : i32, i32, i32, i32
  }
  func.func @transform_1(%arg0: i32, %arg1: i32) -> (i32, i32, i32, i32) {
    %c1_i32 = arith.constant 1 : i32
    %0 = arith.addi %arg1, %c1_i32 : i32
    %c4_i32 = arith.constant 4 : i32
    %1 = arith.muli %0, %c4_i32 : i32
    %c0_i32 = arith.constant 0 : i32
    %c0_i32_0 = arith.constant 0 : i32
    %c0_i32_1 = arith.constant 0 : i32
    return %arg0, %1, %c0_i32, %c0_i32_0 : i32, i32, i32, i32
  }
  func.func @transform_2(%arg0: i32, %arg1: i32) -> (i32, i32, i32, i32) {
    %c0_i32 = arith.constant 0 : i32
    %c0_i32_0 = arith.constant 0 : i32
    %c0_i32_1 = arith.constant 0 : i32
    %c0_i32_2 = arith.constant 0 : i32
    %c0_i32_3 = arith.constant 0 : i32
    return %c0_i32, %c0_i32_0, %c0_i32_1, %c0_i32_2 : i32, i32, i32, i32
  }
  func.func @transform_3(%arg0: i32, %arg1: i32) -> (i32, i32) {
    %c0_i32 = arith.constant 0 : i32
    %c0_i32_0 = arith.constant 0 : i32
    %c0_i32_1 = arith.constant 0 : i32
    return %c0_i32, %c0_i32_0 : i32, i32
  }
  func.func @transform_4(%arg0: i32, %arg1: i32) -> (i32, i32, i32, i32) {
    %c0_i32 = arith.constant 0 : i32
    %c0_i32_0 = arith.constant 0 : i32
    %c0_i32_1 = arith.constant 0 : i32
    return %arg0, %arg1, %c0_i32, %c0_i32_0 : i32, i32, i32, i32
  }
}

</mosaic_0001>

<bundles_post_ra>
// kernel: tpu_custom_call.1
= control target key start
LH: loop header
LB: loop body
LE: loop exit
PB: predicated region body
PF: predicated region fallthrough
CT: control target
= control target key end

     0   :  { %s7126_s0 = inlined_call_operand.hbm [shape: bf16[2,24,32,128], index: 0, kind: input, shape index: {}]   ;;  %s7127_s1 = inlined_call_operand.hbm [shape: bf16[2,24,32,128], index: 1, kind: input, shape index: {}]   ;;  %s7128_s2 = inlined_call_operand.hbm [shape: bf16[3,3,128,128], index: 2, kind: input, shape index: {}]   ;;  %s7129_s3 = inlined_call_operand.vmem [shape: f32[1,128], index: 3, kind: input, shape index: {}]   ;;  %s7130_s4 = inlined_call_operand.hbm [shape: f32[2,16,32,128], index: 4, kind: output, shape index: {}]  }
   0x1   :  { %7157 = sst [smem:[#allocation67_spill]] %s7128_s2 }
   0x2   :  { %7158 = sst [smem:[#allocation68_spill]] %s7130_s4 }
   0x3   :  { %9 = vsyncpa [#allocation3], 0 }
   0x4   :  { %11 = vsyncpa [#allocation3 + $0x1], 0 }
   0x5   :  { %12 = vsyncpa [#allocation6], 0 }
   0x6   :  { %14 = vsyncpa [#allocation6 + $0x1], 0 }
   0x7   :  { %15 = vsyncpa [#allocation4], 0 }
   0x8   :  { %17 = vsyncpa [#allocation4 + $0x1], 0  ;;  %s5394_s15 = smov 0   ;;  %s5396_s16 = smov 0  }
   0x9   :  { %s5398_s17 = smov 0   ;;  %s5400_s18 = smov 0  }
   0xa   :  { %s5402_s19 = smov 0   ;;  %s5404_s20 = smov 0  }
   0xb   :  { %s5406_s21 = smov 0   ;;  %s5408_s22 = smov 0  }
   0xc   :  { %s5410_s23 = smov 0   ;;  %s5412_s24 = smov 0  }
   0xd   :  { %s5414_s25 = smov 0  }
   0xe LB: > { %7159 = sst [smem:[#allocation13_spill]] %s5334_s18  ;;  %s5448_s26 = sadd.s32 4294967295, %s5362_s25   ;;  %s5362_s25 = sphi %s5414_s25, %s23_s25   ;;  %s5358_s24 = sphi %s5412_s24, %s7298_s24   ;;  %s5354_s23 = sphi %s5410_s23, %s7297_s23   ;;  %s5350_s22 = sphi %s5408_s22, %s7296_s22   ;;  %s5346_s21 = sphi %s5406_s21, %s7295_s21   ;;  %s5342_s20 = sphi %s5404_s20, %s7294_s20   ;;  %s5338_s19 = sphi %s5402_s19, %s7303_s19   ;;  %s5334_s18 = sphi %s5400_s18, %s7302_s18   ;;  %s5330_s17 = sphi %s5398_s17, %s7301_s17   ;;  %s5326_s16 = sphi %s5396_s16, %s7300_s16   ;;  %s5322_s15 = sphi %s5394_s15, %s7299_s15  }
   0xf   : > { %7160 = sst [smem:[#allocation14_spill]] %s5342_s20  ;;  %p89_p0 = scmp.ne.s32.totalorder %s5326_s16, %s5322_s15 }
  0x10   : > { %7161 = sst [smem:[#allocation15_spill]] %s5350_s22  ;;  %p7136_p1 = scmp.eq.s32.totalorder %s5448_s26, 0 }
  0x11   : > { %7162 = sst [smem:[#allocation16_spill]] %s5354_s23  ;;  %p157_p2 = scmp.eq.s32.totalorder %s5448_s26, 3 }
  0x12   : > { %7163 = sst [smem:[#allocation17_spill]] %s5358_s24  ;;  %p3991_p3 = scmp.ge.s32.totalorder %s5362_s25, 1 }
  0x13   : > { %p170_p4 = scmp.lt.s32.totalorder %s5362_s25, 5  ;;  %p5457_p5 = por %p89_p0, %p7136_p1 }
  0x14   : > { %s7166_s2 = sld [smem:[#allocation67_spill]]  ;;  %s5364_s6 = smov [#allocation7]  }
  0x15   : > { %p5461_p6 = pnand %p3991_p3, %p170_p4  ;;  %s183_s7 = sshll.u32 %s5364_s6, 4  ;;  %s184_s7 = int_to_ptr.vmem [resolvable:$true] %s183_s7 }
  0x16   : > { %s7131_s8 = smov 64   ;;  %s7133_s9 = smov 4  }
  0x17   : > { %p5010_p7 = pneg %p5461_p6  ;;  %s3988_s10 = sadd.s32 4294967294, %s5362_s25  }
  0x18   : > { %s32_s11 = sadd.s32 1, %s5354_s23  ;;  %s35_s12 = sadd.s32 1, %s5358_s24 }
  0x19   : > { %p5011_p8 = pnand %p5010_p7, %p7136_p1  ;;  %p33_p9 = scmp.ge.s32.totalorder %s32_s11, 2 }
  0x1a   : > { %s181_s5 = sshll.u32 %s7166_s2, 4  ;;  %s44_s13 = sadd.s32 1, %s5342_s20  ;;  %s182_s5 = int_to_ptr.hbm [resolvable:$true] %s181_s5 }
  0x1b   : > { %5013 = dma.hbm_to_vmem [thread:$0]  (!%p5011_p8), %s182_s5, 9216, %s184_s7, [#allocation6], %s7131_s8, %s7131_s8, %s7133_s9  }
  0x1c   : > { %p51_p10 = scmp.ne.s32.totalorder %s5342_s20, %s5338_s19  ;;  %s7305_s11 = smov (%p33_p9, %s32_s11), 0 }
  0x1d   : > { %7167 = sst [smem:[#allocation18_spill]] %s7305_s11  ;;  %s7307_s12 = smov (!%p33_p9, %s35_s12), %s5358_s24 }
  0x1e   : > { %s40_s14 = ssub.s32 %s5354_s23, %s7305_s11  ;;  %p52_p11 = scmp.eq.s32.totalorder %s5362_s25, 0 }
  0x1f   : > { %p37_p12 = scmp.ge.s32.totalorder %s7307_s12, 2  ;;  %p57_p13 = scmp.ne.s32.totalorder %s5338_s19, %s5334_s18 }
  0x20   : > { %p5494_p0 = por %p52_p11, %p51_p10  ;;  %s4809_s29 = sshll.u32 %s5354_s23, 2 }
  0x21   : > { %s7309_s12 = smov (%p37_p12, %s7307_s12), 0  ;;  %p5506_p3 = por %p7136_p1, %p57_p13 }
  0x22   : > { %7169 = sst [smem:[#allocation19_spill]] %s7309_s12  ;;  %s4810_s5 = sadd.s32 4, %s4809_s29 }
  0x23   : > { %s39_s6 = ssub.s32 %s5358_s24, %s7309_s12  ;;  %s4811_s7 = sshll.u32 %s7305_s11, 2 }
  0x24   : > { %s41_s8 = sor.u32 %s40_s14, %s39_s6  ;;  %s4812_s9 = sadd.s32 4, %s4811_s7 }
  0x25   : > { %p42_p4 = scmp.eq.s32.totalorder %s41_s8, 0  ;;  %s72_s2 = ssub.s32 %s4810_s5, %s4812_s9 }
  0x26   : > { %s5513_s4 = sor.u32 %s72_s2, %s39_s6  ;;  %p5520_p7 = por %p157_p2, %p51_p10 }
  0x27   : > { %s5525_s29 = scalar_select %p42_p4, %s5342_s20, %s44_s13  }
  0x28   : > { %s7171_s22 = scalar_select %p5520_p7, 1, 0 }
  0x29   : > { %7173 = sst [smem:[#allocation21_spill]] %s5525_s29  ;;  %p74_p8 = scmp.eq.s32.totalorder %s5513_s4, 0 }
  0x2a   : > { %7172 = sst [smem:[#allocation20_spill]] %s7171_s22  ;;  %p163_p9 = scmp.eq.s32.totalorder %s3988_s10, 3 }
  0x2b   : > { %p5026_p12 = scmp.lt.s32.totalorder %s5362_s25, 4  ;;  %s200_s14 = sand.u32 1, %s5342_s20  }
  0x2c   : > { %p5533_p1 = por %p163_p9, %p57_p13  ;;  %s3994_s2 = sshll.u32 %s200_s14, 7 }
  0x2d   : > { %s4813_s8 = sshll.u32 %s5354_s23, 5  ;;  %s4999_s9 = smul.u32 96, %s5358_s24 }
  0x2e   : > { %s7174_s7 = scalar_select %p5533_p1, 1, 0 }
  0x2f   : > { %s204_s5 = scalar_lea.vmem [#allocation2], %s3994_s2  ;;  %p5015_p2 = pnand %p5026_p12, %p5494_p0 }
  0x30   : > { %7175 = sst [smem:[#allocation22_spill]] %s7174_s7  ;;  %s215_s6 = sshll.u32 %s204_s5, 4  ;;  %s216_s6 = int_to_ptr.vmem [resolvable:$true] %s215_s6 }
  0x31   : > { %s210_s10 = sadd.s32 %s4999_s9, %s4813_s8  ;;  %s201_s7 = scalar_lea.sflag [#allocation3], %s200_s14 }
  0x32   : > { %s3997_s13 = sshll.u32 %s210_s10, 2  ;;  %s7176_s18 = smov 4  }
  0x33   : > { %s212_s23 = scalar_lea.hbm %s7126_s0, %s3997_s13  ;;  %s3906_s2 = scalar_lea.hbm %s7127_s1, %s3997_s13 }
  0x34   : > { %s213_s5 = sshll.u32 %s212_s23, 4  ;;  %s3907_s15 = scalar_lea.hbm %s3906_s2, 128  ;;  %s214_s5 = int_to_ptr.hbm [resolvable:$true] %s213_s5 }
  0x35   : > { %s240_s20 = sshll.u32 %s3907_s15, 4  ;;  %s7177_s22 = smov 64   ;;  %s241_s20 = int_to_ptr.hbm [resolvable:$true] %s240_s20 }
  0x36   : > { %5017 = dma.hbm_to_vmem [thread:$0]  (!%p5015_p2), %s214_s5, 2048, %s216_s6, %s201_s7, %s7177_s22, %s7177_s22, %s7176_s18  }
  0x37   : > { %s225_s8 = sand.u32 1, %s5362_s25   ;;  %s76_s9 = sadd.s32 1, %s5330_s17 }
  0x38   : > { %p83_p10 = scmp.ne.s32.totalorder %s5330_s17, %s5326_s16  ;;  %s227_s24 = sand.u32 1, %s5330_s17  }
  0x39   : > { %s5559_s11 = scalar_select %p74_p8, %s5330_s17, %s76_s9  }
  0x3a   : > { %p85_p13 = por %p83_p10, %p52_p11  ;;  %s3998_s12 = sshll.u32 %s227_s24, 5 }
  0x3b   : > { %s229_s23 = scalar_lea.vmem [#allocation5], %s3998_s12  ;;  %s226_s14 = scalar_lea.sflag [#allocation6], %s225_s8 }
  0x3c   : > { %p5018_p0 = pnand %p5026_p12, %p85_p13  ;;  %s242_s29 = sshll.u32 %s229_s23, 4  ;;  %s243_s29 = int_to_ptr.vmem [resolvable:$true] %s242_s29 }
  0x3d   : > { %254 = sbr.rel (%p5461_p6) target bundleno = 825 (0x339), region = 36 }
  0x3e   : > { %5020 = dma.hbm_to_vmem [thread:$0]  (!%p5018_p0), %s241_s20, 512, %s243_s29, %s226_s14, %s7177_s22, %s7177_s22, %s7176_s18  }
  0x42   : > { %s5572_s4 = sand.u32 1, %s5338_s19  }
  0x43   : > { %s4002_s7 = sshll.u32 %s5572_s4, 7  ;;  %s257_s6 = scalar_lea.sflag [#allocation3], %s5572_s4 }
  0x44   : > { %s5576_s10 = scalar_lea.vmem [#allocation2], %s4002_s7 }
  0x45   : > { %5305 = dma.done.wait (%p5506_p3), %s257_s6, 2048  }
  0x46   : > { %5307 = vsyncadd (%p5506_p3), %s257_s6, 4294965248  ;;  %s266_s18 = sand.u32 1, %s5448_s26   ;;  %s268_s20 = sand.u32 1, %s5326_s16  }
  0x47   : > { %s4003_s22 = sshll.u32 %s268_s20, 5  ;;  %s267_s28 = scalar_lea.sflag [#allocation6], %s266_s18 }
  0x48   : > { %s5584_s13 = scalar_lea.vmem [#allocation5], %s4003_s22 }
  0x49   : > { %5309 = dma.done.wait (%p5457_p5), %s267_s28, 512  }
  0x4a   : > { %5311 = vsyncadd (%p5457_p5), %s267_s28, 4294966784  ;;  %p7178_p6 = scmp.eq.s32.totalorder %s5448_s26, 0 }
  0x4c   : > { %5313 = dma.done.wait (%p7178_p6), [#allocation6], 9216   ;;  %p7179_p11 = pmov %p7178_p6 }
  0x4d   : > { %v4837_v0 = vld [vmem:[#allocation7 + $0x38] sm:$0xff]  ;;  %v4836_v4 = vld [vmem:[#allocation7 + $0x30] sm:$0xff]  ;;  %v4835_v8 = vld [vmem:[#allocation7 + $0x28] sm:$0xff]  ;;  %s4005_s26 = sshll.u32 %s5572_s4, 8  ;;  %s7285_s5 = sld [smem:[#allocation15_spill]] }
  0x4e   : > { %5315 = vsyncadd (%p7179_p11), [#allocation6], 4294958080  ;;  %v5594_v1 = vld [vmem:[#allocation7 + $0x78] sm:$0xff]  ;;  %503 = vmatpush.bf16.msra.mxu0 %v4837_v0  ;;  %v5597_v5 = vld [vmem:[#allocation7 + $0x70] sm:$0xff]  ;;  %s5717_s27 = scalar_lea.vmem [#allocation8], %s4005_s26  ;;  %s4982_s15 = sshll.u32 %s5346_s21, 5 }
  0x4f   : > { %v4853_v2 = vld [vmem:[#allocation7 + $0xb8] sm:$0xff]  ;;  %4983 = vmatpush.bf16.msra.mxu1 %v5594_v1  ;;  %v4852_v6 = vld [vmem:[#allocation7 + $0xb0] sm:$0xff]  ;;  %v5600_v9 = vld [vmem:[#allocation7 + $0x68] sm:$0xff]  ;;  %s7288_s23 = sld [smem:[#allocation68_spill]]  ;;  %s3858_s7 = sshll.u32 %s5717_s27, 4  ;;  %s3859_s7 = int_to_ptr.vmem [resolvable:$true] %s3858_s7 }
  0x50   : > { %v4877_v3 = vld [vmem:[#allocation7 + $0xf8] sm:$0xff]  ;;  %1006 = vmatpush.bf16.msra.mxu2 %v4853_v2  ;;  %v4876_v7 = vld [vmem:[#allocation7 + $0xf0] sm:$0xff]  ;;  %v4851_v10 = vld [vmem:[#allocation7 + $0xa8] sm:$0xff]  ;;  %s3843_s18 = scalar_lea.sflag [#allocation4], %s5572_s4 }
  0x51   : > { %1438 = vmatpush.bf16.msra.mxu3 %v4877_v3  ;;  %v4875_v11 = vld [vmem:[#allocation7 + $0xe8] sm:$0xff]  ;;  %v4834_v12 = vld [vmem:[#allocation7 + $0x20] sm:$0xff]  ;;  %v4833_v16 = vld [vmem:[#allocation7 + $0x18] sm:$0xff] }
  0x52   : > { %504 = vmatpush.bf16.msra.mxu0 %v4836_v4  ;;  %v4842_v13 = vld [vmem:[#allocation7 + $0x60] sm:$0xff]  ;;  %v4841_v17 = vld [vmem:[#allocation7 + $0x58] sm:$0xff]  ;;  %v4832_v20 = vld [vmem:[#allocation7 + $0x10] sm:$0xff] }
  0x53   : > { %4984 = vmatpush.bf16.msra.mxu1 %v5597_v5  ;;  %v4850_v14 = vld [vmem:[#allocation7 + $0xa0] sm:$0xff]  ;;  %v4849_v18 = vld [vmem:[#allocation7 + $0x98] sm:$0xff]  ;;  %v4840_v21 = vld [vmem:[#allocation7 + $0x50] sm:$0xff]  ;;  %s4805_s8 = sshll.u32 %s7285_s5, 6 }
  0x54   : > { %1007 = vmatpush.bf16.msra.mxu2 %v4852_v6  ;;  %v4874_v15 = vld [vmem:[#allocation7 + $0xe0] sm:$0xff]  ;;  %v4873_v19 = vld [vmem:[#allocation7 + $0xd8] sm:$0xff]  ;;  %v4848_v22 = vld [vmem:[#allocation7 + $0x90] sm:$0xff]  ;;  %s3855_s21 = sadd.s32 %s4982_s15, %s4805_s8 }
  0x55   : > { %1439 = vmatpush.bf16.msra.mxu3 %v4876_v7  ;;  %v4872_v23 = vld [vmem:[#allocation7 + $0xd0] sm:$0xff]  ;;  %v4831_v24 = vld [vmem:[#allocation7 + $0x8] sm:$0xff]  ;;  %v4830_v28 = vld [vmem:[#allocation7] sm:$0xff]  ;;  %s4806_s9 = sshll.u32 %s3855_s21, 3  ;;  %s7289_s29 = smov %s7288_s23 }
  0x56   : > { %505 = vmatpush.bf16.msra.mxu0 %v4835_v8  ;;  %v4839_v25 = vld [vmem:[#allocation7 + $0x48] sm:$0xff]  ;;  %v4838_v29 = vld [vmem:[#allocation7 + $0x40] sm:$0xff]  ;;  %v4885_v32 = vld [vmem:[#allocation7 + $0xf8] sm:$0xff]  ;;  %s3857_s14 = scalar_lea.hbm %s7288_s23, %s4806_s9  ;;  %s5252_s26 = scalar_lea.hbm %s7289_s29, 1024 }
  0x57   : > { %4985 = vmatpush.bf16.msra.mxu1 %v5600_v9  ;;  %v4847_v26 = vld [vmem:[#allocation7 + $0x88] sm:$0xff]  ;;  %v4846_v30 = vld [vmem:[#allocation7 + $0x80] sm:$0xff]  ;;  %v5607_v34 = vld [vmem:[%s5576_s10 + $0x30] sm:$0xff]  ;;  %s3860_s6 = sshll.u32 %s3857_s14, 4  ;;  %s3861_s6 = int_to_ptr.hbm [resolvable:$true] %s3860_s6 }
  0x58   : > { %1008 = vmatpush.bf16.msra.mxu2 %v4851_v10  ;;  %v4871_v27 = vld [vmem:[#allocation7 + $0xc8] sm:$0xff]  ;;  %v4870_v31 = vld [vmem:[#allocation7 + $0xc0] sm:$0xff]  ;;  %v5610_v35 = vld [vmem:[%s5576_s10 + $0x10] sm:$0xff]  ;;  %s5246_s20 = sshra.s32 %s3861_s6, 4  ;;  %s5247_s20 = int_to_ptr.hbm [resolvable:$true] %s5246_s20 }
  0x59   : > { %1440 = vmatpush.bf16.msra.mxu3 %v4875_v11  ;;  %v5604_v33 = vld [vmem:[%s5576_s10] sm:$0xff]  ;;  %v4909_v36 = vld [vmem:[#allocation7 + $0x178] sm:$0xff]  ;;  %v5620_v38 = vld [vmem:[%s5576_s10 + $0x8] sm:$0xff]  ;;  %v624_v11 = vlaneseq  ;;  %s5248_s22 = scalar_lea.hbm %s5247_s20, 256  ;;  %p5253_p8 = scmp.lt.s32.totalorder %s5247_s20, %s7289_s29 }
  0x5a   : > { %506 = vmatpush.bf16.msra.mxu0 %v4834_v12  ;;  %v4901_v37 = vld [vmem:[#allocation7 + $0x138] sm:$0xff]  ;;  %v4884_v41 = vld [vmem:[#allocation7 + $0xf0] sm:$0xff]  ;;  %v5636_v45 = vld [vmem:[%s5576_s10 + $0x40] sm:$0xff]  ;;  %p5249_p5 = scmp.ne.s32.totalorder %s5247_s20, %s5248_s22  ;;  %p5254_p9 = scmp.lt.s32.totalorder %s5252_s26, %s5248_s22 }
  0x5b   : > { %4986 = vmatpush.bf16.msra.mxu1 %v4842_v13  ;;  %v5623_v39 = vld [vmem:[%s5576_s10 + $0x38] sm:$0xff]  ;;  %v4900_v42 = vld [vmem:[#allocation7 + $0x130] sm:$0xff]  ;;  %v5639_v46 = vld [vmem:[%s5576_s10 + $0x20] sm:$0xff] }
  0x5c   : > { %1009 = vmatpush.bf16.msra.mxu2 %v4850_v14  ;;  %v5626_v40 = vld [vmem:[%s5576_s10 + $0x18] sm:$0xff]  ;;  %v4908_v43 = vld [vmem:[#allocation7 + $0x170] sm:$0xff]  ;;  %v4899_v47 = vld [vmem:[#allocation7 + $0x128] sm:$0xff]  ;;  %p5250_p3 = pnand %p5249_p5, %p5520_p7  ;;  %p5255_p12 = por %p5254_p9, %p5253_p8 }
  0x5d   : > { %1441 = vmatpush.bf16.msra.mxu3 %v4874_v15  ;;  %v5633_v44 = vld [vmem:[%s5576_s10 + $0x10] sm:$0xff]  ;;  %v5646_v48 = vld [vmem:[%s5576_s10 + $0x18] sm:$0xff]  ;;  %v5649_v49 = vld [vmem:[%s5576_s10 + $0x48] sm:$0xff] }
  0x5e   : > { %507 = vmatpush.bf16.msra.mxu0 %v4833_v16  ;;  %v5652_v50 = vld [vmem:[%s5576_s10 + $0x28] sm:$0xff]  ;;  %v5659_v53 = vld [vmem:[%s5576_s10 + $0x20] sm:$0xff]  ;;  %v5662_v54 = vld [vmem:[%s5576_s10 + $0x50] sm:$0xff]  ;;  %p5251_p4 = pneg %p5250_p3 }
  0x5f   : > { %4987 = vmatpush.bf16.msra.mxu1 %v4841_v17  ;;  %v4883_v51 = vld [vmem:[#allocation7 + $0xe8] sm:$0xff]  ;;  %v5665_v55 = vld [vmem:[%s5576_s10 + $0x30] sm:$0xff]  ;;  %v4898_v56 = vld [vmem:[#allocation7 + $0x120] sm:$0xff] }
  0x60   : > { %1010 = vmatpush.bf16.msra.mxu2 %v4849_v18  ;;  %v4907_v52 = vld [vmem:[#allocation7 + $0x168] sm:$0xff]  ;;  %v4882_v57 = vld [vmem:[#allocation7 + $0xe0] sm:$0xff]  ;;  %v5673_v59 = vld [vmem:[%s5576_s10 + $0x58] sm:$0xff]  ;;  %p5256_p2 = pnand %p5255_p12, %p5251_p4 }
  0x61   : > { %1442 = vmatpush.bf16.msra.mxu3 %v4873_v19  ;;  %v4819_v58 = vld [vmem:[%s5576_s10 + $0x28] sm:$0xff]  ;;  %v4859_v60 = vld [vmem:[%s5576_s10 + $0x38] sm:$0xff]  ;;  %v5678_v62 = vld [vmem:[%s5576_s10 + $0x60] sm:$0xff] }
  0x62   : > { %508 = vmatpush.bf16.msra.mxu0 %v4832_v20  ;;  %v4897_v61 = vld [vmem:[#allocation7 + $0x118] sm:$0xff]  ;;  %v4860_v63 = vld [vmem:[%s5576_s10 + $0x40] sm:$0xff]  ;;  %v4896_v2 = vld [vmem:[#allocation7 + $0x110] sm:$0xff] }
  0x63   : > { %4988 = vmatpush.bf16.msra.mxu1 %v4840_v21  ;;  %v4906_v0 = vld [vmem:[#allocation7 + $0x160] sm:$0xff]  ;;  %v5685_v3 = vld [vmem:[%s5576_s10 + $0x68] sm:$0xff]  ;;  %v5692_v6 = vld [vmem:[%s5576_s10 + $0x70] sm:$0xff] }
  0x64   : > { %1011 = vmatpush.bf16.msra.mxu2 %v4848_v22  ;;  %v4861_v4 = vld [vmem:[%s5576_s10 + $0x48] sm:$0xff]  ;;  %v4894_v7 = vld [vmem:[#allocation7 + $0x100] sm:$0xff]  ;;  %v4862_v10 = vld [vmem:[%s5576_s10 + $0x50] sm:$0xff] }
  0x65   : > { %1443 = vmatpush.bf16.msra.mxu3 %v4872_v23  ;;  %v4941_v12 = vld [vmem:[#allocation7 + $0x1b8] sm:$0xff]  ;;  %v4880_v22 = vld [vmem:[#allocation7 + $0xd0] sm:$0xff] }
  0x66   : > { %509 = vmatpush.bf16.msra.mxu0 %v4831_v24  ;;  %v4905_v14 = vld [vmem:[#allocation7 + $0x158] sm:$0xff]  ;;  %v4939_v24 = vld [vmem:[#allocation7 + $0x1a8] sm:$0xff] }
  0x67   : > { %4989 = vmatpush.bf16.msra.mxu1 %v4839_v25 }
  0x68   : > { %1012 = vmatpush.bf16.msra.mxu2 %v4847_v26 }
  0x69   : > { %1444 = vmatpush.bf16.msra.mxu3 %v4871_v27  ;;  %v5722_v27 = vld [vmem:[%s5576_s10 + $0x78] sm:$0xff] }
  0x6a   : > { %510 = vmatpush.bf16.msra.mxu0 %v4830_v28  ;;  %v4938_v28 = vld [vmem:[#allocation7 + $0x1a0] sm:$0xff] }
  0x6b   : > { %4990 = vmatpush.bf16.msra.mxu1 %v4838_v29 }
  0x6c   : > { %1013 = vmatpush.bf16.msra.mxu2 %v4846_v30 }
  0x6d   : > { %1445 = vmatpush.bf16.msra.mxu3 %v4870_v31  ;;  %511 = vmatmul.bf16.vlgmr.msra.gmra.mxu0 %v5604_v33 }
  0x6e   : > { %756 = vmatpush.bf16.msrb.mxu0 %v5594_v1  ;;  %794 = vmatmul.bf16.vlgmr.msra.gmra.mxu1 %v5607_v34  ;;  %v4881_v1 = vld [vmem:[#allocation7 + $0xd8] sm:$0xff] }
  0x6f   : > { %1014 = vmatmul.bf16.vlgmr.msra.gmra.mxu2 %v5604_v33  ;;  %2065 = vmatpush.bf16.msrb.mxu1 %v4901_v37  ;;  %v4863_v37 = vld [vmem:[%s5576_s10 + $0x58] sm:$0xff] }
  0x70   : > { %1446 = vmatmul.bf16.vlgmr.msra.gmra.mxu3 %v5610_v35  ;;  %2161 = vmatpush.bf16.msrb.mxu2 %v4909_v36 }
  0x71   : > { %1733 = vmatpush.bf16.msrb.mxu3 %v4885_v32 }
  0x72   : > { %757 = vmatpush.bf16.msrb.mxu0 %v5597_v5  ;;  %v4895_v5 = vld [vmem:[#allocation7 + $0x108] sm:$0xff] }
  0x73   : > { %2066 = vmatpush.bf16.msrb.mxu1 %v4900_v42 }
  0x74   : > { %2162 = vmatpush.bf16.msrb.mxu2 %v4908_v43 }
  0x75   : > { %1734 = vmatpush.bf16.msrb.mxu3 %v4884_v41 }
  0x76   : > { %758 = vmatpush.bf16.msrb.mxu0 %v5600_v9 }
  0x77   : > { %2067 = vmatpush.bf16.msrb.mxu1 %v4899_v47 }
  0x78   : > { %2163 = vmatpush.bf16.msrb.mxu2 %v4907_v52  ;;  %v4936_v52 = vld [vmem:[#allocation7 + $0x190] sm:$0xff] }
  0x79   : > { %1735 = vmatpush.bf16.msrb.mxu3 %v4883_v51 }
  0x7a   : > { %759 = vmatpush.bf16.msrb.mxu0 %v4842_v13  ;;  %v5702_v13 = vshrl.u32 %v624_v11, 7 }
  0x7b   : > { %2068 = vmatpush.bf16.msrb.mxu1 %v4898_v56 }
  0x7c   : > { %2164 = vmatpush.bf16.msrb.mxu2 %v4906_v0  ;;  %vm626_vm0 = vcmp.lt.s32.totalorder %v5702_v13, 1  ;;  %vm1127_vm1 = vcmp.lt.s32.totalorder %v5702_v13, 7 }
  0x7d   : > { %516 = vmatmul.bf16.gmra.mxu0 %v5620_v38  ;;  %1736 = vmatpush.bf16.msrb.mxu3 %v4882_v57 }
  0x7e   : > { %760 = vmatpush.bf16.msrb.mxu0 %v4841_v17  ;;  %799 = vmatmul.bf16.gmra.mxu1 %v5623_v39  ;;  %v4940_v17 = vld [vmem:[#allocation7 + $0x1b0] sm:$0xff] }
  0x7f   : > { %1019 = vmatmul.bf16.gmra.mxu2 %v5620_v38  ;;  %2069 = vmatpush.bf16.msrb.mxu1 %v4897_v61 }
  0x80   : > { %1451 = vmatmul.bf16.gmra.mxu3 %v5626_v40  ;;  %2165 = vmatpush.bf16.msrb.mxu2 %v4905_v14 }
  0x81   : > { %1737 = vmatpush.bf16.msrb.mxu3 %v4881_v1  ;;  %v4935_v1 = vld [vmem:[#allocation7 + $0x188] sm:$0xff] }
  0x82   : > { %761 = vmatpush.bf16.msrb.mxu0 %v4840_v21 }
  0x83   : > { %2070 = vmatpush.bf16.msrb.mxu1 %v4896_v2 }
  0x85   : > { %1738 = vmatpush.bf16.msrb.mxu3 %v4880_v22 }
  0x86   : > { %762 = vmatpush.bf16.msrb.mxu0 %v4839_v25 }
  0x87   : > { %2071 = vmatpush.bf16.msrb.mxu1 %v4895_v5  ;;  %v5761_v5 = vld [vmem:[%s5584_s13] sm:$0xff] }
  0x8a   : > { %763 = vmatpush.bf16.msrb.mxu0 %v4838_v29 }
  0x8b   : > { %2072 = vmatpush.bf16.msrb.mxu1 %v4894_v7  ;;  %v4934_v7 = vld [vmem:[#allocation7 + $0x180] sm:$0xff] }
  0x8d   : > { %521 = vmatmul.bf16.gmra.mxu0 %v5633_v44 }
  0x8e   : > { %804 = vmatmul.bf16.gmra.mxu1 %v5636_v45 }
  0x8f   : > { %1024 = vmatmul.bf16.gmra.mxu2 %v5633_v44  ;;  %2653 = vmatpush.bf16.msra.mxu1 %v4941_v12 }
  0x90   : > { %1456 = vmatmul.bf16.gmra.mxu3 %v5639_v46 }
  0x93   : > { %2654 = vmatpush.bf16.msra.mxu1 %v4940_v17  ;;  %v4864_v17 = vld [vmem:[%s5576_s10 + $0x60] sm:$0xff] }
  0x97   : > { %2655 = vmatpush.bf16.msra.mxu1 %v4939_v24  ;;  %v4904_v24 = vld [vmem:[#allocation7 + $0x150] sm:$0xff] }
  0x98   : > { %2166 = vmatpush.bf16.msrb.mxu2 %v4904_v24 }
  0x9b   : > { %2656 = vmatpush.bf16.msra.mxu1 %v4938_v28 }
  0x9d   : > { %526 = vmatmul.bf16.gmra.mxu0 %v5646_v48 }
  0x9e   : > { %809 = vmatmul.bf16.gmra.mxu1 %v5649_v49 }
  0x9f   : > { %1029 = vmatmul.bf16.gmra.mxu2 %v5646_v48 }
  0xa0   : > { %1461 = vmatmul.bf16.gmra.mxu3 %v5652_v50 }
  0xad   : > { %531 = vmatmul.bf16.gmra.mxu0 %v5659_v53 }
  0xae   : > { %814 = vmatmul.bf16.gmra.mxu1 %v5662_v54 }
  0xaf   : > { %1034 = vmatmul.bf16.gmra.mxu2 %v5659_v53 }
  0xb0   : > { %1466 = vmatmul.bf16.gmra.mxu3 %v5665_v55 }
  0xbd   : > { %536 = vmatmul.bf16.gmra.mxu0 %v4819_v58 }
  0xbe   : > { %819 = vmatmul.bf16.gmra.mxu1 %v5673_v59 }
  0xbf   : > { %1039 = vmatmul.bf16.gmra.mxu2 %v4819_v58 }
  0xc0   : > { %1471 = vmatmul.bf16.gmra.mxu3 %v4859_v60 }
  0xcd   : > { %541 = vmatmul.bf16.gmra.mxu0 %v5607_v34 }
  0xce   : > { %824 = vmatmul.bf16.gmra.mxu1 %v5678_v62 }
  0xcf   : > { %1044 = vmatmul.bf16.gmra.mxu2 %v5607_v34 }
  0xd0   : > { %1476 = vmatmul.bf16.gmra.mxu3 %v4860_v63 }
  0xdd   : > { %546 = vmatmul.bf16.gmra.mxu0 %v5623_v39 }
  0xde   : > { %829 = vmatmul.bf16.gmra.mxu1 %v5685_v3 }
  0xdf   : > { %1049 = vmatmul.bf16.gmra.mxu2 %v5623_v39 }
  0xe0   : > { %1481 = vmatmul.bf16.gmra.mxu3 %v4861_v4 }
  0xea   : > { %v5694_v8 = vpop.f32.mrf.mxu0 }
  0xeb   : > { %v5696_v9 = vpop.f32.mrf.mxu1  ;;  %v7147_v20 = vrot.slane %v5694_v8, 7 }
  0xed   : > { %551 = vmatmul.bf16.gmra.mxu0 %v5636_v45 }
  0xee   : > { %834 = vmatmul.bf16.gmra.mxu1 %v5692_v6 }
  0xef   : > { %1054 = vmatmul.bf16.gmra.mxu2 %v5636_v45  ;;  %v4937_v45 = vld [vmem:[#allocation7 + $0x198] sm:$0xff] }
  0xf0   : > { %1486 = vmatmul.bf16.gmra.mxu3 %v4862_v10  ;;  %2657 = vmatpush.bf16.msra.mxu1 %v4937_v45 }
  0xf2   : > { %v5705_v15 = vpop.f32.mrf.mxu2  ;;  %v514_v18 = vpop.f32.mrf.mxu0 }
  0xf3   : > { %v5707_v16 = vpop.f32.mrf.mxu3  ;;  %v5710_v19 = vpop.f32.mrf.mxu1  ;;  %v593_v21 = vrot.slane %v514_v18, 7  ;;  %v7146_v29 = vrot.slane %v5705_v15, 1 }
  0xf4   : > { %v7148_v30 = vrot.slane %v5707_v16, 7  ;;  %2658 = vmatpush.bf16.msra.mxu1 %v4936_v52  ;;  %v5794_v52 = vld [vmem:[%s5584_s13 + $0x8] sm:$0xff] }
  0xf5   : > { %v657_v23 = vsel %vm626_vm0, %v7147_v20, %v593_v21 }
  0xf6   : > { %660 = vst [vmem:[%s5717_s27 + $0x8] sm:$0xff] %v657_v23 }
  0xf8   : > { %2659 = vmatpush.bf16.msra.mxu1 %v4935_v1 }
  0xfa   : > { %v1017_v25 = vpop.f32.mrf.mxu2  ;;  %v517_v34 = vpop.f32.mrf.mxu0 }
  0xfb   : > { %v1449_v26 = vpop.f32.mrf.mxu3  ;;  %v1096_v31 = vrot.slane %v1017_v25, 1  ;;  %v5726_v36 = vpop.f32.mrf.mxu1  ;;  %v594_v39 = vrot.slane %v517_v34, 7  ;;  %v4879_v25 = vld [vmem:[#allocation7 + $0xc8] sm:$0xff] }
  0xfc   : > { %v1518_v32 = vrot.slane %v1449_v26, 7  ;;  %2660 = vmatpush.bf16.msra.mxu1 %v4934_v7  ;;  %1739 = vmatpush.bf16.msrb.mxu3 %v4879_v25 }
  0xfd   : > { %v5733_v41 = vsel %vm1127_vm1, %v7146_v29, %v1096_v31  ;;  %v656_v43 = vsel %vm626_vm0, %v593_v21, %v594_v39  ;;  %556 = vmatmul.bf16.gmra.mxu0 %v5649_v49 }
  0xfe   : > { %v5739_v42 = vsel %vm626_vm0, %v7148_v30, %v1518_v32  ;;  %839 = vmatmul.bf16.gmra.mxu1 %v5722_v27  ;;  %661 = vst [vmem:[%s5717_s27 + $0x10] sm:$0xff] %v656_v43 }
  0xff   : > { %1059 = vmatmul.bf16.gmra.mxu2 %v5649_v49 }
 0x100   : > { %1491 = vmatmul.bf16.gmra.mxu3 %v4863_v37 }
 0x102   : > { %v1020_v47 = vpop.f32.mrf.mxu2  ;;  %v519_v58 = vpop.f32.mrf.mxu0 }
 0x103   : > { %v1452_v51 = vpop.f32.mrf.mxu3  ;;  %v1097_v56 = vrot.slane %v1020_v47, 1  ;;  %v5747_v60 = vpop.f32.mrf.mxu1  ;;  %v595_v61 = vrot.slane %v519_v58, 7 }
 0x104   : > { %v1519_v57 = vrot.slane %v1452_v51, 7 }
 0x105   : > { %v5751_v63 = vsel %vm1127_vm1, %v1096_v31, %v1097_v56  ;;  %v655_v0 = vsel %vm626_vm0, %v594_v39, %v595_v61 }
 0x106   : > { %v5755_v49 = vsel %vm626_vm0, %v1518_v32, %v1519_v57  ;;  %662 = vst [vmem:[%s5717_s27 + $0x18] sm:$0xff] %v655_v0  ;;  %v4865_v0 = vld [vmem:[%s5576_s10 + $0x68] sm:$0xff] }
 0x10a   : > { %v1022_v2 = vpop.f32.mrf.mxu2  ;;  %v522_v12 = vpop.f32.mrf.mxu0 }
 0x10b   : > { %v1454_v4 = vpop.f32.mrf.mxu3  ;;  %v1098_v10 = vrot.slane %v1022_v2, 1  ;;  %v5763_v14 = vpop.f32.mrf.mxu1  ;;  %v596_v18 = vrot.slane %v522_v12, 7 }
 0x10c   : > { %v1520_v11 = vrot.slane %v1454_v4, 7 }
 0x10d   : > { %v5768_v21 = vsel %vm1127_vm1, %v1097_v56, %v1098_v10  ;;  %v654_v23 = vsel %vm626_vm0, %v595_v61, %v596_v18  ;;  %561 = vmatmul.bf16.gmra.mxu0 %v5662_v54 }
 0x10e   : > { %v5772_v22 = vsel %vm626_vm0, %v1519_v57, %v1520_v11  ;;  %2073 = vmatmul.bf16.vlgmr.msrb.gmra.mxu1 %v5761_v5  ;;  %663 = vst [vmem:[%s5717_s27 + $0x20] sm:$0xff] %v654_v23 }
 0x10f   : > { %1064 = vmatmul.bf16.gmra.mxu2 %v5662_v54 }
 0x110   : > { %1496 = vmatmul.bf16.gmra.mxu3 %v4864_v17 }
 0x112   : > { %v1025_v26 = vpop.f32.mrf.mxu2  ;;  %v524_v34 = vpop.f32.mrf.mxu0 }
 0x113   : > { %v1457_v28 = vpop.f32.mrf.mxu3  ;;  %v1099_v31 = vrot.slane %v1025_v26, 1  ;;  %v5780_v37 = vpop.f32.mrf.mxu1  ;;  %v597_v39 = vrot.slane %v524_v34, 7  ;;  %v4878_v34 = vld [vmem:[#allocation7 + $0xc0] sm:$0xff] }
 0x114   : > { %v1521_v32 = vrot.slane %v1457_v28, 7  ;;  %1740 = vmatpush.bf16.msrb.mxu3 %v4878_v34 }
 0x115   : > { %v5784_v43 = vsel %vm1127_vm1, %v1098_v10, %v1099_v31  ;;  %v653_v45 = vsel %vm626_vm0, %v596_v18, %v597_v39 }
 0x116   : > { %v5788_v54 = vsel %vm626_vm0, %v1520_v11, %v1521_v32  ;;  %664 = vst [vmem:[%s5717_s27 + $0x28] sm:$0xff] %v653_v45 }
 0x11a   : > { %v1027_v47 = vpop.f32.mrf.mxu2  ;;  %v527_v58 = vpop.f32.mrf.mxu0 }
 0x11b   : > { %v1459_v51 = vpop.f32.mrf.mxu3  ;;  %v1100_v56 = vrot.slane %v1027_v47, 1  ;;  %v5796_v61 = vpop.f32.mrf.mxu1  ;;  %v598_v1 = vrot.slane %v527_v58, 7 }
 0x11c   : > { %v1522_v57 = vrot.slane %v1459_v51, 7 }
 0x11d   : > { %v5801_v2 = vsel %vm1127_vm1, %v1099_v31, %v1100_v56  ;;  %v652_v7 = vsel %vm626_vm0, %v597_v39, %v598_v1  ;;  %566 = vmatmul.bf16.gmra.mxu0 %v5673_v59 }
 0x11e   : > { %v5805_v4 = vsel %vm626_vm0, %v1521_v32, %v1522_v57  ;;  %2078 = vmatmul.bf16.gmra.mxu1 %v5794_v52  ;;  %665 = vst [vmem:[%s5717_s27 + $0x30] sm:$0xff] %v652_v7  ;;  %v5827_v32 = vld [vmem:[%s5576_s10 + $0x20] sm:$0xff]  ;;  %v4917_v7 = vld [vmem:[#allocation7 + $0x178] sm:$0xff] }
 0x11f   : > { %7180 = vst [vmem:[#allocation23_spill] sm:$0xff] %v5805_v4  ;;  %1069 = vmatmul.bf16.gmra.mxu2 %v5673_v59  ;;  %2444 = vmatpush.bf16.msra.mxu3 %v4917_v7 }
 0x120   : > { %1501 = vmatmul.bf16.gmra.mxu3 %v4865_v0 }
 0x122   : > { %v1030_v10 = vpop.f32.mrf.mxu2  ;;  %v529_v18 = vpop.f32.mrf.mxu0 }
 0x123   : > { %v1462_v11 = vpop.f32.mrf.mxu3  ;;  %v1101_v12 = vrot.slane %v1030_v10, 1  ;;  %v5813_v23 = vpop.f32.mrf.mxu1  ;;  %v599_v24 = vrot.slane %v529_v18, 7  ;;  %v4903_v10 = vld [vmem:[#allocation7 + $0x148] sm:$0xff] }
 0x124   : > { %v1523_v17 = vrot.slane %v1462_v11, 7  ;;  %2167 = vmatpush.bf16.msrb.mxu2 %v4903_v10 }
 0x125   : > { %v5817_v25 = vsel %vm1127_vm1, %v1100_v56, %v1101_v12  ;;  %v651_v59 = vsel %vm626_vm0, %v598_v1, %v599_v24  ;;  %v4866_v56 = vld [vmem:[%s5576_s10 + $0x70] sm:$0xff] }
 0x126   : > { %v5821_v26 = vsel %vm626_vm0, %v1522_v57, %v1523_v17  ;;  %666 = vst [vmem:[%s5717_s27 + $0x38] sm:$0xff] %v651_v59 }
 0x127   : > { %7181 = vst [vmem:[#allocation24_spill] sm:$0xff] %v5821_v26 }
 0x12a   : > { %v1032_v28 = vpop.f32.mrf.mxu2  ;;  %v532_v47 = vpop.f32.mrf.mxu0 }
 0x12b   : > { %v1464_v31 = vpop.f32.mrf.mxu3  ;;  %v1102_v39 = vrot.slane %v1032_v28, 1  ;;  %v5829_v51 = vpop.f32.mrf.mxu1  ;;  %v600_v58 = vrot.slane %v532_v47, 7 }
 0x12c   : > { %v1524_v45 = vrot.slane %v1464_v31, 7 }
 0x12d   : > { %v5834_v57 = vsel %vm1127_vm1, %v1101_v12, %v1102_v39  ;;  %v650_v1 = vsel %vm626_vm0, %v599_v24, %v600_v58  ;;  %571 = vmatmul.bf16.gmra.mxu0 %v5678_v62 }
 0x12e   : > { %7182 = vst [vmem:[#allocation25_spill] sm:$0xff] %v5834_v57  ;;  %v5838_v0 = vsel %vm626_vm0, %v1523_v17, %v1524_v45  ;;  %2661 = vmatmul.bf16.vlgmr.msra.gmra.mxu1 %v5827_v32  ;;  %v4916_v17 = vld [vmem:[#allocation7 + $0x170] sm:$0xff] }
 0x12f   : > { %7183 = vst [vmem:[#allocation26_spill] sm:$0xff] %v5838_v0  ;;  %1074 = vmatmul.bf16.gmra.mxu2 %v5678_v62  ;;  %2445 = vmatpush.bf16.msra.mxu3 %v4916_v17  ;;  %v4947_v0 = vld [vmem:[#allocation7 + $0x1a8] sm:$0xff] }
 0x130   : > { %667 = vst [vmem:[%s5717_s27 + $0x40] sm:$0xff] %v650_v1  ;;  %1506 = vmatmul.bf16.gmra.mxu3 %v4866_v56  ;;  %v4915_v56 = vld [vmem:[#allocation7 + $0x168] sm:$0xff]  ;;  %v4973_v1 = vld [vmem:[#allocation7 + $0x238] sm:$0xff] }
 0x131   : > { %3388 = vmatpush.bf16.msrb.mxu1 %v4973_v1  ;;  %v4913_v1 = vld [vmem:[#allocation7 + $0x158] sm:$0xff] }
 0x132   : > { %v1035_v11 = vpop.f32.mrf.mxu2  ;;  %v534_v24 = vpop.f32.mrf.mxu0 }
 0x133   : > { %v1467_v12 = vpop.f32.mrf.mxu3  ;;  %v1103_v18 = vrot.slane %v1035_v11, 1  ;;  %v5846_v28 = vpop.f32.mrf.mxu1  ;;  %v601_v31 = vrot.slane %v534_v24, 7  ;;  %2446 = vmatpush.bf16.msra.mxu3 %v4915_v56  ;;  %v5860_v11 = vld [vmem:[%s5576_s10 + $0x28] sm:$0xff] }
 0x134   : > { %v1525_v59 = vrot.slane %v1467_v12, 7 }
 0x135   : > { %v5850_v34 = vsel %vm1127_vm1, %v1102_v39, %v1103_v18  ;;  %v649_v47 = vsel %vm626_vm0, %v600_v58, %v601_v31  ;;  %v4914_v39 = vld [vmem:[#allocation7 + $0x160] sm:$0xff] }
 0x136   : > { %7184 = vst [vmem:[#allocation27_spill] sm:$0xff] %v5850_v34  ;;  %v5854_v62 = vsel %vm626_vm0, %v1524_v45, %v1525_v59  ;;  %v4867_v45 = vld [vmem:[%s5576_s10 + $0x78] sm:$0xff]  ;;  %v4946_v34 = vld [vmem:[#allocation7 + $0x1a0] sm:$0xff] }
 0x137   : > { %7185 = vst [vmem:[#allocation28_spill] sm:$0xff] %v5854_v62  ;;  %2447 = vmatpush.bf16.msra.mxu3 %v4914_v39 }
 0x138   : > { %668 = vst [vmem:[%s5717_s27 + $0x48] sm:$0xff] %v649_v47 }
 0x13a   : > { %v1037_v7 = vpop.f32.mrf.mxu2  ;;  %v537_v24 = vpop.f32.mrf.mxu0 }
 0x13b   : > { %v1469_v10 = vpop.f32.mrf.mxu3  ;;  %v1104_v12 = vrot.slane %v1037_v7, 1  ;;  %v5862_v29 = vpop.f32.mrf.mxu1  ;;  %v602_v20 = vrot.slane %v537_v24, 7  ;;  %2448 = vmatpush.bf16.msra.mxu3 %v4913_v1 }
 0x13c   : > { %v1526_v17 = vrot.slane %v1469_v10, 7  ;;  %v4912_v10 = vld [vmem:[#allocation7 + $0x150] sm:$0xff] }
 0x13d   : > { %v5867_v58 = vsel %vm1127_vm1, %v1103_v18, %v1104_v12  ;;  %v648_v56 = vsel %vm626_vm0, %v601_v31, %v602_v20  ;;  %576 = vmatmul.bf16.gmra.mxu0 %v5685_v3 }
 0x13e   : > { %7186 = vst [vmem:[#allocation29_spill] sm:$0xff] %v5867_v58  ;;  %v5871_v47 = vsel %vm626_vm0, %v1525_v59, %v1526_v17  ;;  %2666 = vmatmul.bf16.gmra.mxu1 %v5860_v11 }
 0x13f   : > { %7187 = vst [vmem:[#allocation30_spill] sm:$0xff] %v5871_v47  ;;  %1079 = vmatmul.bf16.gmra.mxu2 %v5685_v3  ;;  %2449 = vmatpush.bf16.msra.mxu3 %v4912_v10  ;;  %v4910_v10 = vld [vmem:[#allocation7 + $0x140] sm:$0xff] }
 0x140   : > { %669 = vst [vmem:[%s5717_s27 + $0x50] sm:$0xff] %v648_v56  ;;  %1511 = vmatmul.bf16.gmra.mxu3 %v4867_v45  ;;  %v4911_v56 = vld [vmem:[#allocation7 + $0x148] sm:$0xff] }
 0x142   : > { %v1040_v18 = vpop.f32.mrf.mxu2  ;;  %v539_v24 = vpop.f32.mrf.mxu0 }
 0x143   : > { %v1472_v7 = vpop.f32.mrf.mxu3  ;;  %v1105_v59 = vrot.slane %v1040_v18, 1  ;;  %v5879_v30 = vpop.f32.mrf.mxu1  ;;  %v603_v31 = vrot.slane %v539_v24, 7  ;;  %2450 = vmatpush.bf16.msra.mxu3 %v4911_v56  ;;  %v4902_v24 = vld [vmem:[#allocation7 + $0x140] sm:$0xff]  ;;  %v4972_v56 = vld [vmem:[#allocation7 + $0x230] sm:$0xff] }
 0x144   : > { %v1527_v39 = vrot.slane %v1472_v7, 7  ;;  %v5893_v7 = vld [vmem:[%s5576_s10 + $0x30] sm:$0xff]  ;;  %2168 = vmatpush.bf16.msrb.mxu2 %v4902_v24  ;;  %3389 = vmatpush.bf16.msrb.mxu1 %v4972_v56 }
 0x145   : > { %v5883_v47 = vsel %vm1127_vm1, %v1104_v12, %v1105_v59  ;;  %v647_v45 = vsel %vm626_vm0, %v602_v20, %v603_v31 }
 0x146   : > { %7188 = vst [vmem:[#allocation31_spill] sm:$0xff] %v5883_v47  ;;  %v5887_v3 = vsel %vm626_vm0, %v1526_v17, %v1527_v39 }
 0x147   : > { %7189 = vst [vmem:[#allocation32_spill] sm:$0xff] %v5887_v3  ;;  %2451 = vmatpush.bf16.msra.mxu3 %v4910_v10 }
 0x148   : > { %670 = vst [vmem:[%s5717_s27 + $0x58] sm:$0xff] %v647_v45  ;;  %v4949_v45 = vld [vmem:[#allocation7 + $0x1b8] sm:$0xff] }
 0x14a   : > { %v1042_v1 = vpop.f32.mrf.mxu2  ;;  %v542_v12 = vpop.f32.mrf.mxu0 }
 0x14b   : > { %v1474_v18 = vpop.f32.mrf.mxu3  ;;  %v1106_v62 = vrot.slane %v1042_v1, 1  ;;  %v5895_v47 = vpop.f32.mrf.mxu1  ;;  %v4893_v1 = vld [vmem:[#allocation7 + $0x138] sm:$0xff] }
 0x14c   : > { %v1528_v58 = vrot.slane %v1474_v18, 7  ;;  %1838 = vmatpush.bf16.msra.mxu0 %v4893_v1 }
 0x14d   : > { %v5899_v17 = vsel %vm1127_vm1, %v1105_v59, %v1106_v62  ;;  %581 = vmatmul.bf16.gmra.mxu0 %v5692_v6  ;;  %v4948_v59 = vld [vmem:[#allocation7 + $0x1b0] sm:$0xff] }
 0x14e   : > { %7190 = vst [vmem:[#allocation33_spill] sm:$0xff] %v5899_v17  ;;  %v5903_v20 = vsel %vm626_vm0, %v1527_v39, %v1528_v58  ;;  %2671 = vmatmul.bf16.gmra.mxu1 %v5893_v7  ;;  %v604_v17 = vrot.slane %v542_v12, 7 }
 0x14f   : > { %7191 = vst [vmem:[#allocation34_spill] sm:$0xff] %v5903_v20  ;;  %1084 = vmatmul.bf16.gmra.mxu2 %v5692_v6 }
 0x150   : > { %1741 = vmatmul.bf16.vlgmr.msrb.gmra.mxu3 %v5761_v5  ;;  %v646_v56 = vsel %vm626_vm0, %v603_v31, %v604_v17 }
 0x151   : > { %2930 = vmatpush.bf16.msrb.mxu3 %v4949_v45 }
 0x152   : > { %v1045_v18 = vpop.f32.mrf.mxu2  ;;  %v544_v20 = vpop.f32.mrf.mxu0 }
 0x153   : > { %v1477_v24 = vpop.f32.mrf.mxu3  ;;  %v1107_v39 = vrot.slane %v1045_v18, 1  ;;  %v5909_v3 = vpop.f32.mrf.mxu1 }
 0x154   : > { %v1529_v10 = vrot.slane %v1477_v24, 7  ;;  %v5922_v24 = vld [vmem:[%s5576_s10 + $0x38] sm:$0xff] }
 0x155   : > { %2931 = vmatpush.bf16.msrb.mxu3 %v4948_v59  ;;  %v5913_v6 = vsel %vm1127_vm1, %v1106_v62, %v1107_v39 }
 0x156   : > { %7192 = vst [vmem:[#allocation35_spill] sm:$0xff] %v5913_v6  ;;  %v5917_v45 = vsel %vm626_vm0, %v1528_v58, %v1529_v10  ;;  %v889_v6 = vadd.f32 %v5696_v9, %v646_v56  ;;  %v605_v58 = vrot.slane %v544_v20, 7  ;;  %v4892_v9 = vld [vmem:[#allocation7 + $0x130] sm:$0xff] }
 0x157   : > { %7193 = vst [vmem:[#allocation36_spill] sm:$0xff] %v5917_v45  ;;  %1839 = vmatpush.bf16.msra.mxu0 %v4892_v9  ;;  %v4943_v9 = vld [vmem:[#allocation7 + $0x188] sm:$0xff] }
 0x159   : > { %2932 = vmatpush.bf16.msrb.mxu3 %v4947_v0 }
 0x15a   : > { %v1047_v1 = vpop.f32.mrf.mxu2  ;;  %v547_v26 = vpop.f32.mrf.mxu0 }
 0x15b   : > { %v1479_v18 = vpop.f32.mrf.mxu3  ;;  %v1108_v12 = vrot.slane %v1047_v1, 1  ;;  %v5924_v62 = vpop.f32.mrf.mxu1  ;;  %v4945_v1 = vld [vmem:[#allocation7 + $0x198] sm:$0xff] }
 0x15c   : > { %v1530_v59 = vrot.slane %v1479_v18, 7 }
 0x15d   : > { %2933 = vmatpush.bf16.msrb.mxu3 %v4946_v34  ;;  %v1146_v0 = vsel %vm1127_vm1, %v1107_v39, %v1108_v12  ;;  %586 = vmatmul.bf16.gmra.mxu0 %v5722_v27  ;;  %v645_v34 = vsel %vm626_vm0, %v604_v17, %v605_v58 }
 0x15e   : > { %v5931_v31 = vsel %vm626_vm0, %v1529_v10, %v1530_v59  ;;  %v1204_v45 = vadd.f32 %v1146_v0, %v889_v6  ;;  %2676 = vmatmul.bf16.gmra.mxu1 %v5922_v24  ;;  %v4944_v10 = vld [vmem:[#allocation7 + $0x190] sm:$0xff] }
 0x15f   : > { %7194 = vst [vmem:[#allocation37_spill] sm:$0xff] %v5931_v31  ;;  %1089 = vmatmul.bf16.gmra.mxu2 %v5722_v27  ;;  %v890_v27 = vadd.f32 %v5710_v19, %v645_v34  ;;  %v5953_v34 = vld [vmem:[%s5576_s10 + $0x40] sm:$0xff] }
 0x160   : > { %1746 = vmatmul.bf16.gmra.mxu3 %v5794_v52  ;;  %1236 = vst [vmem:[%s5717_s27 + $0x60] sm:$0xff] %v1204_v45  ;;  %v606_v45 = vrot.slane %v547_v26, 7  ;;  %v4942_v26 = vld [vmem:[#allocation7 + $0x180] sm:$0xff] }
 0x161   : > { %2934 = vmatpush.bf16.msrb.mxu3 %v4945_v1 }
 0x162   : > { %v1050_v20 = vpop.f32.mrf.mxu2  ;;  %v549_v18 = vpop.f32.mrf.mxu0  ;;  %v644_v57 = vsel %vm626_vm0, %v605_v58, %v606_v45 }
 0x163   : > { %v1482_v39 = vpop.f32.mrf.mxu3  ;;  %v1109_v6 = vrot.slane %v1050_v20, 1  ;;  %v5940_v0 = vpop.f32.mrf.mxu1  ;;  %v4971_v20 = vld [vmem:[#allocation7 + $0x228] sm:$0xff] }
 0x164   : > { %v1531_v56 = vrot.slane %v1482_v39, 7  ;;  %v4891_v39 = vld [vmem:[#allocation7 + $0x128] sm:$0xff]  ;;  %3390 = vmatpush.bf16.msrb.mxu1 %v4971_v20 }
 0x165   : > { %2935 = vmatpush.bf16.msrb.mxu3 %v4944_v10  ;;  %v1145_v1 = vsel %vm1127_vm1, %v1108_v12, %v1109_v6  ;;  %1840 = vmatpush.bf16.msra.mxu0 %v4891_v39 }
 0x166   : > { %v5947_v17 = vsel %vm626_vm0, %v1530_v59, %v1531_v56  ;;  %v1205_v31 = vadd.f32 %v1145_v1, %v890_v27  ;;  %v607_v1 = vrot.slane %v549_v18, 7 }
 0x167   : > { %7195 = vst [vmem:[#allocation38_spill] sm:$0xff] %v5947_v17 }
 0x168   : > { %1237 = vst [vmem:[%s5717_s27 + $0x68] sm:$0xff] %v1205_v31  ;;  %v891_v31 = vadd.f32 %v5726_v36, %v644_v57  ;;  %v5969_v36 = vld [vmem:[#allocation7 + $0x1f8] sm:$0xff] }
 0x169   : > { %2936 = vmatpush.bf16.msrb.mxu3 %v4943_v9  ;;  %3270 = vmatpush.bf16.msra.mxu2 %v5969_v36 }
 0x16a   : > { %v1052_v4 = vpop.f32.mrf.mxu2  ;;  %v552_v10 = vpop.f32.mrf.mxu0 }
 0x16b   : > { %v1484_v19 = vpop.f32.mrf.mxu3  ;;  %v1110_v12 = vrot.slane %v1052_v4, 1  ;;  %v5955_v27 = vpop.f32.mrf.mxu1  ;;  %v643_v4 = vsel %vm626_vm0, %v606_v45, %v607_v1 }
 0x16c   : > { %v1532_v59 = vrot.slane %v1484_v19, 7 }
 0x16d   : > { %2937 = vmatpush.bf16.msrb.mxu3 %v4942_v26  ;;  %v1144_v58 = vsel %vm1127_vm1, %v1109_v6, %v1110_v12  ;;  %764 = vmatmul.bf16.vlgmr.msrb.gmra.mxu0 %v5604_v33 }
 0x16e   : > { %v5962_v9 = vsel %vm626_vm0, %v1531_v56, %v1532_v59  ;;  %v1206_v20 = vadd.f32 %v1144_v58, %v891_v31  ;;  %2681 = vmatmul.bf16.gmra.mxu1 %v5953_v34  ;;  %v4890_v31 = vld [vmem:[#allocation7 + $0x120] sm:$0xff] }
 0x16f   : > { %7196 = vst [vmem:[#allocation39_spill] sm:$0xff] %v5962_v9  ;;  %2169 = vmatmul.bf16.vlgmr.msrb.gmra.mxu2 %v5610_v35  ;;  %v892_v35 = vadd.f32 %v5747_v60, %v643_v4  ;;  %1841 = vmatpush.bf16.msra.mxu0 %v4890_v31 }
 0x170   : > { %2452 = vmatmul.bf16.vlgmr.msra.gmra.mxu3 %v5761_v5  ;;  %1238 = vst [vmem:[%s5717_s27 + $0x70] sm:$0xff] %v1206_v20  ;;  %v608_v5 = vrot.slane %v552_v10, 7 }
 0x172   : > { %v1055_v57 = vpop.f32.mrf.mxu2  ;;  %v554_v18 = vpop.f32.mrf.mxu0  ;;  %v642_v58 = vsel %vm626_vm0, %v607_v1, %v608_v5 }
 0x173   : > { %v1487_v6 = vpop.f32.mrf.mxu3  ;;  %v1111_v56 = vrot.slane %v1055_v57, 1  ;;  %v5974_v39 = vpop.f32.mrf.mxu1 }
 0x174   : > { %v1533_v33 = vrot.slane %v1487_v6, 7  ;;  %v5987_v6 = vld [vmem:[%s5576_s10 + $0x48] sm:$0xff] }
 0x175   : > { %v1143_v19 = vsel %vm1127_vm1, %v1110_v12, %v1111_v56 }
 0x176   : > { %v5981_v26 = vsel %vm626_vm0, %v1532_v59, %v1533_v33  ;;  %v1207_v45 = vadd.f32 %v1143_v19, %v892_v35  ;;  %v893_v59 = vadd.f32 %v5763_v14, %v642_v58  ;;  %v4889_v14 = vld [vmem:[#allocation7 + $0x118] sm:$0xff] }
 0x177   : > { %7197 = vst [vmem:[#allocation40_spill] sm:$0xff] %v5981_v26  ;;  %v609_v26 = vrot.slane %v554_v18, 7  ;;  %1842 = vmatpush.bf16.msra.mxu0 %v4889_v14 }
 0x178   : > { %1239 = vst [vmem:[%s5717_s27 + $0x78] sm:$0xff] %v1207_v45  ;;  %v4970_v45 = vld [vmem:[#allocation7 + $0x220] sm:$0xff] }
 0x179   : > { %3391 = vmatpush.bf16.msrb.mxu1 %v4970_v45 }
 0x17a   : > { %v1057_v20 = vpop.f32.mrf.mxu2  ;;  %v557_v4 = vpop.f32.mrf.mxu0 }
 0x17b   : > { %v1489_v57 = vpop.f32.mrf.mxu3  ;;  %v1112_v60 = vrot.slane %v1057_v20, 1  ;;  %v5989_v12 = vpop.f32.mrf.mxu1 }
 0x17c   : > { %v1534_v10 = vrot.slane %v1489_v57, 7 }
 0x17d   : > { %v1142_v35 = vsel %vm1127_vm1, %v1111_v56, %v1112_v60  ;;  %769 = vmatmul.bf16.gmra.mxu0 %v5620_v38  ;;  %v641_v56 = vsel %vm626_vm0, %v608_v5, %v609_v26 }
 0x17e   : > { %v5996_v1 = vsel %vm626_vm0, %v1533_v33, %v1534_v10  ;;  %v1208_v19 = vadd.f32 %v1142_v35, %v893_v59  ;;  %2686 = vmatmul.bf16.gmra.mxu1 %v5987_v6  ;;  %v4957_v35 = vld [vmem:[#allocation7 + $0x1f8] sm:$0xff] }
 0x17f   : > { %7198 = vst [vmem:[#allocation41_spill] sm:$0xff] %v5996_v1  ;;  %2174 = vmatmul.bf16.gmra.mxu2 %v5626_v40  ;;  %v894_v40 = vadd.f32 %v5780_v37, %v641_v56  ;;  %3065 = vmatpush.bf16.msra.mxu3 %v4957_v35  ;;  %v6039_v35 = vld [vmem:[#allocation7 + $0x1f0] sm:$0xff] }
 0x180   : > { %2457 = vmatmul.bf16.gmra.mxu3 %v5794_v52  ;;  %1240 = vst [vmem:[%s5717_s27 + $0x80] sm:$0xff] %v1208_v19  ;;  %v610_v52 = vrot.slane %v557_v4, 7  ;;  %3271 = vmatpush.bf16.msra.mxu2 %v6039_v35 }
 0x182   : > { %v1060_v18 = vpop.f32.mrf.mxu2  ;;  %v559_v58 = vpop.f32.mrf.mxu0  ;;  %v640_v19 = vsel %vm626_vm0, %v609_v26, %v610_v52 }
 0x183   : > { %v1492_v31 = vpop.f32.mrf.mxu3  ;;  %v1113_v33 = vrot.slane %v1060_v18, 1  ;;  %v6005_v20 = vpop.f32.mrf.mxu1  ;;  %v6018_v18 = vld [vmem:[%s5576_s10 + $0x50] sm:$0xff] }
 0x184   : > { %v1535_v38 = vrot.slane %v1492_v31, 7  ;;  %v895_v31 = vadd.f32 %v5796_v61, %v640_v19  ;;  %v4888_v61 = vld [vmem:[#allocation7 + $0x110] sm:$0xff] }
 0x185   : > { %v1141_v57 = vsel %vm1127_vm1, %v1112_v60, %v1113_v33  ;;  %1843 = vmatpush.bf16.msra.mxu0 %v4888_v61  ;;  %v4955_v61 = vld [vmem:[#allocation7 + $0x1e8] sm:$0xff] }
 0x186   : > { %v6012_v5 = vsel %vm626_vm0, %v1534_v10, %v1535_v38  ;;  %v1209_v59 = vadd.f32 %v1141_v57, %v894_v40  ;;  %v6025_v10 = vld [vmem:[%s5584_s13] sm:$0xff]  ;;  %v611_v40 = vrot.slane %v559_v58, 7  ;;  %v4956_v58 = vld [vmem:[#allocation7 + $0x1f0] sm:$0xff] }
 0x187   : > { %7199 = vst [vmem:[#allocation42_spill] sm:$0xff] %v6012_v5  ;;  %3066 = vmatpush.bf16.msra.mxu3 %v4956_v58 }
 0x188   : > { %1241 = vst [vmem:[%s5717_s27 + $0x88] sm:$0xff] %v1209_v59 }
 0x18a   : > { %v1062_v45 = vpop.f32.mrf.mxu2  ;;  %v6020_v56 = vpop.f32.mrf.mxu0 }
 0x18b   : > { %v1494_v14 = vpop.f32.mrf.mxu3  ;;  %v1114_v37 = vrot.slane %v1062_v45, 1  ;;  %v6022_v60 = vpop.f32.mrf.mxu1  ;;  %3067 = vmatpush.bf16.msra.mxu3 %v4955_v61 }
 0x18c   : > { %v1536_v4 = vrot.slane %v1494_v14, 7 }
 0x18d   : > { %v1140_v26 = vsel %vm1127_vm1, %v1113_v33, %v1114_v37  ;;  %774 = vmatmul.bf16.gmra.mxu0 %v5633_v44  ;;  %v639_v33 = vsel %vm626_vm0, %v610_v52, %v611_v40 }
 0x18e   : > { %v6032_v57 = vsel %vm626_vm0, %v1535_v38, %v1536_v4  ;;  %v1210_v59 = vadd.f32 %v1140_v26, %v895_v31  ;;  %2691 = vmatmul.bf16.gmra.mxu1 %v6018_v18  ;;  %v896_v31 = vadd.f32 %v5813_v23, %v639_v33  ;;  %v612_v26 = vrot.slane %v6020_v56, 7  ;;  %v6058_v56 = vld [vmem:[%s5576_s10 + $0x58] sm:$0xff] }
 0x18f   : > { %7200 = vst [vmem:[#allocation43_spill] sm:$0xff] %v6032_v57  ;;  %2179 = vmatmul.bf16.gmra.mxu2 %v5639_v46 }
 0x190   : > { %2938 = vmatmul.bf16.vlgmr.msrb.gmra.mxu3 %v6025_v10  ;;  %1242 = vst [vmem:[%s5717_s27 + $0x90] sm:$0xff] %v1210_v59  ;;  %v638_v58 = vsel %vm626_vm0, %v611_v40, %v612_v26 }
 0x191   : > { %v897_v61 = vadd.f32 %v5829_v51, %v638_v58 }
 0x192   : > { %v1065_v38 = vpop.f32.mrf.mxu2  ;;  %v564_v14 = vpop.f32.mrf.mxu0 }
 0x193   : > { %v1497_v19 = vpop.f32.mrf.mxu3  ;;  %v1115_v44 = vrot.slane %v1065_v38, 1  ;;  %v6044_v46 = vpop.f32.mrf.mxu1  ;;  %v4969_v38 = vld [vmem:[#allocation7 + $0x218] sm:$0xff] }
 0x194   : > { %v1537_v45 = vrot.slane %v1497_v19, 7  ;;  %v4887_v19 = vld [vmem:[#allocation7 + $0x108] sm:$0xff]  ;;  %3392 = vmatpush.bf16.msrb.mxu1 %v4969_v38 }
 0x195   : > { %v1139_v52 = vsel %vm1127_vm1, %v1114_v37, %v1115_v44  ;;  %1844 = vmatpush.bf16.msra.mxu0 %v4887_v19  ;;  %v4954_v37 = vld [vmem:[#allocation7 + $0x1e0] sm:$0xff] }
 0x196   : > { %v6052_v59 = vsel %vm626_vm0, %v1536_v4, %v1537_v45  ;;  %v1211_v57 = vadd.f32 %v1139_v52, %v896_v31  ;;  %3068 = vmatpush.bf16.msra.mxu3 %v4954_v37 }
 0x197   : > { %7201 = vst [vmem:[#allocation44_spill] sm:$0xff] %v6052_v59  ;;  %v613_v59 = vrot.slane %v564_v14, 7 }
 0x198   : > { %1243 = vst [vmem:[%s5717_s27 + $0x98] sm:$0xff] %v1211_v57  ;;  %v6063_v57 = vld [vmem:[%s5584_s13 + $0x8] sm:$0xff] }
 0x199   : > { %v637_v51 = vsel %vm626_vm0, %v612_v26, %v613_v59 }
 0x19a   : > { %v1067_v23 = vpop.f32.mrf.mxu2  ;;  %v567_v31 = vpop.f32.mrf.mxu0 }
 0x19b   : > { %v1499_v33 = vpop.f32.mrf.mxu3  ;;  %v1116_v5 = vrot.slane %v1067_v23, 1  ;;  %v6060_v52 = vpop.f32.mrf.mxu1  ;;  %v4953_v23 = vld [vmem:[#allocation7 + $0x1d8] sm:$0xff] }
 0x19c   : > { %v1538_v4 = vrot.slane %v1499_v33, 7  ;;  %3069 = vmatpush.bf16.msra.mxu3 %v4953_v23  ;;  %v4951_v23 = vld [vmem:[#allocation7 + $0x1c8] sm:$0xff] }
 0x19d   : > { %v1138_v40 = vsel %vm1127_vm1, %v1115_v44, %v1116_v5  ;;  %779 = vmatmul.bf16.gmra.mxu0 %v5646_v48 }
 0x19e   : > { %v6070_v38 = vsel %vm626_vm0, %v1537_v45, %v1538_v4  ;;  %v1212_v19 = vadd.f32 %v1138_v40, %v897_v61  ;;  %2696 = vmatmul.bf16.gmra.mxu1 %v6058_v56  ;;  %v4952_v45 = vld [vmem:[#allocation7 + $0x1d0] sm:$0xff]  ;;  %v898_v61 = vadd.f32 %v5846_v28, %v637_v51 }
 0x19f   : > { %7202 = vst [vmem:[#allocation45_spill] sm:$0xff] %v6070_v38  ;;  %2184 = vmatmul.bf16.gmra.mxu2 %v5652_v50  ;;  %v614_v50 = vrot.slane %v567_v31, 7  ;;  %v6092_v31 = vld [vmem:[%s5576_s10 + $0x60] sm:$0xff] }
 0x1a0   : > { %2943 = vmatmul.bf16.gmra.mxu3 %v6063_v57  ;;  %1244 = vst [vmem:[%s5717_s27 + $0xa0] sm:$0xff] %v1212_v19 }
 0x1a1   : > { %3070 = vmatpush.bf16.msra.mxu3 %v4952_v45  ;;  %v636_v38 = vsel %vm626_vm0, %v613_v59, %v614_v50 }
 0x1a2   : > { %v1070_v44 = vpop.f32.mrf.mxu2  ;;  %v569_v37 = vpop.f32.mrf.mxu0 }
 0x1a3   : > { %v1502_v14 = vpop.f32.mrf.mxu3  ;;  %v1117_v58 = vrot.slane %v1070_v44, 1  ;;  %v6079_v48 = vpop.f32.mrf.mxu1  ;;  %v4886_v44 = vld [vmem:[#allocation7 + $0x100] sm:$0xff] }
 0x1a4   : > { %v1539_v33 = vrot.slane %v1502_v14, 7  ;;  %v4963_v14 = vld [vmem:[#allocation7 + $0x1e8] sm:$0xff]  ;;  %1845 = vmatpush.bf16.msra.mxu0 %v4886_v44 }
 0x1a5   : > { %v1137_v40 = vsel %vm1127_vm1, %v1116_v5, %v1117_v58  ;;  %3071 = vmatpush.bf16.msra.mxu3 %v4951_v23  ;;  %3272 = vmatpush.bf16.msra.mxu2 %v4963_v14  ;;  %v4950_v5 = vld [vmem:[#allocation7 + $0x1c0] sm:$0xff]  ;;  %v615_v23 = vrot.slane %v569_v37, 7 }
 0x1a6   : > { %v6086_v19 = vsel %vm626_vm0, %v1538_v4, %v1539_v33  ;;  %v1213_v26 = vadd.f32 %v1137_v40, %v898_v61 }
 0x1a7   : > { %7203 = vst [vmem:[#allocation46_spill] sm:$0xff] %v6086_v19  ;;  %v899_v19 = vadd.f32 %v5862_v29, %v636_v38  ;;  %v4968_v29 = vld [vmem:[#allocation7 + $0x210] sm:$0xff]  ;;  %v635_v38 = vsel %vm626_vm0, %v614_v50, %v615_v23 }
 0x1a8   : > { %1245 = vst [vmem:[%s5717_s27 + $0xa8] sm:$0xff] %v1213_v26  ;;  %v4932_v26 = vld [vmem:[%s5584_s13 + $0x10] sm:$0xff]  ;;  %3393 = vmatpush.bf16.msrb.mxu1 %v4968_v29 }
 0x1a9   : > { %3072 = vmatpush.bf16.msra.mxu3 %v4950_v5 }
 0x1aa   : > { %v1072_v28 = vpop.f32.mrf.mxu2  ;;  %v572_v61 = vpop.f32.mrf.mxu0 }
 0x1ab   : > { %v1504_v51 = vpop.f32.mrf.mxu3  ;;  %v1118_v45 = vrot.slane %v1072_v28, 1  ;;  %v6094_v40 = vpop.f32.mrf.mxu1  ;;  %v900_v28 = vadd.f32 %v5879_v30, %v635_v38  ;;  %v616_v5 = vrot.slane %v572_v61, 7 }
 0x1ac   : > { %v1540_v4 = vrot.slane %v1504_v51, 7 }
 0x1ad   : > { %v1136_v59 = vsel %vm1127_vm1, %v1117_v58, %v1118_v45  ;;  %4991 = vmatpush.bf16.msrb.mxu3 %v5969_v36  ;;  %784 = vmatmul.bf16.gmra.mxu0 %v5659_v53  ;;  %v634_v30 = vsel %vm626_vm0, %v615_v23, %v616_v5 }
 0x1ae   : > { %v6102_v1 = vsel %vm626_vm0, %v1539_v33, %v1540_v4  ;;  %v1214_v44 = vadd.f32 %v1136_v59, %v899_v19  ;;  %2701 = vmatmul.bf16.gmra.mxu1 %v6092_v31 }
 0x1af   : > { %7204 = vst [vmem:[#allocation47_spill] sm:$0xff] %v6102_v1  ;;  %2189 = vmatmul.bf16.gmra.mxu2 %v5665_v55  ;;  %v7149_v55 = vrot.slane %v6094_v40, 7 }
 0x1b0   : > { %2948 = vmatmul.bf16.gmra.mxu3 %v4932_v26  ;;  %1246 = vst [vmem:[%s5717_s27 + $0xb0] sm:$0xff] %v1214_v44 }
 0x1b1   : > { %4992 = vmatpush.bf16.msrb.mxu3 %v6039_v35 }
 0x1b2   : > { %v1075_v58 = vpop.f32.mrf.mxu2  ;;  %v574_v53 = vpop.f32.mrf.mxu0 }
 0x1b3   : > { %v1507_v33 = vpop.f32.mrf.mxu3  ;;  %v1119_v36 = vrot.slane %v1075_v58, 1  ;;  %v2664_v19 = vpop.f32.mrf.mxu1  ;;  %v4933_v58 = vld [vmem:[%s5584_s13 + $0x18] sm:$0xff] }
 0x1b4   : > { %v1541_v37 = vrot.slane %v1507_v33, 7  ;;  %v2723_v51 = vrot.slane %v2664_v19, 7  ;;  %v901_v33 = vadd.f32 %v5895_v47, %v634_v30 }
 0x1b5   : > { %v1135_v50 = vsel %vm1127_vm1, %v1118_v45, %v1119_v36  ;;  %4993 = vmatpush.bf16.msrb.mxu3 %v4963_v14  ;;  %v6130_v45 = vld [vmem:[%s5576_s10 + $0x68] sm:$0xff] }
 0x1b6   : > { %v6118_v35 = vsel %vm626_vm0, %v1540_v4, %v1541_v37  ;;  %v1215_v26 = vadd.f32 %v1135_v50, %v900_v28  ;;  %v6124_v59 = vsel %vm626_vm0, %v7149_v55, %v2723_v51  ;;  %v617_v28 = vrot.slane %v574_v53, 7  ;;  %v6149_v55 = vld [vmem:[%s5576_s10 + $0x38] sm:$0xff] }
 0x1b7   : > { %7205 = vst [vmem:[#allocation48_spill] sm:$0xff] %v6118_v35 }
 0x1b8   : > { %1247 = vst [vmem:[%s5717_s27 + $0xb8] sm:$0xff] %v1215_v26  ;;  %v633_v47 = vsel %vm626_vm0, %v616_v5, %v617_v28 }
 0x1ba   : > { %v1077_v61 = vpop.f32.mrf.mxu2  ;;  %v6132_v14 = vpop.f32.mrf.mxu0 }
 0x1bb   : > { %v1509_v44 = vpop.f32.mrf.mxu3  ;;  %v1120_v4 = vrot.slane %v1077_v61, 1  ;;  %v2667_v38 = vpop.f32.mrf.mxu1 }
 0x1bc   : > { %v1542_v29 = vrot.slane %v1509_v44, 7  ;;  %v2724_v19 = vrot.slane %v2667_v38, 7  ;;  %v5123_v44 = vld [vmem:[%s5576_s10 + $0x28] sm:$0xff] }
 0x1bd   : > { %v1134_v23 = vsel %vm1127_vm1, %v1119_v36, %v1120_v4  ;;  %789 = vmatmul.bf16.gmra.mxu0 %v5123_v44  ;;  %v618_v44 = vrot.slane %v6132_v14, 7 }
 0x1be   : > { %v6140_v50 = vsel %vm626_vm0, %v1541_v37, %v1542_v29  ;;  %v1216_v26 = vadd.f32 %v1134_v23, %v901_v33  ;;  %v6144_v61 = vsel %vm626_vm0, %v2723_v51, %v2724_v19  ;;  %2706 = vmatmul.bf16.gmra.mxu1 %v6130_v45  ;;  %v902_v33 = vadd.f32 %v5909_v3, %v633_v47 }
 0x1bf   : > { %7206 = vst [vmem:[#allocation49_spill] sm:$0xff] %v6140_v50  ;;  %2194 = vmatmul.bf16.gmra.mxu2 %v6149_v55  ;;  %v4962_v50 = vld [vmem:[#allocation7 + $0x1e0] sm:$0xff]  ;;  %v632_v3 = vsel %vm626_vm0, %v617_v28, %v618_v44 }
 0x1c0   : > { %2953 = vmatmul.bf16.gmra.mxu3 %v4933_v58  ;;  %1248 = vst [vmem:[%s5717_s27 + $0xc0] sm:$0xff] %v1216_v26  ;;  %3273 = vmatpush.bf16.msra.mxu2 %v4962_v50 }
 0x1c1   : > { %4994 = vmatpush.bf16.msrb.mxu3 %v4962_v50  ;;  %v7209_v50 = vrot.slane %v5707_v16, 7 }
 0x1c2   : > { %v1080_v36 = vpop.f32.mrf.mxu2  ;;  %v579_v51 = vpop.f32.mrf.mxu0 }
 0x1c3   : > { %v1512_v37 = vpop.f32.mrf.mxu3  ;;  %v1121_v53 = vrot.slane %v1080_v36, 1  ;;  %v2669_v38 = vpop.f32.mrf.mxu1 }
 0x1c4   : > { %v1543_v30 = vrot.slane %v1512_v37, 7  ;;  %v2725_v23 = vrot.slane %v2669_v38, 7  ;;  %v4967_v37 = vld [vmem:[#allocation7 + $0x208] sm:$0xff]  ;;  %v6171_v38 = vld [vmem:[%s5576_s10 + $0x70] sm:$0xff] }
 0x1c5   : > { %v1133_v58 = vsel %vm1127_vm1, %v1120_v4, %v1121_v53  ;;  %3394 = vmatpush.bf16.msrb.mxu1 %v4967_v37  ;;  %v4966_v4 = vld [vmem:[#allocation7 + $0x200] sm:$0xff] }
 0x1c6   : > { %v6161_v26 = vsel %vm626_vm0, %v1542_v29, %v1543_v30  ;;  %v1217_v5 = vadd.f32 %v1133_v58, %v902_v33  ;;  %v6165_v36 = vsel %vm626_vm0, %v2724_v19, %v2725_v23 }
 0x1c7   : > { %7207 = vst [vmem:[#allocation50_spill] sm:$0xff] %v6161_v26  ;;  %v619_v26 = vrot.slane %v579_v51, 7 }
 0x1c8   : > { %1249 = vst [vmem:[%s5717_s27 + $0xc8] sm:$0xff] %v1217_v5  ;;  %v903_v5 = vadd.f32 %v5924_v62, %v632_v3  ;;  %v5125_v3 = vld [vmem:[%s5576_s10 + $0x10] sm:$0xff] }
 0x1c9   : > { %3395 = vmatpush.bf16.msrb.mxu1 %v4966_v4  ;;  %v631_v16 = vsel %vm626_vm0, %v618_v44, %v619_v26 }
 0x1ca   : > { %v1082_v14 = vpop.f32.mrf.mxu2  ;;  %v582_v58 = vpop.f32.mrf.mxu0 }
 0x1cb   : > { %v1514_v47 = vpop.f32.mrf.mxu3  ;;  %v1122_v29 = vrot.slane %v1082_v14, 1  ;;  %v2672_v19 = vpop.f32.mrf.mxu1  ;;  %v620_v37 = vrot.slane %v582_v58, 7 }
 0x1cc   : > { %v1544_v33 = vrot.slane %v1514_v47, 7  ;;  %v2726_v35 = vrot.slane %v2672_v19, 7  ;;  %v904_v19 = vadd.f32 %v5940_v0, %v631_v16 }
 0x1cd   : > { %v1132_v28 = vsel %vm1127_vm1, %v1121_v53, %v1122_v29  ;;  %v630_v62 = vsel %vm626_vm0, %v619_v26, %v620_v37  ;;  %1846 = vmatmul.bf16.vlgmr.msra.gmra.mxu0 %v5125_v3  ;;  %v6195_v53 = vld [vmem:[%s5576_s10 + $0x40] sm:$0xff] }
 0x1ce   : > { %v6178_v1 = vsel %vm626_vm0, %v1543_v30, %v1544_v33  ;;  %v6184_v14 = vsel %vm626_vm0, %v1544_v33, %v7209_v50  ;;  %v1218_v47 = vadd.f32 %v1132_v28, %v903_v5  ;;  %v6190_v51 = vsel %vm626_vm0, %v2725_v23, %v2726_v35  ;;  %2711 = vmatmul.bf16.gmra.mxu1 %v6171_v38 }
 0x1cf   : > { %7208 = vst [vmem:[#allocation51_spill] sm:$0xff] %v6178_v1  ;;  %2199 = vmatmul.bf16.gmra.mxu2 %v6195_v53  ;;  %v6215_v1 = vld [vmem:[%s5576_s10 + $0x78] sm:$0xff] }
 0x1d0   : > { %7210 = vst [vmem:[#allocation52_spill] sm:$0xff] %v6190_v51  ;;  %3073 = vmatmul.bf16.vlgmr.msra.gmra.mxu3 %v5827_v32 }
 0x1d1   : > { %1250 = vst [vmem:[%s5717_s27 + $0xd0] sm:$0xff] %v1218_v47 }
 0x1d2   : > { %v1085_v30 = vpop.f32.mrf.mxu2  ;;  %v584_v33 = vpop.f32.mrf.mxu0  ;;  %7212 = vst [vmem:[#allocation54_spill] sm:$0xff] %v6215_v1 }
 0x1d3   : > { %v6202_v4 = vpop.f32.mrf.mxu3  ;;  %v1123_v23 = vrot.slane %v1085_v30, 1  ;;  %v2674_v58 = vpop.f32.mrf.mxu1  ;;  %v621_v5 = vrot.slane %v584_v33, 7 }
 0x1d4   : > { %v2727_v28 = vrot.slane %v2674_v58, 7  ;;  %v1752_v0 = vrot.slane %v6202_v4, 7 }
 0x1d5   : > { %v1131_v50 = vsel %vm1127_vm1, %v1122_v29, %v1123_v23  ;;  %v629_v47 = vsel %vm626_vm0, %v620_v37, %v621_v5 }
 0x1d6   : > { %v1219_v3 = vadd.f32 %v1131_v50, %v904_v19  ;;  %v6211_v44 = vsel %vm626_vm0, %v2726_v35, %v2727_v28  ;;  %v905_v19 = vadd.f32 %v5955_v27, %v630_v62  ;;  %v4961_v27 = vld [vmem:[#allocation7 + $0x1d8] sm:$0xff]  ;;  %v6232_v62 = vld [vmem:[%s5576_s10 + $0x48] sm:$0xff] }
 0x1d7   : > { %7211 = vst [vmem:[#allocation53_spill] sm:$0xff] %v6211_v44  ;;  %3274 = vmatpush.bf16.msra.mxu2 %v4961_v27  ;;  %4995 = vmatpush.bf16.msrb.mxu3 %v4961_v27 }
 0x1d8   : > { %1251 = vst [vmem:[%s5717_s27 + $0xd8] sm:$0xff] %v1219_v3 }
 0x1da   : > { %v1087_v26 = vpop.f32.mrf.mxu2  ;;  %v587_v29 = vpop.f32.mrf.mxu0 }
 0x1db   : > { %v1744_v30 = vpop.f32.mrf.mxu3  ;;  %v1124_v16 = vrot.slane %v1087_v26, 1  ;;  %v2677_v58 = vpop.f32.mrf.mxu1  ;;  %v622_v37 = vrot.slane %v587_v29, 7  ;;  %v5127_v26 = vld [vmem:[%s5576_s10 + $0x18] sm:$0xff] }
 0x1dc   : > { %v1753_v33 = vrot.slane %v1744_v30, 7  ;;  %v2728_v50 = vrot.slane %v2677_v58, 7 }
 0x1dd   : > { %v1130_v35 = vsel %vm1127_vm1, %v1123_v23, %v1124_v16  ;;  %v628_v17 = vsel %vm626_vm0, %v621_v5, %v622_v37  ;;  %1851 = vmatmul.bf16.gmra.mxu0 %v5127_v26 }
 0x1de   : > { %v1758_v3 = vsel %vm626_vm0, %v1752_v0, %v1753_v33  ;;  %v1220_v9 = vadd.f32 %v1130_v35, %v905_v19  ;;  %v6227_v4 = vsel %vm626_vm0, %v2727_v28, %v2728_v50  ;;  %2716 = vmatmul.bf16.gmra.mxu1 %v6215_v1  ;;  %v906_v19 = vadd.f32 %v5974_v39, %v629_v47 }
 0x1df   : > { %7213 = vst [vmem:[#allocation55_spill] sm:$0xff] %v6227_v4  ;;  %2204 = vmatmul.bf16.gmra.mxu2 %v6232_v62  ;;  %v7215_v47 = vrot.slane %v5694_v8, 7  ;;  %v7216_v8 = vrot.slane %v5705_v15, 1 }
 0x1e0   : > { %3078 = vmatmul.bf16.gmra.mxu3 %v5860_v11 }
 0x1e2   : > { %v1090_v23 = vpop.f32.mrf.mxu2  ;;  %v589_v58 = vpop.f32.mrf.mxu0 }
 0x1e3   : > { %v1747_v30 = vpop.f32.mrf.mxu3  ;;  %v1125_v5 = vrot.slane %v1090_v23, 1  ;;  %v2679_v28 = vpop.f32.mrf.mxu1  ;;  %v623_v35 = vrot.slane %v589_v58, 7 }
 0x1e4   : > { %v1754_v29 = vrot.slane %v1747_v30, 7  ;;  %v2729_v26 = vrot.slane %v2679_v28, 7 }
 0x1e5   : > { %v1129_v4 = vsel %vm1127_vm1, %v1124_v16, %v1125_v5  ;;  %v627_v27 = vsel %vm626_vm0, %v622_v37, %v623_v35  ;;  %v658_v16 = vsel %vm626_vm0, %v623_v35, %v7215_v47  ;;  %v907_v37 = vadd.f32 %v5989_v12, %v628_v17 }
 0x1e6   : > { %v1757_v1 = vsel %vm626_vm0, %v1753_v33, %v1754_v29  ;;  %v1221_v44 = vadd.f32 %v1129_v4, %v906_v19  ;;  %v6245_v23 = vsel %vm626_vm0, %v2728_v50, %v2729_v26  ;;  %v908_v50 = vadd.f32 %v6005_v20, %v627_v27  ;;  %v5129_v27 = vld [vmem:[%s5576_s10 + $0x20] sm:$0xff] }
 0x1e7   : > { %7214 = vst [vmem:[#allocation56_spill] sm:$0xff] %v6245_v23 }
 0x1e8   : > { %v6247_v30 = vadd.f32 %v1758_v3, %v1221_v44 }
 0x1ea   : > { %v1092_v51 = vpop.f32.mrf.mxu2  ;;  %v765_v4 = vpop.f32.mrf.mxu0 }
 0x1eb   : > { %v1749_v39 = vpop.f32.mrf.mxu3  ;;  %v1126_v58 = vrot.slane %v1092_v51, 1  ;;  %v2682_v28 = vpop.f32.mrf.mxu1  ;;  %v877_v19 = vadd.f32 %v765_v4, %v658_v16 }
 0x1ec   : > { %v1755_v33 = vrot.slane %v1749_v39, 7  ;;  %v2730_v44 = vrot.slane %v2682_v28, 7 }
 0x1ed   : > { %v1128_v3 = vsel %vm1127_vm1, %v1125_v5, %v1126_v58  ;;  %v1159_v35 = vsel %vm1127_vm1, %v1126_v58, %v7216_v8  ;;  %v1192_v20 = vadd.f32 %v5733_v41, %v877_v19  ;;  %1856 = vmatmul.bf16.gmra.mxu0 %v5129_v27  ;;  %v6274_v5 = vld [vmem:[%s5576_s10 + $0x50] sm:$0xff]  ;;  %v846_v58 = vld [vmem:[%s5717_s27 + $0x8] sm:$0xff] }
 0x1ee   : > { %v1756_v51 = vsel %vm626_vm0, %v1754_v29, %v1755_v33  ;;  %v1759_v39 = vsel %vm626_vm0, %v1755_v33, %v1752_v0  ;;  %v1222_v47 = vadd.f32 %v1128_v3, %v907_v37  ;;  %v1223_v17 = vadd.f32 %v1159_v35, %v908_v50  ;;  %3396 = vmatmul.bf16.vlgmr.msrb.gmra.mxu1 %v5827_v32  ;;  %v847_v3 = vld [vmem:[%s5717_s27 + $0x10] sm:$0xff] }
 0x1ef   : > { %v6265_v12 = vadd.f32 %v1759_v39, %v1220_v9  ;;  %v6271_v15 = vsel %vm626_vm0, %v2729_v26, %v2730_v44  ;;  %2209 = vmatmul.bf16.gmra.mxu2 %v6274_v5  ;;  %v6284_v41 = vadd.f32 %v6184_v14, %v1192_v20  ;;  %v4960_v39 = vld [vmem:[#allocation7 + $0x1d0] sm:$0xff] }
 0x1f0   : > { %7217 = vst [vmem:[#allocation57_spill] sm:$0xff] %v6271_v15  ;;  %3083 = vmatmul.bf16.gmra.mxu3 %v5893_v7  ;;  %v6278_v0 = vadd.f32 %v1757_v1, %v1222_v47  ;;  %v6280_v29 = vadd.f32 %v1756_v51, %v1223_v17  ;;  %3275 = vmatpush.bf16.msra.mxu2 %v4960_v39 }
 0x1f1   : > { %4996 = vmatpush.bf16.msrb.mxu3 %v4960_v39 }
 0x1f2   : > { %v6286_v9 = vpop.f32.mrf.mxu2  ;;  %v767_v16 = vpop.f32.mrf.mxu0 }
 0x1f3   : > { %v6288_v26 = vpop.f32.mrf.mxu3  ;;  %v2684_v33 = vpop.f32.mrf.mxu1  ;;  %v878_v4 = vadd.f32 %v846_v58, %v767_v16 }
 0x1f4   : > { %v2731_v28 = vrot.slane %v2684_v33, 7  ;;  %v848_v33 = vld [vmem:[%s5717_s27 + $0x18] sm:$0xff] }
 0x1f5   : > { %v1193_v1 = vadd.f32 %v5751_v63, %v878_v4 }
 0x1f6   : > { %v6294_v37 = vsel %vm626_vm0, %v2730_v44, %v2731_v28  ;;  %v5131_v44 = vld [vmem:[%s5576_s10 + $0x28] sm:$0xff] }
 0x1f7   : > { %7218 = vst [vmem:[#allocation58_spill] sm:$0xff] %v6294_v37  ;;  %v6297_v32 = vadd.f32 %v5739_v42, %v1193_v1  ;;  %v6311_v42 = vld [vmem:[%s5576_s10 + $0x58] sm:$0xff] }
 0x1fa   : > { %v6299_v14 = vpop.f32.mrf.mxu2  ;;  %v770_v19 = vpop.f32.mrf.mxu0 }
 0x1fb   : > { %v6301_v50 = vpop.f32.mrf.mxu3  ;;  %v2687_v8 = vpop.f32.mrf.mxu1  ;;  %v879_v35 = vadd.f32 %v847_v3, %v770_v19  ;;  %v7152_v27 = vrot.slane %v6299_v14, 1 }
 0x1fc   : > { %v2732_v51 = vrot.slane %v2687_v8, 7 }
 0x1fd   : > { %v1194_v47 = vadd.f32 %v5768_v21, %v879_v35  ;;  %1861 = vmatmul.bf16.gmra.mxu0 %v5131_v44  ;;  %v849_v44 = vld [vmem:[%s5717_s27 + $0x20] sm:$0xff] }
 0x1fe   : > { %v6307_v63 = vsel %vm626_vm0, %v2731_v28, %v2732_v51  ;;  %3401 = vmatmul.bf16.gmra.mxu1 %v5860_v11 }
 0x1ff   : > { %7219 = vst [vmem:[#allocation59_spill] sm:$0xff] %v6307_v63  ;;  %2214 = vmatmul.bf16.gmra.mxu2 %v6311_v42  ;;  %v6317_v17 = vadd.f32 %v5755_v49, %v1194_v47  ;;  %v851_v63 = vld [vmem:[%s5717_s27 + $0x30] sm:$0xff] }
 0x200   : > { %3088 = vmatmul.bf16.gmra.mxu3 %v5922_v24 }
 0x202   : > { %v2175_v21 = vpop.f32.mrf.mxu2  ;;  %v772_v58 = vpop.f32.mrf.mxu0 }
 0x203   : > { %v6319_v20 = vpop.f32.mrf.mxu3  ;;  %v2242_v16 = vrot.slane %v2175_v21, 1  ;;  %v2689_v4 = vpop.f32.mrf.mxu1  ;;  %v880_v28 = vadd.f32 %v848_v33, %v772_v58 }
 0x204   : > { %v2733_v1 = vrot.slane %v2689_v4, 7  ;;  %v5133_v4 = vld [vmem:[%s5576_s10 + $0x30] sm:$0xff] }
 0x205   : > { %v6327_v49 = vsel %vm1127_vm1, %v7152_v27, %v2242_v16  ;;  %v1195_v11 = vadd.f32 %v5784_v43, %v880_v28  ;;  %v6351_v28 = vld [vmem:[%s5576_s10 + $0x60] sm:$0xff] }
 0x206   : > { %v6332_v19 = vsel %vm626_vm0, %v2732_v51, %v2733_v1 }
 0x207   : > { %7220 = vst [vmem:[#allocation60_spill] sm:$0xff] %v6332_v19  ;;  %v6335_v3 = vadd.f32 %v5772_v22, %v1195_v11 }
 0x20a   : > { %v2177_v8 = vpop.f32.mrf.mxu2  ;;  %v775_v47 = vpop.f32.mrf.mxu0 }
 0x20b   : > { %v6337_v35 = vpop.f32.mrf.mxu3  ;;  %v2243_v39 = vrot.slane %v2177_v8, 1  ;;  %v2692_v21 = vpop.f32.mrf.mxu1  ;;  %v881_v58 = vadd.f32 %v849_v44, %v775_v47 }
 0x20c   : > { %v2734_v33 = vrot.slane %v2692_v21, 7 }
 0x20d   : > { %v6342_v43 = vsel %vm1127_vm1, %v2242_v16, %v2243_v39  ;;  %v1196_v51 = vadd.f32 %v5801_v2, %v881_v58  ;;  %1866 = vmatmul.bf16.gmra.mxu0 %v5133_v4 }
 0x20e   : > { %v6347_v22 = vsel %vm626_vm0, %v2733_v1, %v2734_v33  ;;  %3406 = vmatmul.bf16.gmra.mxu1 %v5893_v7  ;;  %v850_v1 = vld [vmem:[%s5717_s27 + $0x28] sm:$0xff] }
 0x20f   : > { %7221 = vst [vmem:[#allocation61_spill] sm:$0xff] %v6347_v22  ;;  %2219 = vmatmul.bf16.gmra.mxu2 %v6351_v28  ;;  %v6357_v11 = vadd.f32 %v5788_v54, %v1196_v51  ;;  %v4959_v7 = vld [vmem:[#allocation7 + $0x1c8] sm:$0xff]  ;;  %v7223_v51 = vld [vmem:[#allocation23_spill] sm:$0xff] }
 0x210   : > { %3093 = vmatmul.bf16.gmra.mxu3 %v5953_v34  ;;  %3276 = vmatpush.bf16.msra.mxu2 %v4959_v7 }
 0x211   : > { %4997 = vmatpush.bf16.msrb.mxu3 %v4959_v7  ;;  %v7225_v7 = vld [vmem:[#allocation25_spill] sm:$0xff] }
 0x212   : > { %v2180_v16 = vpop.f32.mrf.mxu2  ;;  %v777_v47 = vpop.f32.mrf.mxu0 }
 0x213   : > { %v6359_v8 = vpop.f32.mrf.mxu3  ;;  %v2244_v2 = vrot.slane %v2180_v16, 1  ;;  %v2694_v44 = vpop.f32.mrf.mxu1  ;;  %v882_v21 = vadd.f32 %v850_v1, %v777_v47 }
 0x214   : > { %v2735_v58 = vrot.slane %v2694_v44, 7  ;;  %v7153_v47 = vrot.slane %v6359_v8, 7 }
 0x215   : > { %v6364_v4 = vsel %vm1127_vm1, %v2243_v39, %v2244_v2  ;;  %v1197_v27 = vadd.f32 %v5817_v25, %v882_v21 }
 0x216   : > { %v6369_v54 = vsel %vm626_vm0, %v2734_v33, %v2735_v58 }
 0x217   : > { %7222 = vst [vmem:[#allocation62_spill] sm:$0xff] %v6369_v54  ;;  %v6372_v22 = vadd.f32 %v7223_v51, %v1197_v27 }
 0x21a   : > { %v2182_v16 = vpop.f32.mrf.mxu2  ;;  %v780_v44 = vpop.f32.mrf.mxu0 }
 0x21b   : > { %v2941_v19 = vpop.f32.mrf.mxu3  ;;  %v2245_v1 = vrot.slane %v2182_v16, 1  ;;  %v2697_v25 = vpop.f32.mrf.mxu1  ;;  %v883_v21 = vadd.f32 %v851_v63, %v780_v44  ;;  %v6393_v63 = vld [vmem:[%s5576_s10 + $0x68] sm:$0xff] }
 0x21c   : > { %v2960_v39 = vrot.slane %v2941_v19, 7  ;;  %v2736_v37 = vrot.slane %v2697_v25, 7  ;;  %7227 = vst [vmem:[#allocation63_spill] sm:$0xff] %v6393_v63 }
 0x21d   : > { %v6378_v33 = vsel %vm1127_vm1, %v2244_v2, %v2245_v1  ;;  %v1198_v51 = vadd.f32 %v7225_v7, %v883_v21  ;;  %1871 = vmatmul.bf16.gmra.mxu0 %v6149_v55  ;;  %v7228_v2 = vld [vmem:[#allocation24_spill] sm:$0xff] }
 0x21e   : > { %v6384_v27 = vsel %vm626_vm0, %v7153_v47, %v2960_v39  ;;  %v6389_v19 = vsel %vm626_vm0, %v2735_v58, %v2736_v37  ;;  %3411 = vmatmul.bf16.gmra.mxu1 %v5922_v24  ;;  %v852_v47 = vld [vmem:[%s5717_s27 + $0x38] sm:$0xff] }
 0x21f   : > { %7224 = vst [vmem:[#allocation23_spill] sm:$0xff] %v6384_v27  ;;  %2224 = vmatmul.bf16.gmra.mxu2 %v6393_v63  ;;  %v6399_v16 = vadd.f32 %v7228_v2, %v1198_v51  ;;  %v7232_v51 = vld [vmem:[#allocation27_spill] sm:$0xff] }
 0x220   : > { %7226 = vst [vmem:[#allocation25_spill] sm:$0xff] %v6389_v19  ;;  %3098 = vmatmul.bf16.gmra.mxu3 %v5987_v6  ;;  %v853_v63 = vld [vmem:[%s5717_s27 + $0x40] sm:$0xff] }
 0x221   : > { %7229 = vst [vmem:[#allocation24_spill] sm:$0xff] %v6399_v16 }
 0x222   : > { %v2185_v44 = vpop.f32.mrf.mxu2  ;;  %v782_v58 = vpop.f32.mrf.mxu0 }
 0x223   : > { %v2944_v25 = vpop.f32.mrf.mxu3  ;;  %v2246_v21 = vrot.slane %v2185_v44, 1  ;;  %v2699_v27 = vpop.f32.mrf.mxu1  ;;  %v884_v55 = vadd.f32 %v852_v47, %v782_v58 }
 0x224   : > { %v2961_v7 = vrot.slane %v2944_v25, 7  ;;  %v2737_v19 = vrot.slane %v2699_v27, 7  ;;  %v7234_v25 = vld [vmem:[#allocation26_spill] sm:$0xff] }
 0x225   : > { %v6404_v54 = vsel %vm1127_vm1, %v2245_v1, %v2246_v21  ;;  %v1199_v2 = vadd.f32 %v7232_v51, %v884_v55  ;;  %v2464_v55 = vrot.slane %v6301_v50, 1  ;;  %v7156_v50 = vrot.slane %v6288_v26, 1 }
 0x226   : > { %7230 = vst [vmem:[#allocation64_spill] sm:$0xff] %v6404_v54  ;;  %v6408_v24 = vsel %vm626_vm0, %v2960_v39, %v2961_v7  ;;  %v6413_v44 = vsel %vm626_vm0, %v2736_v37, %v2737_v19  ;;  %v4958_v54 = vld [vmem:[#allocation7 + $0x1c0] sm:$0xff] }
 0x227   : > { %7231 = vst [vmem:[#allocation65_spill] sm:$0xff] %v6408_v24  ;;  %v6416_v15 = vadd.f32 %v7234_v25, %v1199_v2  ;;  %3277 = vmatpush.bf16.msra.mxu2 %v4958_v54  ;;  %4998 = vmatpush.bf16.msrb.mxu3 %v4958_v54  ;;  %v7239_v54 = vld [vmem:[#allocation28_spill] sm:$0xff] }
 0x228   : > { %7233 = vst [vmem:[#allocation27_spill] sm:$0xff] %v6413_v44 }
 0x22a   : > { %v2187_v23 = vpop.f32.mrf.mxu2  ;;  %v785_v1 = vpop.f32.mrf.mxu0 }
 0x22b   : > { %v2946_v47 = vpop.f32.mrf.mxu3  ;;  %v2247_v27 = vrot.slane %v2187_v23, 1  ;;  %v2702_v16 = vpop.f32.mrf.mxu1  ;;  %v885_v39 = vadd.f32 %v853_v63, %v785_v1  ;;  %v7236_v23 = vld [vmem:[#allocation29_spill] sm:$0xff] }
 0x22c   : > { %v2962_v58 = vrot.slane %v2946_v47, 7  ;;  %v2738_v24 = vrot.slane %v2702_v16, 7  ;;  %v6436_v63 = vld [vmem:[%s5576_s10 + $0x70] sm:$0xff]  ;;  %v4981_v16 = vld [vmem:[#allocation7 + $0x238] sm:$0xff] }
 0x22d   : > { %v6422_v37 = vsel %vm1127_vm1, %v2246_v21, %v2247_v27  ;;  %v1200_v2 = vadd.f32 %v7236_v23, %v885_v39  ;;  %1876 = vmatmul.bf16.gmra.mxu0 %v6195_v53  ;;  %7238 = vst [vmem:[#allocation66_spill] sm:$0xff] %v6436_v63  ;;  %v2469_v53 = vsel %vm1127_vm1, %v7156_v50, %v2464_v55 }
 0x22e   : > { %v6426_v51 = vsel %vm626_vm0, %v2961_v7, %v2962_v58  ;;  %v6431_v25 = vsel %vm626_vm0, %v2737_v19, %v2738_v24  ;;  %3416 = vmatmul.bf16.gmra.mxu1 %v5953_v34  ;;  %3641 = vmatpush.bf16.msrb.mxu2 %v4981_v16  ;;  %v2088_v19 = vadd.f32 %v6022_v60, %v6265_v12 }
 0x22f   : > { %7235 = vst [vmem:[#allocation26_spill] sm:$0xff] %v6426_v51  ;;  %2229 = vmatmul.bf16.gmra.mxu2 %v6436_v63  ;;  %v6442_v21 = vadd.f32 %v7239_v54, %v1200_v2  ;;  %v854_v51 = vld [vmem:[%s5717_s27 + $0x48] sm:$0xff]  ;;  %v2465_v63 = vrot.slane %v6319_v20, 1 }
 0x230   : > { %7237 = vst [vmem:[#allocation29_spill] sm:$0xff] %v6431_v25  ;;  %3103 = vmatmul.bf16.gmra.mxu3 %v6018_v18  ;;  %v4980_v25 = vld [vmem:[#allocation7 + $0x230] sm:$0xff]  ;;  %v2475_v2 = vadd.f32 %v2469_v53, %v2088_v19  ;;  %v7241_v53 = vld [vmem:[#allocation30_spill] sm:$0xff] }
 0x232   : > { %v2190_v7 = vpop.f32.mrf.mxu2  ;;  %v787_v23 = vpop.f32.mrf.mxu0  ;;  %3642 = vmatpush.bf16.msrb.mxu2 %v4980_v25 }
 0x233   : > { %v2949_v47 = vpop.f32.mrf.mxu3  ;;  %v2248_v1 = vrot.slane %v2190_v7, 1  ;;  %v2704_v34 = vpop.f32.mrf.mxu1  ;;  %v886_v54 = vadd.f32 %v854_v51, %v787_v23  ;;  %v7240_v7 = vld [vmem:[#allocation31_spill] sm:$0xff]  ;;  %v4979_v51 = vld [vmem:[#allocation7 + $0x228] sm:$0xff] }
 0x234   : > { %v2963_v39 = vrot.slane %v2949_v47, 7  ;;  %v2739_v44 = vrot.slane %v2704_v34, 7 }
 0x235   : > { %v6454_v16 = vsel %vm1127_vm1, %v2247_v27, %v2248_v1  ;;  %v1201_v47 = vadd.f32 %v7240_v7, %v886_v54  ;;  %v2468_v27 = vsel %vm1127_vm1, %v2464_v55, %v2465_v63 }
 0x236   : > { %v2970_v60 = vsel %vm626_vm0, %v2962_v58, %v2963_v39  ;;  %v6461_v50 = vsel %vm626_vm0, %v2738_v24, %v2739_v44  ;;  %3643 = vmatpush.bf16.msrb.mxu2 %v4979_v51  ;;  %v2089_v58 = vadd.f32 %v6044_v46, %v6247_v30  ;;  %v855_v24 = vld [vmem:[%s5717_s27 + $0x50] sm:$0xff] }
 0x237   : > { %v2988_v12 = vadd.f32 %v2970_v60, %v2475_v2  ;;  %v6465_v20 = vadd.f32 %v7241_v53, %v1201_v47  ;;  %v4978_v60 = vld [vmem:[#allocation7 + $0x220] sm:$0xff]  ;;  %v2466_v53 = vrot.slane %v6337_v35, 1  ;;  %v7242_v51 = vld [vmem:[#allocation33_spill] sm:$0xff]  ;;  %v4977_v35 = vld [vmem:[#allocation7 + $0x218] sm:$0xff] }
 0x239   : > { %4638 = vst [vmem:[%s5717_s27 + $0xe0] sm:$0xff] %v2988_v12  ;;  %v2476_v12 = vadd.f32 %v2468_v27, %v2089_v58  ;;  %v6486_v27 = vld [vmem:[%s5576_s10 + $0x78] sm:$0xff] }
 0x23a   : > { %v2192_v25 = vpop.f32.mrf.mxu2  ;;  %v790_v2 = vpop.f32.mrf.mxu0  ;;  %3644 = vmatpush.bf16.msrb.mxu2 %v4978_v60 }
 0x23b   : > { %v2951_v19 = vpop.f32.mrf.mxu3  ;;  %v2249_v23 = vrot.slane %v2192_v25, 1  ;;  %v2707_v54 = vpop.f32.mrf.mxu1  ;;  %v887_v7 = vadd.f32 %v855_v24, %v790_v2 }
 0x23c   : > { %v2964_v34 = vrot.slane %v2951_v19, 7  ;;  %v2740_v47 = vrot.slane %v2707_v54, 7 }
 0x23d   : > { %v6475_v55 = vsel %vm1127_vm1, %v2248_v1, %v2249_v23  ;;  %v1202_v25 = vadd.f32 %v7242_v51, %v887_v7  ;;  %1881 = vmatmul.bf16.gmra.mxu0 %v6232_v62  ;;  %v7243_v1 = vld [vmem:[#allocation32_spill] sm:$0xff]  ;;  %v2090_v62 = vadd.f32 %v6060_v52, %v6278_v0  ;;  %v7244_v0 = vld [vmem:[#allocation35_spill] sm:$0xff] }
 0x23e   : > { %v2969_v46 = vsel %vm626_vm0, %v2963_v39, %v2964_v34  ;;  %v6482_v19 = vsel %vm626_vm0, %v2739_v44, %v2740_v47  ;;  %3421 = vmatmul.bf16.gmra.mxu1 %v5987_v6  ;;  %v2467_v44 = vsel %vm1127_vm1, %v2465_v63, %v2466_v53  ;;  %3645 = vmatpush.bf16.msrb.mxu2 %v4977_v35 }
 0x23f   : > { %v2989_v30 = vadd.f32 %v2969_v46, %v2476_v12  ;;  %2234 = vmatmul.bf16.gmra.mxu2 %v6486_v27  ;;  %v6493_v39 = vadd.f32 %v7243_v1, %v1202_v25  ;;  %v856_v12 = vld [vmem:[%s5717_s27 + $0x58] sm:$0xff]  ;;  %v4976_v46 = vld [vmem:[#allocation7 + $0x210] sm:$0xff]  ;;  %v2477_v6 = vadd.f32 %v2467_v44, %v2090_v62 }
 0x240   : > { %3108 = vmatmul.bf16.gmra.mxu3 %v6058_v56  ;;  %v7245_v44 = vld [vmem:[#allocation34_spill] sm:$0xff] }
 0x241   : > { %4639 = vst [vmem:[%s5717_s27 + $0xe8] sm:$0xff] %v2989_v30 }
 0x242   : > { %v2195_v58 = vpop.f32.mrf.mxu2  ;;  %v792_v60 = vpop.f32.mrf.mxu0  ;;  %3646 = vmatpush.bf16.msrb.mxu2 %v4976_v46 }
 0x243   : > { %v2954_v2 = vpop.f32.mrf.mxu3  ;;  %v2250_v24 = vrot.slane %v2195_v58, 1  ;;  %v2709_v7 = vpop.f32.mrf.mxu1  ;;  %v888_v30 = vadd.f32 %v856_v12, %v792_v60  ;;  %v4975_v58 = vld [vmem:[#allocation7 + $0x208] sm:$0xff] }
 0x244   : > { %v2965_v54 = vrot.slane %v2954_v2, 7  ;;  %v2741_v51 = vrot.slane %v2709_v7, 7  ;;  %v7246_v2 = vrot.slane %v6288_v26, 1  ;;  %v2240_v7 = vrot.slane %v6286_v9, 1 }
 0x245   : > { %v6502_v25 = vsel %vm1127_vm1, %v2249_v23, %v2250_v24  ;;  %v1203_v35 = vadd.f32 %v7244_v0, %v888_v30 }
 0x246   : > { %v2968_v63 = vsel %vm626_vm0, %v2964_v34, %v2965_v54  ;;  %v6509_v1 = vsel %vm626_vm0, %v2740_v47, %v2741_v51  ;;  %v2470_v23 = vsel %vm1127_vm1, %v2466_v53, %v7246_v2  ;;  %3647 = vmatpush.bf16.msrb.mxu2 %v4975_v58  ;;  %v2091_v34 = vadd.f32 %v6079_v48, %v6280_v29 }
 0x247   : > { %v2990_v52 = vadd.f32 %v2968_v63, %v2477_v6  ;;  %v6513_v62 = vadd.f32 %v7245_v44, %v1203_v35  ;;  %v4974_v63 = vld [vmem:[#allocation7 + $0x200] sm:$0xff]  ;;  %v7247_v53 = vrot.slane %v6299_v14, 1  ;;  %v7248_v58 = vrot.slane %v6359_v8, 7 }
 0x249   : > { %4640 = vst [vmem:[%s5717_s27 + $0xf0] sm:$0xff] %v2990_v52  ;;  %v2478_v52 = vadd.f32 %v2470_v23, %v2091_v34  ;;  %v2294_v48 = vsel %vm1127_vm1, %v2240_v7, %v7247_v53 }
 0x24a   : > { %v2197_v60 = vpop.f32.mrf.mxu2  ;;  %v1847_v6 = vpop.f32.mrf.mxu0  ;;  %3648 = vmatpush.bf16.msrb.mxu2 %v4974_v63 }
 0x24b   : > { %v2956_v12 = vpop.f32.mrf.mxu3  ;;  %v2251_v47 = vrot.slane %v2197_v60, 1  ;;  %v2712_v30 = vpop.f32.mrf.mxu1  ;;  %v1945_v26 = vadd.f32 %v1847_v6, %v6284_v41 }
 0x24c   : > { %v2966_v46 = vrot.slane %v2956_v12, 7  ;;  %v2742_v0 = vrot.slane %v2712_v30, 7 }
 0x24d   : > { %v6531_v29 = vsel %vm1127_vm1, %v2250_v24, %v2251_v47  ;;  %v2324_v44 = vadd.f32 %v2294_v48, %v1945_v26  ;;  %1886 = vmatmul.bf16.gmra.mxu0 %v6274_v5 }
 0x24e   : > { %v2967_v35 = vsel %vm626_vm0, %v2965_v54, %v2966_v46  ;;  %v6539_v41 = vsel %vm626_vm0, %v2966_v46, %v7248_v58  ;;  %v6543_v2 = vsel %vm626_vm0, %v2741_v51, %v2742_v0  ;;  %3426 = vmatmul.bf16.gmra.mxu1 %v6018_v18 }
 0x24f   : > { %v2991_v14 = vadd.f32 %v2967_v35, %v2478_v52  ;;  %3278 = vmatmul.bf16.vlgmr.msra.gmra.mxu2 %v6025_v10 }
 0x250   : > { %3113 = vmatmul.bf16.gmra.mxu3 %v6092_v31 }
 0x251   : > { %4641 = vst [vmem:[%s5717_s27 + $0xf8] sm:$0xff] %v2991_v14 }
 0x252   : > { %v2200_v8 = vpop.f32.mrf.mxu2  ;;  %v1849_v23 = vpop.f32.mrf.mxu0 }
 0x253   : > { %v3074_v24 = vpop.f32.mrf.mxu3  ;;  %v2252_v54 = vrot.slane %v2200_v8, 1  ;;  %v2714_v34 = vpop.f32.mrf.mxu1  ;;  %v1946_v60 = vadd.f32 %v1849_v23, %v6297_v32 }
 0x254   : > { %v2743_v12 = vrot.slane %v2714_v34, 7 }
 0x255   : > { %v6553_v51 = vsel %vm1127_vm1, %v2251_v47, %v2252_v54  ;;  %v2325_v5 = vadd.f32 %v6327_v49, %v1946_v60 }
 0x256   : > { %v6558_v10 = vsel %vm626_vm0, %v2742_v0, %v2743_v12 }
 0x257   : > { %v6561_v18 = vadd.f32 %v6124_v59, %v2325_v5 }
 0x25a   : > { %v2202_v46 = vpop.f32.mrf.mxu2  ;;  %v1852_v63 = vpop.f32.mrf.mxu0 }
 0x25b   : > { %v6563_v6 = vpop.f32.mrf.mxu3  ;;  %v2253_v30 = vrot.slane %v2202_v46, 1  ;;  %v2717_v32 = vpop.f32.mrf.mxu1  ;;  %v1947_v52 = vadd.f32 %v1852_v63, %v6317_v17 }
 0x25c   : > { %v2744_v26 = vrot.slane %v2717_v32, 7 }
 0x25d   : > { %v6568_v47 = vsel %vm1127_vm1, %v2252_v54, %v2253_v30  ;;  %v2326_v49 = vadd.f32 %v6342_v43, %v1947_v52  ;;  %1891 = vmatmul.bf16.gmra.mxu0 %v6311_v42 }
 0x25e   : > { %v6573_v0 = vsel %vm626_vm0, %v2743_v12, %v2744_v26  ;;  %3431 = vmatmul.bf16.gmra.mxu1 %v6058_v56 }
 0x25f   : > { %3283 = vmatmul.bf16.gmra.mxu2 %v6063_v57  ;;  %v6580_v59 = vadd.f32 %v6144_v61, %v2326_v49  ;;  %v7249_v61 = vrot.slane %v6094_v40, 7 }
 0x260   : > { %3118 = vmatmul.bf16.gmra.mxu3 %v6130_v45 }
 0x262   : > { %v2205_v17 = vpop.f32.mrf.mxu2  ;;  %v1854_v43 = vpop.f32.mrf.mxu0 }
 0x263   : > { %v6582_v53 = vpop.f32.mrf.mxu3  ;;  %v2254_v48 = vrot.slane %v2205_v17, 1  ;;  %v2719_v35 = vpop.f32.mrf.mxu1  ;;  %v1948_v58 = vadd.f32 %v1854_v43, %v6335_v3  ;;  %v7251_v17 = vld [vmem:[#allocation64_spill] sm:$0xff] }
 0x264   : > { %v2745_v14 = vrot.slane %v2719_v35, 7  ;;  %v6630_v35 = vld [vmem:[%s7129_s3] ss:$0 sm:$0xff] }
 0x265   : > { %v6587_v42 = vsel %vm1127_vm1, %v2253_v30, %v2254_v48  ;;  %v2327_v57 = vadd.f32 %v6364_v4, %v1948_v58  ;;  %v7252_v58 = vld [vmem:[#allocation53_spill] sm:$0xff] }
 0x266   : > { %v6592_v56 = vsel %vm626_vm0, %v2744_v26, %v2745_v14  ;;  %v2769_v8 = vsel %vm626_vm0, %v2745_v14, %v7249_v61 }
 0x267   : > { %v2794_v54 = vadd.f32 %v2769_v8, %v2324_v44  ;;  %v6599_v3 = vadd.f32 %v6165_v36, %v2327_v57  ;;  %v5138_v36 = vld [vmem:[%s5584_s13] sm:$0xff]  ;;  %v7250_v44 = vld [vmem:[#allocation52_spill] sm:$0xff] }
 0x269   : > { %v3158_v43 = vadd.f32 %v3074_v24, %v2794_v54 }
 0x26a   : > { %v2207_v23 = vpop.f32.mrf.mxu2  ;;  %v1857_v12 = vpop.f32.mrf.mxu0 }
 0x26b   : > { %v6601_v34 = vpop.f32.mrf.mxu3  ;;  %v2255_v60 = vrot.slane %v2207_v23, 1  ;;  %v1949_v4 = vadd.f32 %v1857_v12, %v6357_v11  ;;  %v6608_v46 = vpop.f32.mrf.mxu1 }
 0x26c   : > { %v3457_v49 = vrot.slane %v6608_v46, 1  ;;  %v4712_v46 = vld [vmem:[%s5717_s27 + $0xf0] sm:$0xff] }
 0x26d   : > { %v6606_v5 = vsel %vm1127_vm1, %v2254_v48, %v2255_v60  ;;  %v2328_v40 = vadd.f32 %v6378_v33, %v1949_v4  ;;  %1896 = vmatmul.bf16.gmra.mxu0 %v6351_v28 }
 0x26e   : > { %3436 = vmatmul.bf16.gmra.mxu1 %v6092_v31 }
 0x26f   : > { %3649 = vmatmul.bf16.vlgmr.msrb.gmra.mxu2 %v5138_v36  ;;  %v6616_v30 = vadd.f32 %v7250_v44, %v2328_v40 }
 0x270   : > { %3123 = vmatmul.bf16.gmra.mxu3 %v6171_v38 }
 0x272   : > { %v2210_v11 = vpop.f32.mrf.mxu2  ;;  %v1859_v52 = vpop.f32.mrf.mxu0 }
 0x273   : > { %v6618_v63 = vpop.f32.mrf.mxu3  ;;  %v2256_v32 = vrot.slane %v2210_v11, 1  ;;  %v1950_v26 = vadd.f32 %v1859_v52, %v6372_v22  ;;  %v3399_v28 = vpop.f32.mrf.mxu1  ;;  %v7254_v52 = vld [vmem:[#allocation63_spill] sm:$0xff] }
 0x274   : > { %v3458_v31 = vrot.slane %v3399_v28, 1  ;;  %v7255_v28 = vld [vmem:[#allocation54_spill] sm:$0xff] }
 0x275   : > { %v6623_v33 = vsel %vm1127_vm1, %v2255_v60, %v2256_v32  ;;  %v2329_v48 = vadd.f32 %v7251_v17, %v1950_v26  ;;  %v7253_v60 = vld [vmem:[#allocation24_spill] sm:$0xff]  ;;  %v3159_v26 = vadd.f32 %v6563_v6, %v6561_v18 }
 0x276   : > { %v3503_v22 = vsel %vm1127_vm1, %v3457_v49, %v3458_v31  ;;  %v5139_v17 = vld [vmem:[%s5584_s13 + $0x8] sm:$0xff] }
 0x277   : > { %v6637_v14 = vadd.f32 %v7252_v58, %v2329_v48  ;;  %v3529_v57 = vadd.f32 %v3503_v22, %v3158_v43 }
 0x279   : > { %v3746_v24 = vadd.f32 %v6630_v35, %v3529_v57 }
 0x27a   : > { %v2212_v61 = vpop.f32.mrf.mxu2  ;;  %v1862_v23 = vpop.f32.mrf.mxu0 }
 0x27b   : > { %v6639_v8 = vpop.f32.mrf.mxu3  ;;  %v2257_v54 = vrot.slane %v2212_v61, 1  ;;  %v1951_v12 = vadd.f32 %v1862_v23, %v7253_v60  ;;  %v3778_v4 = vmax.f32 %v3746_v24, 0.0  ;;  %v3402_v36 = vpop.f32.mrf.mxu1 }
 0x27c   : > { %v3459_v11 = vrot.slane %v3402_v36, 1  ;;  %v7257_v36 = vld [vmem:[#allocation56_spill] sm:$0xff] }
 0x27d   : > { %v6645_v40 = vsel %vm1127_vm1, %v2256_v32, %v2257_v54  ;;  %v2330_v44 = vadd.f32 %v6422_v37, %v1951_v12  ;;  %1901 = vmatmul.bf16.gmra.mxu0 %v7254_v52  ;;  %3810 = vst [vmem:[%s5717_s27] sm:$0xff] %v3778_v4  ;;  %v7256_v32 = vld [vmem:[#allocation55_spill] sm:$0xff]  ;;  %v3160_v12 = vadd.f32 %v6582_v53, %v6580_v59 }
 0x27e   : > { %v3502_v48 = vsel %vm1127_vm1, %v3458_v31, %v3459_v11  ;;  %3441 = vmatmul.bf16.gmra.mxu1 %v6130_v45 }
 0x27f   : > { %3654 = vmatmul.bf16.gmra.mxu2 %v5139_v17  ;;  %v6658_v43 = vadd.f32 %v7256_v32, %v2330_v44  ;;  %v3530_v37 = vadd.f32 %v3502_v48, %v3159_v26 }
 0x280   : > { %3128 = vmatmul.bf16.gmra.mxu3 %v7255_v28 }
 0x281   : > { %v3747_v18 = vadd.f32 %v6630_v35, %v3530_v37 }
 0x282   : > { %v2215_v22 = vpop.f32.mrf.mxu2  ;;  %v1864_v57 = vpop.f32.mrf.mxu0 }
 0x283   : > { %v6660_v58 = vpop.f32.mrf.mxu3  ;;  %v2258_v6 = vrot.slane %v2215_v22, 1  ;;  %v1952_v61 = vadd.f32 %v1864_v57, %v6416_v15  ;;  %v3779_v24 = vmax.f32 %v3747_v18, 0.0  ;;  %v3404_v23 = vpop.f32.mrf.mxu1  ;;  %v7258_v22 = vld [vmem:[#allocation66_spill] sm:$0xff]  ;;  %v3161_v18 = vadd.f32 %v6601_v34, %v6599_v3  ;;  %v5140_v57 = vld [vmem:[%s5584_s13 + $0x10] sm:$0xff] }
 0x284   : > { %v3460_v60 = vrot.slane %v3404_v23, 1 }
 0x285   : > { %v6666_v31 = vsel %vm1127_vm1, %v2257_v54, %v2258_v6  ;;  %v2331_v45 = vadd.f32 %v6454_v16, %v1952_v61  ;;  %3811 = vst [vmem:[%s5717_s27 + $0x8] sm:$0xff] %v3779_v24 }
 0x286   : > { %v3501_v4 = vsel %vm1127_vm1, %v3459_v11, %v3460_v60 }
 0x287   : > { %v6675_v44 = vadd.f32 %v7257_v36, %v2331_v45  ;;  %v3531_v15 = vadd.f32 %v3501_v4, %v3160_v12 }
 0x289   : > { %v3748_v26 = vadd.f32 %v6630_v35, %v3531_v15 }
 0x28a   : > { %v2217_v52 = vpop.f32.mrf.mxu2  ;;  %v1867_v17 = vpop.f32.mrf.mxu0 }
 0x28b   : > { %v6677_v54 = vpop.f32.mrf.mxu3  ;;  %v2259_v16 = vrot.slane %v2217_v52, 1  ;;  %v1953_v48 = vadd.f32 %v1867_v17, %v6442_v21  ;;  %v3780_v59 = vmax.f32 %v3748_v26, 0.0  ;;  %v3407_v11 = vpop.f32.mrf.mxu1  ;;  %v3162_v52 = vadd.f32 %v6618_v63, %v6616_v30  ;;  %v7260_v17 = vld [vmem:[#allocation58_spill] sm:$0xff] }
 0x28c   : > { %v3461_v37 = vrot.slane %v3407_v11, 1 }
 0x28d   : > { %v6683_v53 = vsel %vm1127_vm1, %v2258_v6, %v2259_v16  ;;  %v2332_v32 = vadd.f32 %v6475_v55, %v1953_v48  ;;  %1906 = vmatmul.bf16.gmra.mxu0 %v7258_v22  ;;  %3812 = vst [vmem:[%s5717_s27 + $0x10] sm:$0xff] %v3780_v59  ;;  %v7259_v6 = vld [vmem:[#allocation57_spill] sm:$0xff] }
 0x28e   : > { %v3500_v21 = vsel %vm1127_vm1, %v3460_v60, %v3461_v37  ;;  %3446 = vmatmul.bf16.gmra.mxu1 %v6171_v38 }
 0x28f   : > { %3659 = vmatmul.bf16.gmra.mxu2 %v5140_v57  ;;  %v6695_v61 = vadd.f32 %v7259_v6, %v2332_v32  ;;  %v3532_v55 = vadd.f32 %v3500_v21, %v3161_v18  ;;  %v3163_v21 = vadd.f32 %v6639_v8, %v6637_v14  ;;  %v5141_v6 = vld [vmem:[%s5584_s13 + $0x18] sm:$0xff] }
 0x290   : > { %3288 = vmatmul.bf16.vlgmr.msrb.gmra.mxu3 %v5140_v57 }
 0x291   : > { %v3749_v45 = vadd.f32 %v6630_v35, %v3532_v55  ;;  %v7261_v55 = vld [vmem:[#allocation59_spill] sm:$0xff] }
 0x292   : > { %v2220_v24 = vpop.f32.mrf.mxu2  ;;  %v1869_v34 = vpop.f32.mrf.mxu0 }
 0x293   : > { %v6697_v23 = vpop.f32.mrf.mxu3  ;;  %v2260_v3 = vrot.slane %v2220_v24, 1  ;;  %v1954_v12 = vadd.f32 %v1869_v34, %v6465_v20  ;;  %v3781_v4 = vmax.f32 %v3749_v45, 0.0  ;;  %v3409_v36 = vpop.f32.mrf.mxu1 }
 0x294   : > { %v3462_v15 = vrot.slane %v3409_v36, 1 }
 0x295   : > { %v6703_v60 = vsel %vm1127_vm1, %v2259_v16, %v2260_v3  ;;  %v2333_v38 = vadd.f32 %v6502_v25, %v1954_v12  ;;  %3813 = vst [vmem:[%s5717_s27 + $0x18] sm:$0xff] %v3781_v4 }
 0x296   : > { %v3499_v26 = vsel %vm1127_vm1, %v3461_v37, %v3462_v15 }
 0x297   : > { %v6712_v48 = vadd.f32 %v7260_v17, %v2333_v38  ;;  %v3533_v20 = vadd.f32 %v3499_v26, %v3162_v52  ;;  %v1585_v52 = vld [vmem:[%s5717_s27 + $0x60] sm:$0xff]  ;;  %v7262_v17 = vld [vmem:[#allocation60_spill] sm:$0xff] }
 0x299   : > { %v3750_v11 = vadd.f32 %v6630_v35, %v3533_v20 }
 0x29a   : > { %v2222_v59 = vpop.f32.mrf.mxu2  ;;  %v1872_v32 = vpop.f32.mrf.mxu0 }
 0x29b   : > { %v6714_v16 = vpop.f32.mrf.mxu3  ;;  %v2261_v25 = vrot.slane %v2222_v59, 1  ;;  %v1955_v22 = vadd.f32 %v1872_v32, %v6493_v39  ;;  %v3782_v30 = vmax.f32 %v3750_v11, 0.0  ;;  %v3412_v37 = vpop.f32.mrf.mxu1 }
 0x29c   : > { %v3463_v57 = vrot.slane %v3412_v37, 1 }
 0x29d   : > { %v6720_v63 = vsel %vm1127_vm1, %v2260_v3, %v2261_v25  ;;  %v2334_v18 = vadd.f32 %v6531_v29, %v1955_v22  ;;  %1911 = vmatmul.bf16.gmra.mxu0 %v6486_v27  ;;  %3814 = vst [vmem:[%s5717_s27 + $0x20] sm:$0xff] %v3782_v30 }
 0x29e   : > { %v3498_v39 = vsel %vm1127_vm1, %v3462_v15, %v3463_v57  ;;  %3451 = vmatmul.bf16.gmra.mxu1 %v7255_v28  ;;  %v3164_v15 = vadd.f32 %v6660_v58, %v6658_v43 }
 0x29f   : > { %3664 = vmatmul.bf16.gmra.mxu2 %v5141_v6  ;;  %v6732_v24 = vadd.f32 %v7261_v55, %v2334_v18  ;;  %v3534_v29 = vadd.f32 %v3498_v39, %v3163_v21  ;;  %v1586_v39 = vld [vmem:[%s5717_s27 + $0x68] sm:$0xff] }
 0x2a0   : > { %3293 = vmatmul.bf16.gmra.mxu3 %v5141_v6  ;;  %v3165_v6 = vadd.f32 %v6677_v54, %v6675_v44 }
 0x2a1   : > { %v3751_v14 = vadd.f32 %v6630_v35, %v3534_v29  ;;  %v7264_v29 = vld [vmem:[#allocation61_spill] sm:$0xff] }
 0x2a2   : > { %v2225_v45 = vpop.f32.mrf.mxu2  ;;  %v1874_v3 = vpop.f32.mrf.mxu0 }
 0x2a3   : > { %v6734_v27 = vpop.f32.mrf.mxu3  ;;  %v2262_v8 = vrot.slane %v2225_v45, 1  ;;  %v1956_v34 = vadd.f32 %v1874_v3, %v6513_v62  ;;  %v3783_v12 = vmax.f32 %v3751_v14, 0.0  ;;  %v3414_v28 = vpop.f32.mrf.mxu1 }
 0x2a4   : > { %v3464_v38 = vrot.slane %v3414_v28, 1 }
 0x2a5   : > { %v6740_v4 = vsel %vm1127_vm1, %v2261_v25, %v2262_v8  ;;  %v2335_v36 = vadd.f32 %v6553_v51, %v1956_v34  ;;  %3815 = vst [vmem:[%s5717_s27 + $0x28] sm:$0xff] %v3783_v12  ;;  %v7263_v25 = vld [vmem:[#allocation36_spill] sm:$0xff]  ;;  %v7265_v34 = vld [vmem:[#allocation37_spill] sm:$0xff] }
 0x2a6   : > { %v3497_v26 = vsel %vm1127_vm1, %v3463_v57, %v3464_v38  ;;  %v1613_v51 = vadd.f32 %v1585_v52, %v7263_v25  ;;  %v7266_v25 = vld [vmem:[#allocation62_spill] sm:$0xff] }
 0x2a7   : > { %v6750_v62 = vadd.f32 %v7262_v17, %v2335_v36  ;;  %v3535_v20 = vadd.f32 %v3497_v26, %v3164_v15  ;;  %v3166_v17 = vadd.f32 %v6697_v23, %v6695_v61 }
 0x2a9   : > { %v3752_v32 = vadd.f32 %v6630_v35, %v3535_v20  ;;  %v1587_v20 = vld [vmem:[%s5717_s27 + $0x70] sm:$0xff] }
 0x2aa   : > { %v2227_v59 = vpop.f32.mrf.mxu2  ;;  %v1877_v43 = vpop.f32.mrf.mxu0 }
 0x2ab   : > { %v6752_v11 = vpop.f32.mrf.mxu3  ;;  %v2263_v22 = vrot.slane %v2227_v59, 1  ;;  %v1957_v58 = vadd.f32 %v1877_v43, %v1613_v51  ;;  %v3784_v30 = vmax.f32 %v3752_v32, 0.0  ;;  %v3417_v18 = vpop.f32.mrf.mxu1 }
 0x2ac   : > { %v3465_v21 = vrot.slane %v3417_v18, 1 }
 0x2ad   : > { %v6758_v37 = vsel %vm1127_vm1, %v2262_v8, %v2263_v22  ;;  %v2336_v57 = vadd.f32 %v6568_v47, %v1957_v58  ;;  %3816 = vst [vmem:[%s5717_s27 + $0x30] sm:$0xff] %v3784_v30  ;;  %v1614_v47 = vadd.f32 %v1586_v39, %v7265_v34  ;;  %v7267_v58 = vld [vmem:[#allocation38_spill] sm:$0xff]  ;;  %v7268_v34 = vld [vmem:[#allocation25_spill] sm:$0xff] }
 0x2ae   : > { %v3496_v55 = vsel %vm1127_vm1, %v3464_v38, %v3465_v21 }
 0x2af   : > { %v6768_v45 = vadd.f32 %v7264_v29, %v2336_v57  ;;  %v3536_v14 = vadd.f32 %v3496_v55, %v3165_v6  ;;  %v3167_v29 = vadd.f32 %v6714_v16, %v6712_v48 }
 0x2b1   : > { %v3753_v12 = vadd.f32 %v6630_v35, %v3536_v14  ;;  %v1588_v14 = vld [vmem:[%s5717_s27 + $0x78] sm:$0xff] }
 0x2b2   : > { %v2230_v8 = vpop.f32.mrf.mxu2  ;;  %v1879_v44 = vpop.f32.mrf.mxu0 }
 0x2b3   : > { %v6770_v3 = vpop.f32.mrf.mxu3  ;;  %v2264_v28 = vrot.slane %v2230_v8, 1  ;;  %v1958_v54 = vadd.f32 %v1879_v44, %v1614_v47  ;;  %v3785_v36 = vmax.f32 %v3753_v12, 0.0  ;;  %v3419_v15 = vpop.f32.mrf.mxu1 }
 0x2b4   : > { %v3466_v26 = vrot.slane %v3419_v15, 1 }
 0x2b5   : > { %v6776_v38 = vsel %vm1127_vm1, %v2263_v22, %v2264_v28  ;;  %v2337_v52 = vadd.f32 %v6587_v42, %v1958_v54  ;;  %3817 = vst [vmem:[%s5717_s27 + $0x38] sm:$0xff] %v3785_v36  ;;  %v1615_v42 = vadd.f32 %v1587_v20, %v7267_v58  ;;  %v7269_v54 = vld [vmem:[#allocation39_spill] sm:$0xff] }
 0x2b6   : > { %v3495_v59 = vsel %vm1127_vm1, %v3465_v21, %v3466_v26  ;;  %v7270_v58 = vld [vmem:[#allocation27_spill] sm:$0xff] }
 0x2b7   : > { %v6786_v51 = vadd.f32 %v7266_v25, %v2337_v52  ;;  %v3537_v32 = vadd.f32 %v3495_v59, %v3166_v17  ;;  %v3168_v25 = vadd.f32 %v6734_v27, %v6732_v24 }
 0x2b9   : > { %v3754_v30 = vadd.f32 %v6630_v35, %v3537_v32  ;;  %v1589_v32 = vld [vmem:[%s5717_s27 + $0x80] sm:$0xff] }
 0x2ba   : > { %v2232_v22 = vpop.f32.mrf.mxu2  ;;  %v1882_v61 = vpop.f32.mrf.mxu0 }
 0x2bb   : > { %v6788_v43 = vpop.f32.mrf.mxu3  ;;  %v2265_v18 = vrot.slane %v2232_v22, 1  ;;  %v1959_v23 = vadd.f32 %v1882_v61, %v1615_v42  ;;  %v3786_v57 = vmax.f32 %v3754_v30, 0.0  ;;  %v3422_v6 = vpop.f32.mrf.mxu1 }
 0x2bc   : > { %v3467_v55 = vrot.slane %v3422_v6, 1 }
 0x2bd   : > { %v6794_v21 = vsel %vm1127_vm1, %v2264_v28, %v2265_v18  ;;  %v2338_v39 = vadd.f32 %v6606_v5, %v1959_v23  ;;  %3818 = vst [vmem:[%s5717_s27 + $0x40] sm:$0xff] %v3786_v57  ;;  %v1616_v5 = vadd.f32 %v1588_v14, %v7269_v54  ;;  %v7272_v54 = vld [vmem:[#allocation29_spill] sm:$0xff] }
 0x2be   : > { %v3494_v8 = vsel %vm1127_vm1, %v3466_v26, %v3467_v55 }
 0x2bf   : > { %v6804_v47 = vadd.f32 %v7268_v34, %v2338_v39  ;;  %v3538_v12 = vadd.f32 %v3494_v8, %v3167_v29  ;;  %v3169_v34 = vadd.f32 %v6752_v11, %v6750_v62 }
 0x2c1   : > { %v3755_v36 = vadd.f32 %v6630_v35, %v3538_v12  ;;  %v1590_v12 = vld [vmem:[%s5717_s27 + $0x88] sm:$0xff] }
 0x2c2   : > { %v2235_v28 = vpop.f32.mrf.mxu2  ;;  %v1884_v48 = vpop.f32.mrf.mxu0 }
 0x2c3   : > { %v6806_v44 = vpop.f32.mrf.mxu3  ;;  %v2266_v15 = vrot.slane %v2235_v28, 1  ;;  %v1960_v16 = vadd.f32 %v1884_v48, %v1616_v5  ;;  %v3787_v52 = vmax.f32 %v3755_v36, 0.0  ;;  %v3424_v17 = vpop.f32.mrf.mxu1 }
 0x2c4   : > { %v3468_v59 = vrot.slane %v3424_v17, 1 }
 0x2c5   : > { %v6812_v26 = vsel %vm1127_vm1, %v2265_v18, %v2266_v15  ;;  %v2339_v20 = vadd.f32 %v6623_v33, %v1960_v16  ;;  %3819 = vst [vmem:[%s5717_s27 + $0x48] sm:$0xff] %v3787_v52  ;;  %v7271_v33 = vld [vmem:[#allocation40_spill] sm:$0xff] }
 0x2c6   : > { %v3493_v22 = vsel %vm1127_vm1, %v3467_v55, %v3468_v59  ;;  %v1617_v23 = vadd.f32 %v1589_v32, %v7271_v33 }
 0x2c7   : > { %v6822_v42 = vadd.f32 %v7270_v58, %v2339_v20  ;;  %v3539_v30 = vadd.f32 %v3493_v22, %v3168_v25  ;;  %v1591_v22 = vld [vmem:[%s5717_s27 + $0x90] sm:$0xff] }
 0x2c9   : > { %v3756_v57 = vadd.f32 %v6630_v35, %v3539_v30 }
 0x2ca   : > { %v6824_v18 = vpop.f32.mrf.mxu2  ;;  %v1887_v27 = vpop.f32.mrf.mxu0 }
 0x2cb   : > { %v6826_v61 = vpop.f32.mrf.mxu3  ;;  %v2267_v24 = vrot.slane %v6824_v18, 1  ;;  %v1961_v6 = vadd.f32 %v1887_v27, %v1617_v23  ;;  %v3788_v39 = vmax.f32 %v3756_v57, 0.0  ;;  %v3427_v29 = vpop.f32.mrf.mxu1 }
 0x2cc   : > { %v3469_v8 = vrot.slane %v3427_v29, 1 }
 0x2cd   : > { %v6835_v55 = vsel %vm1127_vm1, %v2266_v15, %v2267_v24  ;;  %v2340_v14 = vadd.f32 %v6645_v40, %v1961_v6  ;;  %3820 = vst [vmem:[%s5717_s27 + $0x50] sm:$0xff] %v3788_v39  ;;  %v7273_v40 = vld [vmem:[#allocation41_spill] sm:$0xff] }
 0x2ce   : > { %v3492_v28 = vsel %vm1127_vm1, %v3468_v59, %v3469_v8  ;;  %v1618_v16 = vadd.f32 %v1590_v12, %v7273_v40  ;;  %v3170_v59 = vadd.f32 %v6770_v3, %v6768_v45 }
 0x2cf   : > { %v6845_v5 = vadd.f32 %v7272_v54, %v2340_v14  ;;  %v3540_v36 = vadd.f32 %v3492_v28, %v3169_v34 }
 0x2d1   : > { %v3757_v52 = vadd.f32 %v6630_v35, %v3540_v36 }
 0x2d2   : > { %v6849_v48 = vpop.f32.mrf.mxu2  ;;  %v1889_v62 = vpop.f32.mrf.mxu0 }
 0x2d3   : > { %v6847_v15 = vpop.f32.mrf.mxu3  ;;  %v1962_v11 = vadd.f32 %v1889_v62, %v1618_v16  ;;  %v3789_v17 = vmax.f32 %v3757_v52, 0.0  ;;  %v3429_v20 = vpop.f32.mrf.mxu1 }
 0x2d4   : > { %v3470_v32 = vrot.slane %v3429_v20, 1 }
 0x2d5   : > { %v2341_v25 = vadd.f32 %v6666_v31, %v1962_v11  ;;  %3821 = vst [vmem:[%s5717_s27 + $0x58] sm:$0xff] %v3789_v17  ;;  %v7274_v31 = vld [vmem:[#allocation42_spill] sm:$0xff] }
 0x2d6   : > { %v3491_v58 = vsel %vm1127_vm1, %v3469_v8, %v3470_v32  ;;  %v1619_v27 = vadd.f32 %v1591_v22, %v7274_v31  ;;  %v1592_v8 = vld [vmem:[%s5717_s27 + $0x98] sm:$0xff] }
 0x2d7   : > { %v6861_v30 = vadd.f32 %v6461_v50, %v2341_v25  ;;  %v3541_v33 = vadd.f32 %v3491_v58, %v3170_v59  ;;  %v3171_v50 = vadd.f32 %v6788_v43, %v6786_v51  ;;  %v1593_v25 = vld [vmem:[%s5717_s27 + $0xa0] sm:$0xff] }
 0x2d9   : > { %v3758_v6 = vadd.f32 %v6630_v35, %v3541_v33 }
 0x2da   : > { %v6865_v57 = vpop.f32.mrf.mxu2  ;;  %v1892_v45 = vpop.f32.mrf.mxu0 }
 0x2db   : > { %v6863_v23 = vpop.f32.mrf.mxu3  ;;  %v1963_v3 = vadd.f32 %v1892_v45, %v1619_v27  ;;  %v3790_v39 = vmax.f32 %v3758_v6, 0.0  ;;  %v3432_v29 = vpop.f32.mrf.mxu1 }
 0x2dc   : > { %v3471_v34 = vrot.slane %v3432_v29, 1  ;;  %v1594_v29 = vld [vmem:[%s5717_s27 + $0xa8] sm:$0xff] }
 0x2dd   : > { %v2342_v14 = vadd.f32 %v6683_v53, %v1963_v3  ;;  %3822 = vst [vmem:[%s5717_s27 + $0x60] sm:$0xff] %v3790_v39  ;;  %v7275_v53 = vld [vmem:[#allocation43_spill] sm:$0xff] }
 0x2de   : > { %v3490_v12 = vsel %vm1127_vm1, %v3470_v32, %v3471_v34  ;;  %v1620_v16 = vadd.f32 %v1592_v8, %v7275_v53 }
 0x2df   : > { %v6877_v28 = vadd.f32 %v6482_v19, %v2342_v14  ;;  %v3542_v54 = vadd.f32 %v3490_v12, %v3171_v50  ;;  %v3172_v19 = vadd.f32 %v6806_v44, %v6804_v47 }
 0x2e1   : > { %v3759_v52 = vadd.f32 %v6630_v35, %v3542_v54 }
 0x2e2   : > { %v6881_v40 = vpop.f32.mrf.mxu2  ;;  %v1894_v51 = vpop.f32.mrf.mxu0 }
 0x2e3   : > { %v6879_v36 = vpop.f32.mrf.mxu3  ;;  %v1964_v43 = vadd.f32 %v1894_v51, %v1620_v16  ;;  %v3791_v62 = vmax.f32 %v3759_v52, 0.0  ;;  %v3434_v11 = vpop.f32.mrf.mxu1 }
 0x2e4   : > { %v3472_v20 = vrot.slane %v3434_v11, 1 }
 0x2e5   : > { %v2343_v17 = vadd.f32 %v6703_v60, %v1964_v43  ;;  %3823 = vst [vmem:[%s5717_s27 + $0x68] sm:$0xff] %v3791_v62  ;;  %v7276_v60 = vld [vmem:[#allocation44_spill] sm:$0xff]  ;;  %v1595_v62 = vld [vmem:[%s5717_s27 + $0xb0] sm:$0xff] }
 0x2e6   : > { %v3489_v32 = vsel %vm1127_vm1, %v3471_v34, %v3472_v20  ;;  %v1621_v31 = vadd.f32 %v1593_v25, %v7276_v60 }
 0x2e7   : > { %v6893_v59 = vadd.f32 %v6509_v1, %v2343_v17  ;;  %v3543_v22 = vadd.f32 %v3489_v32, %v3172_v19  ;;  %v3173_v1 = vadd.f32 %v6826_v61, %v6822_v42 }
 0x2e9   : > { %v3760_v27 = vadd.f32 %v6630_v35, %v3543_v22 }
 0x2ea   : > { %v6897_v33 = vpop.f32.mrf.mxu2  ;;  %v1897_v47 = vpop.f32.mrf.mxu0 }
 0x2eb   : > { %v6895_v58 = vpop.f32.mrf.mxu3  ;;  %v1965_v44 = vadd.f32 %v1897_v47, %v1621_v31  ;;  %v3792_v6 = vmax.f32 %v3760_v27, 0.0  ;;  %v3437_v45 = vpop.f32.mrf.mxu1 }
 0x2ec   : > { %v3473_v39 = vrot.slane %v3437_v45, 1 }
 0x2ed   : > { %v2344_v3 = vadd.f32 %v6720_v63, %v1965_v44  ;;  %3824 = vst [vmem:[%s5717_s27 + $0x70] sm:$0xff] %v3792_v6  ;;  %v7277_v63 = vld [vmem:[#allocation45_spill] sm:$0xff]  ;;  %v1596_v44 = vld [vmem:[%s5717_s27 + $0xb8] sm:$0xff] }
 0x2ee   : > { %v3488_v14 = vsel %vm1127_vm1, %v3472_v20, %v3473_v39  ;;  %v1622_v54 = vadd.f32 %v1594_v29, %v7277_v63 }
 0x2ef   : > { %v6909_v34 = vadd.f32 %v6543_v2, %v2344_v3  ;;  %v3544_v50 = vadd.f32 %v3488_v14, %v3173_v1  ;;  %v3174_v2 = vadd.f32 %v6847_v15, %v6845_v5 }
 0x2f1   : > { %v3761_v53 = vadd.f32 %v6630_v35, %v3544_v50 }
 0x2f2   : > { %v6913_v12 = vpop.f32.mrf.mxu2  ;;  %v1899_v42 = vpop.f32.mrf.mxu0 }
 0x2f3   : > { %v6911_v8 = vpop.f32.mrf.mxu3  ;;  %v1966_v61 = vadd.f32 %v1899_v42, %v1622_v54  ;;  %v3793_v16 = vmax.f32 %v3761_v53, 0.0  ;;  %v3439_v52 = vpop.f32.mrf.mxu1  ;;  %v1597_v42 = vld [vmem:[%s5717_s27 + $0xc0] sm:$0xff] }
 0x2f4   : > { %v3474_v43 = vrot.slane %v3439_v52, 1 }
 0x2f5   : > { %v2345_v51 = vadd.f32 %v6740_v4, %v1966_v61  ;;  %3825 = vst [vmem:[%s5717_s27 + $0x78] sm:$0xff] %v3793_v16  ;;  %v7278_v4 = vld [vmem:[#allocation46_spill] sm:$0xff] }
 0x2f6   : > { %v3487_v11 = vsel %vm1127_vm1, %v3473_v39, %v3474_v43  ;;  %v1623_v32 = vadd.f32 %v1595_v62, %v7278_v4 }
 0x2f7   : > { %v6925_v17 = vadd.f32 %v6558_v10, %v2345_v51  ;;  %v3545_v20 = vadd.f32 %v3487_v11, %v3174_v2  ;;  %v3175_v10 = vadd.f32 %v6863_v23, %v6861_v30 }
 0x2f9   : > { %v3762_v22 = vadd.f32 %v6630_v35, %v3545_v20 }
 0x2fa   : > { %v6929_v25 = vpop.f32.mrf.mxu2  ;;  %v1902_v5 = vpop.f32.mrf.mxu0 }
 0x2fb   : > { %v6927_v19 = vpop.f32.mrf.mxu3  ;;  %v1967_v15 = vadd.f32 %v1902_v5, %v1623_v32  ;;  %v3794_v60 = vmax.f32 %v3762_v22, 0.0  ;;  %v3442_v31 = vpop.f32.mrf.mxu1  ;;  %v3671_v22 = vrot.slane %v6929_v25, 1  ;;  %v1598_v5 = vld [vmem:[%s5717_s27 + $0xc8] sm:$0xff] }
 0x2fc   : > { %v3475_v47 = vrot.slane %v3442_v31, 1  ;;  %v3670_v31 = vrot.slane %v6913_v12, 1 }
 0x2fd   : > { %v2346_v27 = vadd.f32 %v6758_v37, %v1967_v15  ;;  %3826 = vst [vmem:[%s5717_s27 + $0x80] sm:$0xff] %v3794_v60  ;;  %v7279_v37 = vld [vmem:[#allocation47_spill] sm:$0xff] }
 0x2fe   : > { %v3486_v6 = vsel %vm1127_vm1, %v3474_v43, %v3475_v47  ;;  %v1624_v29 = vadd.f32 %v1596_v44, %v7279_v37 }
 0x2ff   : > { %v6941_v45 = vadd.f32 %v6573_v0, %v2346_v27  ;;  %v3546_v3 = vadd.f32 %v3486_v6, %v3175_v10  ;;  %v3176_v0 = vadd.f32 %v6879_v36, %v6877_v28 }
 0x301   : > { %v3763_v14 = vadd.f32 %v6630_v35, %v3546_v3 }
 0x302   : > { %v6945_v1 = vpop.f32.mrf.mxu2  ;;  %v1904_v30 = vpop.f32.mrf.mxu0 }
 0x303   : > { %v6943_v39 = vpop.f32.mrf.mxu3  ;;  %v1968_v23 = vadd.f32 %v1904_v30, %v1624_v29  ;;  %v3795_v50 = vmax.f32 %v3763_v14, 0.0  ;;  %v3444_v63 = vpop.f32.mrf.mxu1 }
 0x304   : > { %v3476_v53 = vrot.slane %v3444_v63, 1  ;;  %v1599_v63 = vld [vmem:[%s5717_s27 + $0xd0] sm:$0xff]  ;;  %v3180_v9 = vadd.f32 %v6943_v39, %v6941_v45 }
 0x305   : > { %v2347_v54 = vadd.f32 %v6776_v38, %v1968_v23  ;;  %3827 = vst [vmem:[%s5717_s27 + $0x88] sm:$0xff] %v3795_v50  ;;  %v7280_v38 = vld [vmem:[#allocation48_spill] sm:$0xff]  ;;  %v3178_v23 = vadd.f32 %v6911_v8, %v6909_v34  ;;  %v3672_v50 = vrot.slane %v6945_v1, 1  ;;  %v4710_v8 = vld [vmem:[%s5717_s27 + $0xe0] sm:$0xff] }
 0x306   : > { %v3485_v61 = vsel %vm1127_vm1, %v3475_v47, %v3476_v53  ;;  %v1625_v2 = vadd.f32 %v1597_v42, %v7280_v38 }
 0x307   : > { %v6957_v16 = vadd.f32 %v6592_v56, %v2347_v54  ;;  %v3547_v52 = vadd.f32 %v3485_v61, %v3176_v0  ;;  %v3177_v56 = vadd.f32 %v6895_v58, %v6893_v59  ;;  %v7281_v59 = vld [vmem:[#allocation49_spill] sm:$0xff]  ;;  %v3683_v34 = vsel %vm1127_vm1, %v3671_v22, %v3672_v50 }
 0x308   : > { %v1626_v58 = vadd.f32 %v1598_v5, %v7281_v59  ;;  %v1600_v59 = vld [vmem:[%s5717_s27 + $0xd8] sm:$0xff] }
 0x309   : > { %v3764_v62 = vadd.f32 %v6630_v35, %v3547_v52 }
 0x30a   : > { %v6961_v43 = vpop.f32.mrf.mxu2  ;;  %v1907_v28 = vpop.f32.mrf.mxu0 }
 0x30b   : > { %v6959_v51 = vpop.f32.mrf.mxu3  ;;  %v1969_v36 = vadd.f32 %v1907_v28, %v1625_v2  ;;  %v3796_v11 = vmax.f32 %v3764_v62, 0.0  ;;  %v3447_v20 = vpop.f32.mrf.mxu1  ;;  %v7283_v2 = vld [vmem:[#allocation50_spill] sm:$0xff] }
 0x30c   : > { %v3477_v32 = vrot.slane %v3447_v20, 1  ;;  %v1627_v62 = vadd.f32 %v1599_v63, %v7283_v2  ;;  %v3181_v18 = vadd.f32 %v6959_v51, %v6957_v16 }
 0x30d   : > { %v2348_v4 = vadd.f32 %v6794_v21, %v1969_v36  ;;  %3828 = vst [vmem:[%s5717_s27 + $0x90] sm:$0xff] %v3796_v11 }
 0x30e   : > { %v3484_v60 = vsel %vm1127_vm1, %v3476_v53, %v3477_v32  ;;  %v7282_v53 = vld [vmem:[#allocation23_spill] sm:$0xff] }
 0x30f   : > { %v2984_v15 = vadd.f32 %v6539_v41, %v2348_v4  ;;  %v3548_v27 = vadd.f32 %v3484_v60, %v3177_v56  ;;  %v3684_v41 = vsel %vm1127_vm1, %v3670_v31, %v3671_v22 }
 0x311   : > { %v3307_v47 = vadd.f32 %v6849_v48, %v2984_v15  ;;  %v3765_v25 = vadd.f32 %v6630_v35, %v3548_v27 }
 0x312   : > { %v6976_v10 = vpop.f32.mrf.mxu2  ;;  %v1909_v44 = vpop.f32.mrf.mxu0 }
 0x313   : > { %v3289_v21 = vpop.f32.mrf.mxu3  ;;  %v3694_v6 = vadd.f32 %v3684_v41, %v3307_v47  ;;  %v1970_v3 = vadd.f32 %v1909_v44, %v1626_v58  ;;  %v3797_v37 = vmax.f32 %v3765_v25, 0.0  ;;  %v3449_v48 = vpop.f32.mrf.mxu1  ;;  %v3674_v1 = vrot.slane %v6976_v10, 1  ;;  %v7284_v25 = vld [vmem:[#allocation65_spill] sm:$0xff] }
 0x314   : > { %v3478_v30 = vrot.slane %v3449_v48, 1  ;;  %v3311_v20 = vadd.f32 %v4710_v8, %v3289_v21  ;;  %v3179_v47 = vadd.f32 %v6927_v19, %v6925_v17  ;;  %v3673_v21 = vrot.slane %v6961_v43, 1 }
 0x315   : > { %v3770_v29 = vadd.f32 %v6630_v35, %v3694_v6  ;;  %v2349_v14 = vadd.f32 %v6812_v26, %v1970_v3  ;;  %3829 = vst [vmem:[%s5717_s27 + $0x98] sm:$0xff] %v3797_v37  ;;  %v7286_v37 = vld [vmem:[#allocation51_spill] sm:$0xff] }
 0x316   : > { %v3483_v42 = vsel %vm1127_vm1, %v3477_v32, %v3478_v30  ;;  %v1628_v48 = vadd.f32 %v1600_v59, %v7286_v37 }
 0x317   : > { %v3802_v54 = vmax.f32 %v3770_v29, 0.0  ;;  %v2985_v0 = vadd.f32 %v7282_v53, %v2349_v14  ;;  %v3549_v61 = vadd.f32 %v3483_v42, %v3178_v23  ;;  %v3682_v29 = vsel %vm1127_vm1, %v3672_v50, %v3673_v21  ;;  %v4711_v14 = vld [vmem:[%s5717_s27 + $0xe8] sm:$0xff] }
 0x319   : > { %3834 = vst [vmem:[%s5717_s27 + $0xc0] sm:$0xff] %v3802_v54  ;;  %v3308_v52 = vadd.f32 %v6865_v57, %v2985_v0  ;;  %v3766_v28 = vadd.f32 %v6630_v35, %v3549_v61 }
 0x31a   : > { %v3662_v38 = vpop.f32.mrf.mxu2  ;;  %v1912_v11 = vpop.f32.mrf.mxu0 }
 0x31b   : > { %v3291_v26 = vpop.f32.mrf.mxu3  ;;  %v3675_v36 = vrot.slane %v3662_v38, 1  ;;  %v3695_v4 = vadd.f32 %v3683_v34, %v3308_v52  ;;  %v1971_v32 = vadd.f32 %v1912_v11, %v1627_v62  ;;  %v3798_v57 = vmax.f32 %v3766_v28, 0.0  ;;  %v3452_v22 = vpop.f32.mrf.mxu1  ;;  %v7287_v62 = vld [vmem:[#allocation26_spill] sm:$0xff] }
 0x31c   : > { %v3479_v27 = vrot.slane %v3452_v22, 1  ;;  %v4713_v11 = vld [vmem:[%s5717_s27 + $0xf8] sm:$0xff] }
 0x31d   : > { %v3680_v56 = vsel %vm1127_vm1, %v3674_v1, %v3675_v36  ;;  %v3771_v5 = vadd.f32 %v6630_v35, %v3695_v4  ;;  %v2350_v60 = vadd.f32 %v6835_v55, %v1971_v32  ;;  %3830 = vst [vmem:[%s5717_s27 + $0xa0] sm:$0xff] %v3798_v57  ;;  %v3681_v4 = vsel %vm1127_vm1, %v3673_v21, %v3674_v1 }
 0x31e   : > { %v3698_v15 = vadd.f32 %v3680_v56, %v3311_v20  ;;  %v3482_v6 = vsel %vm1127_vm1, %v3478_v30, %v3479_v27  ;;  %v3312_v30 = vadd.f32 %v4711_v14, %v3291_v26 }
 0x31f   : > { %v3803_v58 = vmax.f32 %v3771_v5, 0.0  ;;  %v2986_v44 = vadd.f32 %v7284_v25, %v2350_v60  ;;  %v3550_v55 = vadd.f32 %v3482_v6, %v3179_v47 }
 0x320   : > { %v3774_v41 = vadd.f32 %v6630_v35, %v3698_v15 }
 0x321   : > { %3835 = vst [vmem:[%s5717_s27 + $0xc8] sm:$0xff] %v3803_v58  ;;  %v3309_v17 = vadd.f32 %v6881_v40, %v2986_v44  ;;  %v3767_v23 = vadd.f32 %v6630_v35, %v3550_v55  ;;  %v2295_v40 = vsel %vm1127_vm1, %v2267_v24, %v2240_v7 }
 0x322   : > { %v3806_v3 = vmax.f32 %v3774_v41, 0.0  ;;  %v3665_v43 = vpop.f32.mrf.mxu2  ;;  %v1914_v54 = vpop.f32.mrf.mxu0 }
 0x323   : > { %v3294_v19 = vpop.f32.mrf.mxu3  ;;  %v3676_v63 = vrot.slane %v3665_v43, 1  ;;  %v3696_v53 = vadd.f32 %v3682_v29, %v3309_v17  ;;  %v1972_v0 = vadd.f32 %v1914_v54, %v1628_v48  ;;  %v3799_v50 = vmax.f32 %v3767_v23, 0.0  ;;  %v3454_v61 = vpop.f32.mrf.mxu1 }
 0x324   : > { %3838 = vst [vmem:[%s5717_s27 + $0xe0] sm:$0xff] %v3806_v3  ;;  %v3480_v2 = vrot.slane %v3454_v61, 1  ;;  %v3313_v56 = vadd.f32 %v4712_v46, %v3294_v19 }
 0x325   : > { %v3679_v42 = vsel %vm1127_vm1, %v3675_v36, %v3676_v63  ;;  %v3772_v52 = vadd.f32 %v6630_v35, %v3696_v53  ;;  %v2351_v26 = vadd.f32 %v2295_v40, %v1972_v0  ;;  %3831 = vst [vmem:[%s5717_s27 + $0xa8] sm:$0xff] %v3799_v50 }
 0x326   : > { %v3699_v38 = vadd.f32 %v3679_v42, %v3312_v30  ;;  %v3481_v8 = vsel %vm1127_vm1, %v3479_v27, %v3480_v2  ;;  %v3504_v28 = vsel %vm1127_vm1, %v3480_v2, %v3457_v49 }
 0x327   : > { %v3804_v7 = vmax.f32 %v3772_v52, 0.0  ;;  %v2987_v34 = vadd.f32 %v7287_v62, %v2351_v26  ;;  %v3551_v45 = vadd.f32 %v3481_v8, %v3180_v9  ;;  %v3552_v51 = vadd.f32 %v3504_v28, %v3181_v18 }
 0x328   : > { %v3775_v24 = vadd.f32 %v6630_v35, %v3699_v38 }
 0x329   : > { %3836 = vst [vmem:[%s5717_s27 + $0xd0] sm:$0xff] %v3804_v7  ;;  %v3310_v16 = vadd.f32 %v6897_v33, %v2987_v34  ;;  %v3768_v49 = vadd.f32 %v6630_v35, %v3551_v45  ;;  %v3769_v22 = vadd.f32 %v6630_v35, %v3552_v51 }
 0x32a   : > { %v3807_v39 = vmax.f32 %v3775_v24, 0.0  ;;  %v3667_v20 = vpop.f32.mrf.mxu2 }
 0x32b   : > { %v3296_v36 = vpop.f32.mrf.mxu3  ;;  %v3677_v57 = vrot.slane %v3667_v20, 1  ;;  %v3697_v33 = vadd.f32 %v3681_v4, %v3310_v16  ;;  %v3800_v10 = vmax.f32 %v3768_v49, 0.0  ;;  %v3801_v60 = vmax.f32 %v3769_v22, 0.0 }
 0x32c   : > { %v3314_v32 = vadd.f32 %v4713_v11, %v3296_v36  ;;  %3839 = vst [vmem:[%s5717_s27 + $0xe8] sm:$0xff] %v3807_v39 }
 0x32d   : > { %v3678_v1 = vsel %vm1127_vm1, %v3676_v63, %v3677_v57  ;;  %v3685_v5 = vsel %vm1127_vm1, %v3677_v57, %v3670_v31  ;;  %v3773_v15 = vadd.f32 %v6630_v35, %v3697_v33  ;;  %3832 = vst [vmem:[%s5717_s27 + $0xb0] sm:$0xff] %v3800_v10 }
 0x32e   : > { %v3700_v27 = vadd.f32 %v3678_v1, %v3313_v56  ;;  %v3701_v47 = vadd.f32 %v3685_v5, %v3314_v32  ;;  %3833 = vst [vmem:[%s5717_s27 + $0xb8] sm:$0xff] %v3801_v60 }
 0x32f   : > { %v3805_v21 = vmax.f32 %v3773_v15, 0.0 }
 0x330   : > { %v3776_v59 = vadd.f32 %v6630_v35, %v3700_v27  ;;  %v3777_v12 = vadd.f32 %v6630_v35, %v3701_v47 }
 0x331   : > { %3837 = vst [vmem:[%s5717_s27 + $0xd8] sm:$0xff] %v3805_v21 }
 0x332   : > { %v3808_v13 = vmax.f32 %v3776_v59, 0.0  ;;  %v3809_v31 = vmax.f32 %v3777_v12, 0.0 }
 0x334   : > { %3840 = vst [vmem:[%s5717_s27 + $0xf0] sm:$0xff] %v3808_v13 }
 0x335   : > { %3841 = vst [vmem:[%s5717_s27 + $0xf8] sm:$0xff] %v3809_v31 }
 0x336   : > { %5259 = shalt.err (!%p5256_p2)
}
 0x337   : > { %s5367_s4 = smov 128   ;;  %s5368_s27 = smov 8  }
 0x338   : > { %5008 = dma.vmem_to_hbm [thread:$0]  (%p5520_p7), %s3859_s7, 4096, %s3861_s6, %s3843_s18, %s5367_s4, %s5367_s4, %s5368_s27  }
 0x339 PF: > { %s7291_s5 = sld [smem:[#allocation13_spill]]  ;;  %p5028_p10 = scmp.ge.s32.totalorder %s5362_s25, 2 }
 0x33b   : > { %p5022_p13 = pnand %p5028_p10, %p5533_p1 }
 0x33d   : > { %p5023_p0 = pneg %p5022_p13 }
 0x33f   : > { %s3875_s8 = sand.u32 1, %s7291_s5  }
 0x340   : > { %s3876_s21 = scalar_lea.sflag [#allocation4], %s3875_s8 }
 0x341   : > { %5317 = dma.done.wait (%p5023_p0), %s3876_s21, 4096  }
 0x342   : > { %5319 = vsyncadd (%p5023_p0), %s3876_s21, 4294963200  ;;  %s23_s25 = sadd.s32 1, %s5362_s25   ;;  %s7293_s9 = sld [smem:[#allocation14_spill]] }
 0x343   : > { %p20_p6 = scmp.ge.s32.totalorder %s23_s25, 6   ;;  %s7294_s20 = sld [smem:[#allocation21_spill]] }
 0x344   : > { %s7295_s21 = sld [smem:[#allocation16_spill]]  ;;  %s7299_s15 = smov %s5326_s16 }
 0x345   : > { %s7296_s22 = sld [smem:[#allocation17_spill]]  ;;  %s7300_s16 = smov %s5330_s17 }
 0x346   : > { %s7297_s23 = sld [smem:[#allocation18_spill]]  ;;  %s7301_s17 = smov %s5559_s11 }
 0x347   : > { %s7298_s24 = sld [smem:[#allocation19_spill]]  ;;  %s7302_s18 = smov %s5338_s19 }
 0x348   : > { %s7303_s19 = smov %s7293_s9  ;;  %22 = sbr.rel (!%p20_p6) target bundleno = 14 (0xe), region = 110 }
 0x34d   :  { %3882 = vsyncpa [#allocation3], 1 }
 0x34e   :  { %3884 = vsyncpa [#allocation3 + $0x1], 1 }
 0x34f   :  { %3885 = vsyncpa [#allocation6], 1 }
 0x350   :  { %3887 = vsyncpa [#allocation6 + $0x1], 1 }
 0x351   :  { %3888 = vsyncpa [#allocation4], 1 }
 0x352   :  { %3890 = vsyncpa [#allocation4 + $0x1], 1 }

</bundles_post_ra>
